<compile_context>
chip_gen: v7x
topology: tpu7x:2x2x1
jax: 0.10.0
libtpu: 0.0.40
codegen_flags: <defaults>
</compile_context>

<pallas_src>
import functools

import numpy as np
import jax
import jax.numpy as jnp
from jax.experimental import pallas as pl
from jax.experimental.pallas import tpu as pltpu


IMG = 64  # Encoder is built for 64x64 single-channel observations

# (Cin, Cout, kernel, stride, pad) for the 6 Encoder convs
CONV_DEFS = (
    (1, 4, 3, 2, 1),
    (4, 8, 3, 2, 1),
    (8, 16, 3, 2, 1),
    (16, 32, 3, 2, 1),
    (32, 64, 3, 2, 1),
    (64, 128, 2, 2, 0),
)


def _conv_shapes():
    """Per-layer (cin, cout, k, s, p, hin, win, ho, wo)."""
    shapes = []
    h = w = IMG
    for cin, cout, k, s, p in CONV_DEFS:
        ho = (h + 2 * p - k) // s + 1
        wo = (w + 2 * p - k) // s + 1
        shapes.append((cin, cout, k, s, p, h, w, ho, wo))
        h, w = ho, wo
    return shapes


# -----------------------------------------------------------------------------
# Parameters (PyTorch layout: conv (Cout, Cin, k, k); linear (out, in))
# -----------------------------------------------------------------------------
def init_params(key):
    # TODO(synk): the reference uses orthogonal init with layer-specific gains;
    # scaled-normal init is used here (kernel correctness is validated below
    # against a plain-JAX reference built from these same raw parameters).
    params = {}
    keys = jax.random.split(key, len(CONV_DEFS) + 3)
    for i, (cin, cout, k, _s, _p) in enumerate(CONV_DEFS):
        fan_in = cin * k * k
        params[f"conv{i}_w"] = jnp.sqrt(2.0 / fan_in) * jax.random.normal(
            keys[i], (cout, cin, k, k), jnp.float32)
        params[f"conv{i}_b"] = jnp.zeros((cout,), jnp.float32)
    params["fc_w"] = (1.0 / jnp.sqrt(128.0)) * jax.random.normal(
        keys[-3], (64, 128), jnp.float32)
    params["fc_b"] = jnp.zeros((64,), jnp.float32)
    params["main_w"] = jnp.sqrt(2.0 / 64.0) * jax.random.normal(
        keys[-2], (32, 64), jnp.float32)
    params["main_b"] = jnp.zeros((32,), jnp.float32)
    params["critic_w"] = (1.0 / jnp.sqrt(32.0)) * jax.random.normal(
        keys[-1], (1, 32), jnp.float32)
    params["critic_b"] = jnp.zeros((1,), jnp.float32)
    return params


# -----------------------------------------------------------------------------
# Host-side precompute: fold the stride-2 + zero-pad gathers into small dense
# matrices so the in-kernel conv is pure matmuls.
#
#   Csel[kj][w, wo]            = 1  iff  w == s*wo + kj - p            (Win, Wo)
#   Mc[kj][co*Ho+ho, ci*Hin+h] = W[co, ci, h - s*ho + p, kj]    (Cout*Ho, Cin*Hin)
#                                 (zero when the tap falls in the padding)
# so that, with activations stored as A[ci*Hin + h, w]:
#   conv_out[co*Ho+ho, wo] = sum_kj (Mc[kj] @ (A @ Csel[kj]))[co*Ho+ho, wo] + b[co]
# -----------------------------------------------------------------------------
def build_kernel_operands(params):
    ops = []
    for i, (cin, cout, k, s, p, hin, win, ho, wo) in enumerate(_conv_shapes()):
        w4 = np.asarray(params[f"conv{i}_w"], np.float32)        # (Cout,Cin,k,k)
        b1 = np.asarray(params[f"conv{i}_b"], np.float32)        # (Cout,)

        ho_i = np.arange(ho)[:, None]                            # (Ho,1)
        h_i = np.arange(hin)[None, :]                            # (1,Hin)
        ki_grid = h_i - s * ho_i + p                             # (Ho,Hin)
        valid = (ki_grid >= 0) & (ki_grid < k)
        ki_cl = np.clip(ki_grid, 0, k - 1)

        mc = np.zeros((k, cout * ho, cin * hin), np.float32)
        csel = np.zeros((k, win, wo), np.float32)
        w_i = np.arange(win)[:, None]
        wo_i = np.arange(wo)[None, :]
        for kj in range(k):
            wg = w4[:, :, ki_cl, kj] * valid[None, None]         # (Cout,Cin,Ho,Hin)
            mc[kj] = wg.transpose(0, 2, 1, 3).reshape(cout * ho, cin * hin)
            csel[kj] = (w_i == s * wo_i + kj - p).astype(np.float32)
        bias = np.repeat(b1, ho)[:, None].astype(np.float32)     # (Cout*Ho,1)
        ops += [jnp.asarray(mc), jnp.asarray(csel), jnp.asarray(bias)]

    ops += [
        jnp.asarray(params["fc_w"]),
        jnp.asarray(params["fc_b"]).reshape(-1, 1),
        jnp.asarray(params["main_w"]),
        jnp.asarray(params["main_b"]).reshape(-1, 1),
        jnp.asarray(params["critic_w"]),
        jnp.asarray(params["critic_b"]).reshape(-1, 1),
    ]
    return ops


# -----------------------------------------------------------------------------
# Fused kernel: one grid step == one image's entire forward
# -----------------------------------------------------------------------------
def _cnn_base_kernel(x_ref, *refs):
    n_conv_ops = 3 * len(CONV_DEFS)
    conv_refs = refs[:n_conv_ops]
    fc_w, fc_b, main_w, main_b, crit_w, crit_b = refs[n_conv_ops:n_conv_ops + 6]
    actor_ref, value_ref = refs[n_conv_ops + 6:]

    a = x_ref[0]                                              # (64,64) = (Cin*H, W), Cin=1
    for li, (_cin, _cout, k, _s, _p) in enumerate(CONV_DEFS):
        mc_ref = conv_refs[3 * li]
        cs_ref = conv_refs[3 * li + 1]
        b_ref = conv_refs[3 * li + 2]
        acc = None
        for kj in range(k):
            col = jnp.dot(a, cs_ref[kj],
                          preferred_element_type=jnp.float32)     # (Cin*Hin, Wo)
            tap = jnp.dot(mc_ref[kj], col,
                          preferred_element_type=jnp.float32)     # (Cout*Ho, Wo)
            acc = tap if acc is None else acc + tap
        a = jnp.maximum(acc + b_ref[...], 0.0)                    # (Cout*Ho, Wo)

    # a: (128, 1) column vector -- conv5 output (1x1 spatial, channel-major),
    # identical ordering to the PyTorch x.squeeze() flatten.
    h = jnp.dot(fc_w[...], a, preferred_element_type=jnp.float32) + fc_b[...]   # (64,1), no act
    feats = jnp.maximum(
        jnp.dot(main_w[...], h, preferred_element_type=jnp.float32) + main_b[...], 0.0)   # (32,1)
    value = jnp.maximum(
        jnp.dot(crit_w[...], feats, preferred_element_type=jnp.float32) + crit_b[...], 0.0)  # (1,1)

    actor_ref[...] = feats.reshape(1, 32, 1)
    value_ref[...] = value.reshape(1, 1, 1)


def _all_zero(ndim, i):
    return (0,) * ndim


def cnn_base_forward(operands, inputs, rnn_hxs, masks):
    """Fused CNNBase.forward -> (value, actor_features, rnn_hxs)."""
    del masks  # non-recurrent path: masks only matter for the GRU
    x = inputs
    if x.ndim == 2:                  # (H, W)       -> (1, H, W)
        x = x[None]
    if x.ndim == 4:                  # (N, 1, H, W) -> (N, H, W)
        x = x[:, 0]
    assert x.shape[-2:] == (IMG, IMG), "Encoder expects 64x64 observations"
    n = x.shape[0]

    in_specs = [pl.BlockSpec((1, IMG, IMG), lambda i: (i, 0, 0))]
    for op in operands:
        in_specs.append(
            pl.BlockSpec(op.shape, functools.partial(_all_zero, op.ndim)))

    out_shape = [
        jax.ShapeDtypeStruct((n, 32, 1), jnp.float32),   # actor features (col-vec per image)
        jax.ShapeDtypeStruct((n, 1, 1), jnp.float32),    # value
    ]
    out_specs = [
        pl.BlockSpec((1, 32, 1), lambda i: (i, 0, 0)),
        pl.BlockSpec((1, 1, 1), lambda i: (i, 0, 0)),
    ]

    feats3, value3 = pl.pallas_call(
        _cnn_base_kernel,
        out_shape=out_shape,
        grid=(n,),
        in_specs=in_specs,
        out_specs=out_specs,
        compiler_params=pltpu.CompilerParams(
            dimension_semantics=("parallel",)),   # batch splits across TCs on v7x
    )(x, *operands)

    actor_features = feats3[:, :, 0]              # (N, 32)
    value = value3[:, :, 0]                       # (N, 1)
    # TODO(synk): NNBase._forward_gru (recurrent path) not implemented --
    # CNNBase defaults to recurrent=False, so rnn_hxs passes through unchanged.
    return value, actor_features, rnn_hxs


# -----------------------------------------------------------------------------
# Plain-JAX reference of the same module, for validation
# -----------------------------------------------------------------------------
def reference_forward(params, inputs):
    hp = jax.lax.Precision.HIGHEST
    x = inputs
    if x.ndim == 2:
        x = x[None]
    x = x[:, None, :, :]                                           # (N,1,H,W)
    for i, (_cin, _cout, _k, s, p) in enumerate(CONV_DEFS):
        x = jax.lax.conv_general_dilated(
            x, params[f"conv{i}_w"], window_strides=(s, s),
            padding=[(p, p), (p, p)],
            dimension_numbers=("NCHW", "OIHW", "NCHW"), precision=hp)
        x = jnp.maximum(x + params[f"conv{i}_b"][None, :, None, None], 0.0)
    x = x.reshape(x.shape[0], -1)                                  # (N,128)
    h = jnp.dot(x, params["fc_w"].T, precision=hp) + params["fc_b"]
    feats = jnp.maximum(
        jnp.dot(h, params["main_w"].T, precision=hp) + params["main_b"], 0.0)
    value = jnp.maximum(
        jnp.dot(feats, params["critic_w"].T, precision=hp) + params["critic_b"], 0.0)
    return value, feats


if __name__ == "__main__":
    key = jax.random.PRNGKey(0)
    params = init_params(key)
    operands = build_kernel_operands(params)

    # Small deterministic example: batch=2 single-channel 64x64 observations
    # (the Encoder's conv stack needs 64x64 to reach its 1x1/128-ch bottleneck).
    k_in = jax.random.split(key, 2)[1]
    inputs = jax.random.uniform(k_in, (2, IMG, IMG), dtype=jnp.float32)
    rnn_hxs = jnp.zeros((2, 1), jnp.float32)   # recurrent_hidden_state_size == 1
    masks = jnp.ones((2, 1), jnp.float32)

    fwd = jax.jit(cnn_base_forward)
    value, actor_features, rnn_out = fwd(operands, inputs, rnn_hxs, masks)
    jax.block_until_ready((value, actor_features, rnn_out))

    assert value.shape == (2, 1) and actor_features.shape == (2, 32)
    assert rnn_out.shape == rnn_hxs.shape
    assert bool(jnp.all(value >= 0.0))         # critic head ends in ReLU

    # Validate against the plain-JAX reference of the same module.
    ref_value, ref_feats = reference_forward(params, inputs)
    assert np.allclose(np.asarray(actor_features), np.asarray(ref_feats),
                       rtol=2e-2, atol=2e-2), "actor features mismatch vs reference"
    assert np.allclose(np.asarray(value), np.asarray(ref_value),
                       rtol=2e-2, atol=2e-2), "value mismatch vs reference"

    print("KERNEL_OK")
</pallas_src>

<mosaic_0001>
module attributes {stable_mosaic.version = 11 : i64} {
  func.func @_cnn_base_kernel(%arg0: i32, %arg1: memref<1x64x64xf32, #tpu.memory_space<vmem>>, %arg2: memref<3x128x64xf32, #tpu.memory_space<vmem>>, %arg3: memref<3x64x32xf32, #tpu.memory_space<vmem>>, %arg4: memref<128x1xf32, #tpu.memory_space<vmem>>, %arg5: memref<3x128x128xf32, #tpu.memory_space<vmem>>, %arg6: memref<3x32x16xf32, #tpu.memory_space<vmem>>, %arg7: memref<128x1xf32, #tpu.memory_space<vmem>>, %arg8: memref<3x128x128xf32, #tpu.memory_space<vmem>>, %arg9: memref<3x16x8xf32, #tpu.memory_space<vmem>>, %arg10: memref<128x1xf32, #tpu.memory_space<vmem>>, %arg11: memref<3x128x128xf32, #tpu.memory_space<vmem>>, %arg12: memref<3x8x4xf32, #tpu.memory_space<vmem>>, %arg13: memref<128x1xf32, #tpu.memory_space<vmem>>, %arg14: memref<3x128x128xf32, #tpu.memory_space<vmem>>, %arg15: memref<3x4x2xf32, #tpu.memory_space<vmem>>, %arg16: memref<128x1xf32, #tpu.memory_space<vmem>>, %arg17: memref<2x128x128xf32, #tpu.memory_space<vmem>>, %arg18: memref<2x2x1xf32, #tpu.memory_space<vmem>>, %arg19: memref<128x1xf32, #tpu.memory_space<vmem>>, %arg20: memref<64x128xf32, #tpu.memory_space<vmem>>, %arg21: memref<64x1xf32, #tpu.memory_space<vmem>>, %arg22: memref<32x64xf32, #tpu.memory_space<vmem>>, %arg23: memref<32x1xf32, #tpu.memory_space<vmem>>, %arg24: memref<1x32xf32, #tpu.memory_space<vmem>>, %arg25: memref<1x1xf32, #tpu.memory_space<vmem>>, %arg26: memref<1x32x1xf32, #tpu.memory_space<vmem>>, %arg27: memref<1x1x1xf32, #tpu.memory_space<vmem>>) attributes {dimension_semantics = [#tpu.dimension_semantics<parallel>], iteration_bounds = array<i64: 2>, scalar_prefetch = 0 : i64, scratch_operands = 0 : i64, tpu.core_type = #tpu.core_type<tc>, window_params = [{transform_indices = @transform_0, window_bounds = array<i64: 1, 64, 64>}, {pipeline_mode = #tpu.pipeline_mode<synchronous>, transform_indices = @transform_1, window_bounds = array<i64: 3, 128, 64>}, {pipeline_mode = #tpu.pipeline_mode<synchronous>, transform_indices = @transform_2, window_bounds = array<i64: 3, 64, 32>}, {pipeline_mode = #tpu.pipeline_mode<synchronous>, transform_indices = @transform_3, window_bounds = array<i64: 128, 1>}, {pipeline_mode = #tpu.pipeline_mode<synchronous>, transform_indices = @transform_4, window_bounds = array<i64: 3, 128, 128>}, {pipeline_mode = #tpu.pipeline_mode<synchronous>, transform_indices = @transform_5, window_bounds = array<i64: 3, 32, 16>}, {pipeline_mode = #tpu.pipeline_mode<synchronous>, transform_indices = @transform_6, window_bounds = array<i64: 128, 1>}, {pipeline_mode = #tpu.pipeline_mode<synchronous>, transform_indices = @transform_7, window_bounds = array<i64: 3, 128, 128>}, {pipeline_mode = #tpu.pipeline_mode<synchronous>, transform_indices = @transform_8, window_bounds = array<i64: 3, 16, 8>}, {pipeline_mode = #tpu.pipeline_mode<synchronous>, transform_indices = @transform_9, window_bounds = array<i64: 128, 1>}, {pipeline_mode = #tpu.pipeline_mode<synchronous>, transform_indices = @transform_10, window_bounds = array<i64: 3, 128, 128>}, {pipeline_mode = #tpu.pipeline_mode<synchronous>, transform_indices = @transform_11, window_bounds = array<i64: 3, 8, 4>}, {pipeline_mode = #tpu.pipeline_mode<synchronous>, transform_indices = @transform_12, window_bounds = array<i64: 128, 1>}, {pipeline_mode = #tpu.pipeline_mode<synchronous>, transform_indices = @transform_13, window_bounds = array<i64: 3, 128, 128>}, {pipeline_mode = #tpu.pipeline_mode<synchronous>, transform_indices = @transform_14, window_bounds = array<i64: 3, 4, 2>}, {pipeline_mode = #tpu.pipeline_mode<synchronous>, transform_indices = @transform_15, window_bounds = array<i64: 128, 1>}, {pipeline_mode = #tpu.pipeline_mode<synchronous>, transform_indices = @transform_16, window_bounds = array<i64: 2, 128, 128>}, {pipeline_mode = #tpu.pipeline_mode<synchronous>, transform_indices = @transform_17, window_bounds = array<i64: 2, 2, 1>}, {pipeline_mode = #tpu.pipeline_mode<synchronous>, transform_indices = @transform_18, window_bounds = array<i64: 128, 1>}, {pipeline_mode = #tpu.pipeline_mode<synchronous>, transform_indices = @transform_19, window_bounds = array<i64: 64, 128>}, {pipeline_mode = #tpu.pipeline_mode<synchronous>, transform_indices = @transform_20, window_bounds = array<i64: 64, 1>}, {pipeline_mode = #tpu.pipeline_mode<synchronous>, transform_indices = @transform_21, window_bounds = array<i64: 32, 64>}, {pipeline_mode = #tpu.pipeline_mode<synchronous>, transform_indices = @transform_22, window_bounds = array<i64: 32, 1>}, {pipeline_mode = #tpu.pipeline_mode<synchronous>, transform_indices = @transform_23, window_bounds = array<i64: 1, 32>}, {pipeline_mode = #tpu.pipeline_mode<synchronous>, transform_indices = @transform_24, window_bounds = array<i64: 1, 1>}, {transform_indices = @transform_25, window_bounds = array<i64: 1, 32, 1>}, {transform_indices = @transform_26, window_bounds = array<i64: 1, 1, 1>}]} {
    %c0 = arith.constant 0 : index
    %c0_0 = arith.constant 0 : index
    %c0_1 = arith.constant 0 : index
    %0 = vector.load %arg1[%c0, %c0_0, %c0_1] : memref<1x64x64xf32, #tpu.memory_space<vmem>>, vector<1x64x64xf32>
    %1 = vector.shape_cast %0 : vector<1x64x64xf32> to vector<64x64xf32>
    %c0_2 = arith.constant 0 : index
    %c0_3 = arith.constant 0 : index
    %c0_4 = arith.constant 0 : index
    %2 = vector.load %arg3[%c0_2, %c0_3, %c0_4] : memref<3x64x32xf32, #tpu.memory_space<vmem>>, vector<1x64x32xf32>
    %3 = vector.shape_cast %2 : vector<1x64x32xf32> to vector<64x32xf32>
    %cst = arith.constant dense<0.000000e+00> : vector<64x32xf32>
    %4 = tpu.matmul %1, %3, %cst {dimension_numbers = #tpu.dot_dimension_numbers<[1], [0], [0], [1], [0, 0, 1, 1], [], []>} : vector<64x64xf32>, vector<64x32xf32>, vector<64x32xf32> -> vector<64x32xf32>
    %c0_5 = arith.constant 0 : index
    %c0_6 = arith.constant 0 : index
    %c0_7 = arith.constant 0 : index
    %5 = vector.load %arg2[%c0_5, %c0_6, %c0_7] : memref<3x128x64xf32, #tpu.memory_space<vmem>>, vector<1x128x64xf32>
    %6 = vector.shape_cast %5 : vector<1x128x64xf32> to vector<128x64xf32>
    %cst_8 = arith.constant dense<0.000000e+00> : vector<128x32xf32>
    %7 = tpu.matmul %6, %4, %cst_8 {dimension_numbers = #tpu.dot_dimension_numbers<[1], [0], [0], [1], [0, 0, 1, 1], [], []>} : vector<128x64xf32>, vector<64x32xf32>, vector<128x32xf32> -> vector<128x32xf32>
    %c1 = arith.constant 1 : index
    %c0_9 = arith.constant 0 : index
    %c0_10 = arith.constant 0 : index
    %8 = vector.load %arg3[%c1, %c0_9, %c0_10] : memref<3x64x32xf32, #tpu.memory_space<vmem>>, vector<1x64x32xf32>
    %9 = vector.shape_cast %8 : vector<1x64x32xf32> to vector<64x32xf32>
    %cst_11 = arith.constant dense<0.000000e+00> : vector<64x32xf32>
    %10 = tpu.matmul %1, %9, %cst_11 {dimension_numbers = #tpu.dot_dimension_numbers<[1], [0], [0], [1], [0, 0, 1, 1], [], []>} : vector<64x64xf32>, vector<64x32xf32>, vector<64x32xf32> -> vector<64x32xf32>
    %c1_12 = arith.constant 1 : index
    %c0_13 = arith.constant 0 : index
    %c0_14 = arith.constant 0 : index
    %11 = vector.load %arg2[%c1_12, %c0_13, %c0_14] : memref<3x128x64xf32, #tpu.memory_space<vmem>>, vector<1x128x64xf32>
    %12 = vector.shape_cast %11 : vector<1x128x64xf32> to vector<128x64xf32>
    %cst_15 = arith.constant dense<0.000000e+00> : vector<128x32xf32>
    %13 = tpu.matmul %12, %10, %cst_15 {dimension_numbers = #tpu.dot_dimension_numbers<[1], [0], [0], [1], [0, 0, 1, 1], [], []>} : vector<128x64xf32>, vector<64x32xf32>, vector<128x32xf32> -> vector<128x32xf32>
    %14 = arith.addf %7, %13 : vector<128x32xf32>
    %c2 = arith.constant 2 : index
    %c0_16 = arith.constant 0 : index
    %c0_17 = arith.constant 0 : index
    %15 = vector.load %arg3[%c2, %c0_16, %c0_17] : memref<3x64x32xf32, #tpu.memory_space<vmem>>, vector<1x64x32xf32>
    %16 = vector.shape_cast %15 : vector<1x64x32xf32> to vector<64x32xf32>
    %cst_18 = arith.constant dense<0.000000e+00> : vector<64x32xf32>
    %17 = tpu.matmul %1, %16, %cst_18 {dimension_numbers = #tpu.dot_dimension_numbers<[1], [0], [0], [1], [0, 0, 1, 1], [], []>} : vector<64x64xf32>, vector<64x32xf32>, vector<64x32xf32> -> vector<64x32xf32>
    %c2_19 = arith.constant 2 : index
    %c0_20 = arith.constant 0 : index
    %c0_21 = arith.constant 0 : index
    %18 = vector.load %arg2[%c2_19, %c0_20, %c0_21] : memref<3x128x64xf32, #tpu.memory_space<vmem>>, vector<1x128x64xf32>
    %19 = vector.shape_cast %18 : vector<1x128x64xf32> to vector<128x64xf32>
    %cst_22 = arith.constant dense<0.000000e+00> : vector<128x32xf32>
    %20 = tpu.matmul %19, %17, %cst_22 {dimension_numbers = #tpu.dot_dimension_numbers<[1], [0], [0], [1], [0, 0, 1, 1], [], []>} : vector<128x64xf32>, vector<64x32xf32>, vector<128x32xf32> -> vector<128x32xf32>
    %21 = arith.addf %14, %20 : vector<128x32xf32>
    %c0_23 = arith.constant 0 : index
    %c0_24 = arith.constant 0 : index
    %22 = vector.load %arg4[%c0_23, %c0_24] : memref<128x1xf32, #tpu.memory_space<vmem>>, vector<128x1xf32>
    %23 = vector.broadcast %22 : vector<128x1xf32> to vector<128x32xf32>
    %24 = arith.addf %21, %23 : vector<128x32xf32>
    %cst_25 = arith.constant 0.000000e+00 : f32
    %25 = vector.broadcast %cst_25 : f32 to vector<128x32xf32>
    %26 = arith.maximumf %24, %25 : vector<128x32xf32>
    %c0_26 = arith.constant 0 : index
    %c0_27 = arith.constant 0 : index
    %c0_28 = arith.constant 0 : index
    %27 = vector.load %arg6[%c0_26, %c0_27, %c0_28] : memref<3x32x16xf32, #tpu.memory_space<vmem>>, vector<1x32x16xf32>
    %28 = vector.shape_cast %27 : vector<1x32x16xf32> to vector<32x16xf32>
    %cst_29 = arith.constant dense<0.000000e+00> : vector<128x16xf32>
    %29 = tpu.matmul %26, %28, %cst_29 {dimension_numbers = #tpu.dot_dimension_numbers<[1], [0], [0], [1], [0, 0, 1, 1], [], []>} : vector<128x32xf32>, vector<32x16xf32>, vector<128x16xf32> -> vector<128x16xf32>
    %c0_30 = arith.constant 0 : index
    %c0_31 = arith.constant 0 : index
    %c0_32 = arith.constant 0 : index
    %30 = vector.load %arg5[%c0_30, %c0_31, %c0_32] : memref<3x128x128xf32, #tpu.memory_space<vmem>>, vector<1x128x128xf32>
    %31 = vector.shape_cast %30 : vector<1x128x128xf32> to vector<128x128xf32>
    %cst_33 = arith.constant dense<0.000000e+00> : vector<128x16xf32>
    %32 = tpu.matmul %31, %29, %cst_33 {dimension_numbers = #tpu.dot_dimension_numbers<[1], [0], [0], [1], [0, 0, 1, 1], [], []>} : vector<128x128xf32>, vector<128x16xf32>, vector<128x16xf32> -> vector<128x16xf32>
    %c1_34 = arith.constant 1 : index
    %c0_35 = arith.constant 0 : index
    %c0_36 = arith.constant 0 : index
    %33 = vector.load %arg6[%c1_34, %c0_35, %c0_36] : memref<3x32x16xf32, #tpu.memory_space<vmem>>, vector<1x32x16xf32>
    %34 = vector.shape_cast %33 : vector<1x32x16xf32> to vector<32x16xf32>
    %cst_37 = arith.constant dense<0.000000e+00> : vector<128x16xf32>
    %35 = tpu.matmul %26, %34, %cst_37 {dimension_numbers = #tpu.dot_dimension_numbers<[1], [0], [0], [1], [0, 0, 1, 1], [], []>} : vector<128x32xf32>, vector<32x16xf32>, vector<128x16xf32> -> vector<128x16xf32>
    %c1_38 = arith.constant 1 : index
    %c0_39 = arith.constant 0 : index
    %c0_40 = arith.constant 0 : index
    %36 = vector.load %arg5[%c1_38, %c0_39, %c0_40] : memref<3x128x128xf32, #tpu.memory_space<vmem>>, vector<1x128x128xf32>
    %37 = vector.shape_cast %36 : vector<1x128x128xf32> to vector<128x128xf32>
    %cst_41 = arith.constant dense<0.000000e+00> : vector<128x16xf32>
    %38 = tpu.matmul %37, %35, %cst_41 {dimension_numbers = #tpu.dot_dimension_numbers<[1], [0], [0], [1], [0, 0, 1, 1], [], []>} : vector<128x128xf32>, vector<128x16xf32>, vector<128x16xf32> -> vector<128x16xf32>
    %39 = arith.addf %32, %38 : vector<128x16xf32>
    %c2_42 = arith.constant 2 : index
    %c0_43 = arith.constant 0 : index
    %c0_44 = arith.constant 0 : index
    %40 = vector.load %arg6[%c2_42, %c0_43, %c0_44] : memref<3x32x16xf32, #tpu.memory_space<vmem>>, vector<1x32x16xf32>
    %41 = vector.shape_cast %40 : vector<1x32x16xf32> to vector<32x16xf32>
    %cst_45 = arith.constant dense<0.000000e+00> : vector<128x16xf32>
    %42 = tpu.matmul %26, %41, %cst_45 {dimension_numbers = #tpu.dot_dimension_numbers<[1], [0], [0], [1], [0, 0, 1, 1], [], []>} : vector<128x32xf32>, vector<32x16xf32>, vector<128x16xf32> -> vector<128x16xf32>
    %c2_46 = arith.constant 2 : index
    %c0_47 = arith.constant 0 : index
    %c0_48 = arith.constant 0 : index
    %43 = vector.load %arg5[%c2_46, %c0_47, %c0_48] : memref<3x128x128xf32, #tpu.memory_space<vmem>>, vector<1x128x128xf32>
    %44 = vector.shape_cast %43 : vector<1x128x128xf32> to vector<128x128xf32>
    %cst_49 = arith.constant dense<0.000000e+00> : vector<128x16xf32>
    %45 = tpu.matmul %44, %42, %cst_49 {dimension_numbers = #tpu.dot_dimension_numbers<[1], [0], [0], [1], [0, 0, 1, 1], [], []>} : vector<128x128xf32>, vector<128x16xf32>, vector<128x16xf32> -> vector<128x16xf32>
    %46 = arith.addf %39, %45 : vector<128x16xf32>
    %c0_50 = arith.constant 0 : index
    %c0_51 = arith.constant 0 : index
    %47 = vector.load %arg7[%c0_50, %c0_51] : memref<128x1xf32, #tpu.memory_space<vmem>>, vector<128x1xf32>
    %48 = vector.broadcast %47 : vector<128x1xf32> to vector<128x16xf32>
    %49 = arith.addf %46, %48 : vector<128x16xf32>
    %cst_52 = arith.constant 0.000000e+00 : f32
    %50 = vector.broadcast %cst_52 : f32 to vector<128x16xf32>
    %51 = arith.maximumf %49, %50 : vector<128x16xf32>
    %c0_53 = arith.constant 0 : index
    %c0_54 = arith.constant 0 : index
    %c0_55 = arith.constant 0 : index
    %52 = vector.load %arg9[%c0_53, %c0_54, %c0_55] : memref<3x16x8xf32, #tpu.memory_space<vmem>>, vector<1x16x8xf32>
    %53 = vector.shape_cast %52 : vector<1x16x8xf32> to vector<16x8xf32>
    %cst_56 = arith.constant dense<0.000000e+00> : vector<128x8xf32>
    %54 = tpu.matmul %51, %53, %cst_56 {dimension_numbers = #tpu.dot_dimension_numbers<[1], [0], [0], [1], [0, 0, 1, 1], [], []>} : vector<128x16xf32>, vector<16x8xf32>, vector<128x8xf32> -> vector<128x8xf32>
    %c0_57 = arith.constant 0 : index
    %c0_58 = arith.constant 0 : index
    %c0_59 = arith.constant 0 : index
    %55 = vector.load %arg8[%c0_57, %c0_58, %c0_59] : memref<3x128x128xf32, #tpu.memory_space<vmem>>, vector<1x128x128xf32>
    %56 = vector.shape_cast %55 : vector<1x128x128xf32> to vector<128x128xf32>
    %cst_60 = arith.constant dense<0.000000e+00> : vector<128x8xf32>
    %57 = tpu.matmul %56, %54, %cst_60 {dimension_numbers = #tpu.dot_dimension_numbers<[1], [0], [0], [1], [0, 0, 1, 1], [], []>} : vector<128x128xf32>, vector<128x8xf32>, vector<128x8xf32> -> vector<128x8xf32>
    %c1_61 = arith.constant 1 : index
    %c0_62 = arith.constant 0 : index
    %c0_63 = arith.constant 0 : index
    %58 = vector.load %arg9[%c1_61, %c0_62, %c0_63] : memref<3x16x8xf32, #tpu.memory_space<vmem>>, vector<1x16x8xf32>
    %59 = vector.shape_cast %58 : vector<1x16x8xf32> to vector<16x8xf32>
    %cst_64 = arith.constant dense<0.000000e+00> : vector<128x8xf32>
    %60 = tpu.matmul %51, %59, %cst_64 {dimension_numbers = #tpu.dot_dimension_numbers<[1], [0], [0], [1], [0, 0, 1, 1], [], []>} : vector<128x16xf32>, vector<16x8xf32>, vector<128x8xf32> -> vector<128x8xf32>
    %c1_65 = arith.constant 1 : index
    %c0_66 = arith.constant 0 : index
    %c0_67 = arith.constant 0 : index
    %61 = vector.load %arg8[%c1_65, %c0_66, %c0_67] : memref<3x128x128xf32, #tpu.memory_space<vmem>>, vector<1x128x128xf32>
    %62 = vector.shape_cast %61 : vector<1x128x128xf32> to vector<128x128xf32>
    %cst_68 = arith.constant dense<0.000000e+00> : vector<128x8xf32>
    %63 = tpu.matmul %62, %60, %cst_68 {dimension_numbers = #tpu.dot_dimension_numbers<[1], [0], [0], [1], [0, 0, 1, 1], [], []>} : vector<128x128xf32>, vector<128x8xf32>, vector<128x8xf32> -> vector<128x8xf32>
    %64 = arith.addf %57, %63 : vector<128x8xf32>
    %c2_69 = arith.constant 2 : index
    %c0_70 = arith.constant 0 : index
    %c0_71 = arith.constant 0 : index
    %65 = vector.load %arg9[%c2_69, %c0_70, %c0_71] : memref<3x16x8xf32, #tpu.memory_space<vmem>>, vector<1x16x8xf32>
    %66 = vector.shape_cast %65 : vector<1x16x8xf32> to vector<16x8xf32>
    %cst_72 = arith.constant dense<0.000000e+00> : vector<128x8xf32>
    %67 = tpu.matmul %51, %66, %cst_72 {dimension_numbers = #tpu.dot_dimension_numbers<[1], [0], [0], [1], [0, 0, 1, 1], [], []>} : vector<128x16xf32>, vector<16x8xf32>, vector<128x8xf32> -> vector<128x8xf32>
    %c2_73 = arith.constant 2 : index
    %c0_74 = arith.constant 0 : index
    %c0_75 = arith.constant 0 : index
    %68 = vector.load %arg8[%c2_73, %c0_74, %c0_75] : memref<3x128x128xf32, #tpu.memory_space<vmem>>, vector<1x128x128xf32>
    %69 = vector.shape_cast %68 : vector<1x128x128xf32> to vector<128x128xf32>
    %cst_76 = arith.constant dense<0.000000e+00> : vector<128x8xf32>
    %70 = tpu.matmul %69, %67, %cst_76 {dimension_numbers = #tpu.dot_dimension_numbers<[1], [0], [0], [1], [0, 0, 1, 1], [], []>} : vector<128x128xf32>, vector<128x8xf32>, vector<128x8xf32> -> vector<128x8xf32>
    %71 = arith.addf %64, %70 : vector<128x8xf32>
    %c0_77 = arith.constant 0 : index
    %c0_78 = arith.constant 0 : index
    %72 = vector.load %arg10[%c0_77, %c0_78] : memref<128x1xf32, #tpu.memory_space<vmem>>, vector<128x1xf32>
    %73 = vector.broadcast %72 : vector<128x1xf32> to vector<128x8xf32>
    %74 = arith.addf %71, %73 : vector<128x8xf32>
    %cst_79 = arith.constant 0.000000e+00 : f32
    %75 = vector.broadcast %cst_79 : f32 to vector<128x8xf32>
    %76 = arith.maximumf %74, %75 : vector<128x8xf32>
    %c0_80 = arith.constant 0 : index
    %c0_81 = arith.constant 0 : index
    %c0_82 = arith.constant 0 : index
    %77 = vector.load %arg12[%c0_80, %c0_81, %c0_82] : memref<3x8x4xf32, #tpu.memory_space<vmem>>, vector<1x8x4xf32>
    %78 = vector.shape_cast %77 : vector<1x8x4xf32> to vector<8x4xf32>
    %cst_83 = arith.constant dense<0.000000e+00> : vector<128x4xf32>
    %79 = tpu.matmul %76, %78, %cst_83 {dimension_numbers = #tpu.dot_dimension_numbers<[1], [0], [0], [1], [0, 0, 1, 1], [], []>} : vector<128x8xf32>, vector<8x4xf32>, vector<128x4xf32> -> vector<128x4xf32>
    %c0_84 = arith.constant 0 : index
    %c0_85 = arith.constant 0 : index
    %c0_86 = arith.constant 0 : index
    %80 = vector.load %arg11[%c0_84, %c0_85, %c0_86] : memref<3x128x128xf32, #tpu.memory_space<vmem>>, vector<1x128x128xf32>
    %81 = vector.shape_cast %80 : vector<1x128x128xf32> to vector<128x128xf32>
    %cst_87 = arith.constant dense<0.000000e+00> : vector<128x4xf32>
    %82 = tpu.matmul %81, %79, %cst_87 {dimension_numbers = #tpu.dot_dimension_numbers<[1], [0], [0], [1], [0, 0, 1, 1], [], []>} : vector<128x128xf32>, vector<128x4xf32>, vector<128x4xf32> -> vector<128x4xf32>
    %c1_88 = arith.constant 1 : index
    %c0_89 = arith.constant 0 : index
    %c0_90 = arith.constant 0 : index
    %83 = vector.load %arg12[%c1_88, %c0_89, %c0_90] : memref<3x8x4xf32, #tpu.memory_space<vmem>>, vector<1x8x4xf32>
    %84 = vector.shape_cast %83 : vector<1x8x4xf32> to vector<8x4xf32>
    %cst_91 = arith.constant dense<0.000000e+00> : vector<128x4xf32>
    %85 = tpu.matmul %76, %84, %cst_91 {dimension_numbers = #tpu.dot_dimension_numbers<[1], [0], [0], [1], [0, 0, 1, 1], [], []>} : vector<128x8xf32>, vector<8x4xf32>, vector<128x4xf32> -> vector<128x4xf32>
    %c1_92 = arith.constant 1 : index
    %c0_93 = arith.constant 0 : index
    %c0_94 = arith.constant 0 : index
    %86 = vector.load %arg11[%c1_92, %c0_93, %c0_94] : memref<3x128x128xf32, #tpu.memory_space<vmem>>, vector<1x128x128xf32>
    %87 = vector.shape_cast %86 : vector<1x128x128xf32> to vector<128x128xf32>
    %cst_95 = arith.constant dense<0.000000e+00> : vector<128x4xf32>
    %88 = tpu.matmul %87, %85, %cst_95 {dimension_numbers = #tpu.dot_dimension_numbers<[1], [0], [0], [1], [0, 0, 1, 1], [], []>} : vector<128x128xf32>, vector<128x4xf32>, vector<128x4xf32> -> vector<128x4xf32>
    %89 = arith.addf %82, %88 : vector<128x4xf32>
    %c2_96 = arith.constant 2 : index
    %c0_97 = arith.constant 0 : index
    %c0_98 = arith.constant 0 : index
    %90 = vector.load %arg12[%c2_96, %c0_97, %c0_98] : memref<3x8x4xf32, #tpu.memory_space<vmem>>, vector<1x8x4xf32>
    %91 = vector.shape_cast %90 : vector<1x8x4xf32> to vector<8x4xf32>
    %cst_99 = arith.constant dense<0.000000e+00> : vector<128x4xf32>
    %92 = tpu.matmul %76, %91, %cst_99 {dimension_numbers = #tpu.dot_dimension_numbers<[1], [0], [0], [1], [0, 0, 1, 1], [], []>} : vector<128x8xf32>, vector<8x4xf32>, vector<128x4xf32> -> vector<128x4xf32>
    %c2_100 = arith.constant 2 : index
    %c0_101 = arith.constant 0 : index
    %c0_102 = arith.constant 0 : index
    %93 = vector.load %arg11[%c2_100, %c0_101, %c0_102] : memref<3x128x128xf32, #tpu.memory_space<vmem>>, vector<1x128x128xf32>
    %94 = vector.shape_cast %93 : vector<1x128x128xf32> to vector<128x128xf32>
    %cst_103 = arith.constant dense<0.000000e+00> : vector<128x4xf32>
    %95 = tpu.matmul %94, %92, %cst_103 {dimension_numbers = #tpu.dot_dimension_numbers<[1], [0], [0], [1], [0, 0, 1, 1], [], []>} : vector<128x128xf32>, vector<128x4xf32>, vector<128x4xf32> -> vector<128x4xf32>
    %96 = arith.addf %89, %95 : vector<128x4xf32>
    %c0_104 = arith.constant 0 : index
    %c0_105 = arith.constant 0 : index
    %97 = vector.load %arg13[%c0_104, %c0_105] : memref<128x1xf32, #tpu.memory_space<vmem>>, vector<128x1xf32>
    %98 = vector.broadcast %97 : vector<128x1xf32> to vector<128x4xf32>
    %99 = arith.addf %96, %98 : vector<128x4xf32>
    %cst_106 = arith.constant 0.000000e+00 : f32
    %100 = vector.broadcast %cst_106 : f32 to vector<128x4xf32>
    %101 = arith.maximumf %99, %100 : vector<128x4xf32>
    %c0_107 = arith.constant 0 : index
    %c0_108 = arith.constant 0 : index
    %c0_109 = arith.constant 0 : index
    %102 = vector.load %arg15[%c0_107, %c0_108, %c0_109] : memref<3x4x2xf32, #tpu.memory_space<vmem>>, vector<1x4x2xf32>
    %103 = vector.shape_cast %102 : vector<1x4x2xf32> to vector<4x2xf32>
    %cst_110 = arith.constant dense<0.000000e+00> : vector<128x2xf32>
    %104 = tpu.matmul %101, %103, %cst_110 {dimension_numbers = #tpu.dot_dimension_numbers<[1], [0], [0], [1], [0, 0, 1, 1], [], []>} : vector<128x4xf32>, vector<4x2xf32>, vector<128x2xf32> -> vector<128x2xf32>
    %c0_111 = arith.constant 0 : index
    %c0_112 = arith.constant 0 : index
    %c0_113 = arith.constant 0 : index
    %105 = vector.load %arg14[%c0_111, %c0_112, %c0_113] : memref<3x128x128xf32, #tpu.memory_space<vmem>>, vector<1x128x128xf32>
    %106 = vector.shape_cast %105 : vector<1x128x128xf32> to vector<128x128xf32>
    %cst_114 = arith.constant dense<0.000000e+00> : vector<128x2xf32>
    %107 = tpu.matmul %106, %104, %cst_114 {dimension_numbers = #tpu.dot_dimension_numbers<[1], [0], [0], [1], [0, 0, 1, 1], [], []>} : vector<128x128xf32>, vector<128x2xf32>, vector<128x2xf32> -> vector<128x2xf32>
    %c1_115 = arith.constant 1 : index
    %c0_116 = arith.constant 0 : index
    %c0_117 = arith.constant 0 : index
    %108 = vector.load %arg15[%c1_115, %c0_116, %c0_117] : memref<3x4x2xf32, #tpu.memory_space<vmem>>, vector<1x4x2xf32>
    %109 = vector.shape_cast %108 : vector<1x4x2xf32> to vector<4x2xf32>
    %cst_118 = arith.constant dense<0.000000e+00> : vector<128x2xf32>
    %110 = tpu.matmul %101, %109, %cst_118 {dimension_numbers = #tpu.dot_dimension_numbers<[1], [0], [0], [1], [0, 0, 1, 1], [], []>} : vector<128x4xf32>, vector<4x2xf32>, vector<128x2xf32> -> vector<128x2xf32>
    %c1_119 = arith.constant 1 : index
    %c0_120 = arith.constant 0 : index
    %c0_121 = arith.constant 0 : index
    %111 = vector.load %arg14[%c1_119, %c0_120, %c0_121] : memref<3x128x128xf32, #tpu.memory_space<vmem>>, vector<1x128x128xf32>
    %112 = vector.shape_cast %111 : vector<1x128x128xf32> to vector<128x128xf32>
    %cst_122 = arith.constant dense<0.000000e+00> : vector<128x2xf32>
    %113 = tpu.matmul %112, %110, %cst_122 {dimension_numbers = #tpu.dot_dimension_numbers<[1], [0], [0], [1], [0, 0, 1, 1], [], []>} : vector<128x128xf32>, vector<128x2xf32>, vector<128x2xf32> -> vector<128x2xf32>
    %114 = arith.addf %107, %113 : vector<128x2xf32>
    %c2_123 = arith.constant 2 : index
    %c0_124 = arith.constant 0 : index
    %c0_125 = arith.constant 0 : index
    %115 = vector.load %arg15[%c2_123, %c0_124, %c0_125] : memref<3x4x2xf32, #tpu.memory_space<vmem>>, vector<1x4x2xf32>
    %116 = vector.shape_cast %115 : vector<1x4x2xf32> to vector<4x2xf32>
    %cst_126 = arith.constant dense<0.000000e+00> : vector<128x2xf32>
    %117 = tpu.matmul %101, %116, %cst_126 {dimension_numbers = #tpu.dot_dimension_numbers<[1], [0], [0], [1], [0, 0, 1, 1], [], []>} : vector<128x4xf32>, vector<4x2xf32>, vector<128x2xf32> -> vector<128x2xf32>
    %c2_127 = arith.constant 2 : index
    %c0_128 = arith.constant 0 : index
    %c0_129 = arith.constant 0 : index
    %118 = vector.load %arg14[%c2_127, %c0_128, %c0_129] : memref<3x128x128xf32, #tpu.memory_space<vmem>>, vector<1x128x128xf32>
    %119 = vector.shape_cast %118 : vector<1x128x128xf32> to vector<128x128xf32>
    %cst_130 = arith.constant dense<0.000000e+00> : vector<128x2xf32>
    %120 = tpu.matmul %119, %117, %cst_130 {dimension_numbers = #tpu.dot_dimension_numbers<[1], [0], [0], [1], [0, 0, 1, 1], [], []>} : vector<128x128xf32>, vector<128x2xf32>, vector<128x2xf32> -> vector<128x2xf32>
    %121 = arith.addf %114, %120 : vector<128x2xf32>
    %c0_131 = arith.constant 0 : index
    %c0_132 = arith.constant 0 : index
    %122 = vector.load %arg16[%c0_131, %c0_132] : memref<128x1xf32, #tpu.memory_space<vmem>>, vector<128x1xf32>
    %123 = vector.broadcast %122 : vector<128x1xf32> to vector<128x2xf32>
    %124 = arith.addf %121, %123 : vector<128x2xf32>
    %cst_133 = arith.constant 0.000000e+00 : f32
    %125 = vector.broadcast %cst_133 : f32 to vector<128x2xf32>
    %126 = arith.maximumf %124, %125 : vector<128x2xf32>
    %c0_134 = arith.constant 0 : index
    %c0_135 = arith.constant 0 : index
    %c0_136 = arith.constant 0 : index
    %127 = vector.load %arg18[%c0_134, %c0_135, %c0_136] : memref<2x2x1xf32, #tpu.memory_space<vmem>>, vector<1x2x1xf32>
    %128 = vector.shape_cast %127 : vector<1x2x1xf32> to vector<2x1xf32>
    %cst_137 = arith.constant dense<0.000000e+00> : vector<128x1xf32>
    %129 = tpu.matmul %126, %128, %cst_137 {dimension_numbers = #tpu.dot_dimension_numbers<[1], [0], [0], [1], [0, 0, 1, 1], [], []>} : vector<128x2xf32>, vector<2x1xf32>, vector<128x1xf32> -> vector<128x1xf32>
    %c0_138 = arith.constant 0 : index
    %c0_139 = arith.constant 0 : index
    %c0_140 = arith.constant 0 : index
    %130 = vector.load %arg17[%c0_138, %c0_139, %c0_140] : memref<2x128x128xf32, #tpu.memory_space<vmem>>, vector<1x128x128xf32>
    %131 = vector.shape_cast %130 : vector<1x128x128xf32> to vector<128x128xf32>
    %cst_141 = arith.constant dense<0.000000e+00> : vector<128x1xf32>
    %132 = tpu.matmul %131, %129, %cst_141 {dimension_numbers = #tpu.dot_dimension_numbers<[1], [0], [0], [1], [0, 0, 1, 1], [], []>} : vector<128x128xf32>, vector<128x1xf32>, vector<128x1xf32> -> vector<128x1xf32>
    %c1_142 = arith.constant 1 : index
    %c0_143 = arith.constant 0 : index
    %c0_144 = arith.constant 0 : index
    %133 = vector.load %arg18[%c1_142, %c0_143, %c0_144] : memref<2x2x1xf32, #tpu.memory_space<vmem>>, vector<1x2x1xf32>
    %134 = vector.shape_cast %133 : vector<1x2x1xf32> to vector<2x1xf32>
    %cst_145 = arith.constant dense<0.000000e+00> : vector<128x1xf32>
    %135 = tpu.matmul %126, %134, %cst_145 {dimension_numbers = #tpu.dot_dimension_numbers<[1], [0], [0], [1], [0, 0, 1, 1], [], []>} : vector<128x2xf32>, vector<2x1xf32>, vector<128x1xf32> -> vector<128x1xf32>
    %c1_146 = arith.constant 1 : index
    %c0_147 = arith.constant 0 : index
    %c0_148 = arith.constant 0 : index
    %136 = vector.load %arg17[%c1_146, %c0_147, %c0_148] : memref<2x128x128xf32, #tpu.memory_space<vmem>>, vector<1x128x128xf32>
    %137 = vector.shape_cast %136 : vector<1x128x128xf32> to vector<128x128xf32>
    %cst_149 = arith.constant dense<0.000000e+00> : vector<128x1xf32>
    %138 = tpu.matmul %137, %135, %cst_149 {dimension_numbers = #tpu.dot_dimension_numbers<[1], [0], [0], [1], [0, 0, 1, 1], [], []>} : vector<128x128xf32>, vector<128x1xf32>, vector<128x1xf32> -> vector<128x1xf32>
    %139 = arith.addf %132, %138 : vector<128x1xf32>
    %c0_150 = arith.constant 0 : index
    %c0_151 = arith.constant 0 : index
    %140 = vector.load %arg19[%c0_150, %c0_151] : memref<128x1xf32, #tpu.memory_space<vmem>>, vector<128x1xf32>
    %141 = arith.addf %139, %140 : vector<128x1xf32>
    %cst_152 = arith.constant 0.000000e+00 : f32
    %142 = vector.broadcast %cst_152 : f32 to vector<128x1xf32>
    %143 = arith.maximumf %141, %142 : vector<128x1xf32>
    %c0_153 = arith.constant 0 : index
    %c0_154 = arith.constant 0 : index
    %144 = vector.load %arg20[%c0_153, %c0_154] : memref<64x128xf32, #tpu.memory_space<vmem>>, vector<64x128xf32>
    %cst_155 = arith.constant dense<0.000000e+00> : vector<64x1xf32>
    %145 = tpu.matmul %144, %143, %cst_155 {dimension_numbers = #tpu.dot_dimension_numbers<[1], [0], [0], [1], [0, 0, 1, 1], [], []>} : vector<64x128xf32>, vector<128x1xf32>, vector<64x1xf32> -> vector<64x1xf32>
    %c0_156 = arith.constant 0 : index
    %c0_157 = arith.constant 0 : index
    %146 = vector.load %arg21[%c0_156, %c0_157] : memref<64x1xf32, #tpu.memory_space<vmem>>, vector<64x1xf32>
    %147 = arith.addf %145, %146 : vector<64x1xf32>
    %c0_158 = arith.constant 0 : index
    %c0_159 = arith.constant 0 : index
    %148 = vector.load %arg22[%c0_158, %c0_159] : memref<32x64xf32, #tpu.memory_space<vmem>>, vector<32x64xf32>
    %cst_160 = arith.constant dense<0.000000e+00> : vector<32x1xf32>
    %149 = tpu.matmul %148, %147, %cst_160 {dimension_numbers = #tpu.dot_dimension_numbers<[1], [0], [0], [1], [0, 0, 1, 1], [], []>} : vector<32x64xf32>, vector<64x1xf32>, vector<32x1xf32> -> vector<32x1xf32>
    %c0_161 = arith.constant 0 : index
    %c0_162 = arith.constant 0 : index
    %150 = vector.load %arg23[%c0_161, %c0_162] : memref<32x1xf32, #tpu.memory_space<vmem>>, vector<32x1xf32>
    %151 = arith.addf %149, %150 : vector<32x1xf32>
    %cst_163 = arith.constant 0.000000e+00 : f32
    %152 = vector.broadcast %cst_163 : f32 to vector<32x1xf32>
    %153 = arith.maximumf %151, %152 : vector<32x1xf32>
    %c0_164 = arith.constant 0 : index
    %c0_165 = arith.constant 0 : index
    %154 = vector.load %arg24[%c0_164, %c0_165] : memref<1x32xf32, #tpu.memory_space<vmem>>, vector<1x32xf32>
    %cst_166 = arith.constant dense<0.000000e+00> : vector<1x1xf32>
    %155 = tpu.matmul %154, %153, %cst_166 {dimension_numbers = #tpu.dot_dimension_numbers<[1], [0], [0], [1], [0, 0, 1, 1], [], []>} : vector<1x32xf32>, vector<32x1xf32>, vector<1x1xf32> -> vector<1x1xf32>
    %c0_167 = arith.constant 0 : index
    %c0_168 = arith.constant 0 : index
    %156 = vector.load %arg25[%c0_167, %c0_168] : memref<1x1xf32, #tpu.memory_space<vmem>>, vector<1x1xf32>
    %157 = arith.addf %155, %156 : vector<1x1xf32>
    %cst_169 = arith.constant 0.000000e+00 : f32
    %158 = vector.broadcast %cst_169 : f32 to vector<1x1xf32>
    %159 = arith.maximumf %157, %158 : vector<1x1xf32>
    %160 = vector.shape_cast %153 : vector<32x1xf32> to vector<1x32x1xf32>
    %c0_170 = arith.constant 0 : index
    %c0_171 = arith.constant 0 : index
    %c0_172 = arith.constant 0 : index
    %161 = vector.load %arg26[%c0_170, %c0_171, %c0_172] : memref<1x32x1xf32, #tpu.memory_space<vmem>>, vector<1x32x1xf32>
    tpu.vector_store %arg26[%c0_170, %c0_171, %c0_172], %160 {strides = array<i32>} : memref<1x32x1xf32, #tpu.memory_space<vmem>>, vector<1x32x1xf32>,
    %162 = vector.shape_cast %159 : vector<1x1xf32> to vector<1x1x1xf32>
    %c0_173 = arith.constant 0 : index
    %c0_174 = arith.constant 0 : index
    %c0_175 = arith.constant 0 : index
    %163 = vector.load %arg27[%c0_173, %c0_174, %c0_175] : memref<1x1x1xf32, #tpu.memory_space<vmem>>, vector<1x1x1xf32>
    tpu.vector_store %arg27[%c0_173, %c0_174, %c0_175], %162 {strides = array<i32>} : memref<1x1x1xf32, #tpu.memory_space<vmem>>, vector<1x1x1xf32>,
    return
  }
  func.func @transform_0(%arg0: i32) -> (i32, i32, i32) {
    %c0_i32 = arith.constant 0 : i32
    %c0_i32_0 = arith.constant 0 : i32
    %c0_i32_1 = arith.constant 0 : i32
    return %arg0, %c0_i32, %c0_i32_0 : i32, i32, i32
  }
  func.func @transform_1(%arg0: i32) -> (i32, i32, i32) {
    %c0_i32 = arith.constant 0 : i32
    %c0_i32_0 = arith.constant 0 : i32
    %c0_i32_1 = arith.constant 0 : i32
    %c0_i32_2 = arith.constant 0 : i32
    return %c0_i32, %c0_i32_0, %c0_i32_1 : i32, i32, i32
  }
  func.func @transform_2(%arg0: i32) -> (i32, i32, i32) {
    %c0_i32 = arith.constant 0 : i32
    %c0_i32_0 = arith.constant 0 : i32
    %c0_i32_1 = arith.constant 0 : i32
    %c0_i32_2 = arith.constant 0 : i32
    return %c0_i32, %c0_i32_0, %c0_i32_1 : i32, i32, i32
  }
  func.func @transform_3(%arg0: i32) -> (i32, i32) {
    %c0_i32 = arith.constant 0 : i32
    %c0_i32_0 = arith.constant 0 : i32
    %c0_i32_1 = arith.constant 0 : i32
    return %c0_i32, %c0_i32_0 : i32, i32
  }
  func.func @transform_4(%arg0: i32) -> (i32, i32, i32) {
    %c0_i32 = arith.constant 0 : i32
    %c0_i32_0 = arith.constant 0 : i32
    %c0_i32_1 = arith.constant 0 : i32
    %c0_i32_2 = arith.constant 0 : i32
    return %c0_i32, %c0_i32_0, %c0_i32_1 : i32, i32, i32
  }
  func.func @transform_5(%arg0: i32) -> (i32, i32, i32) {
    %c0_i32 = arith.constant 0 : i32
    %c0_i32_0 = arith.constant 0 : i32
    %c0_i32_1 = arith.constant 0 : i32
    %c0_i32_2 = arith.constant 0 : i32
    return %c0_i32, %c0_i32_0, %c0_i32_1 : i32, i32, i32
  }
  func.func @transform_6(%arg0: i32) -> (i32, i32) {
    %c0_i32 = arith.constant 0 : i32
    %c0_i32_0 = arith.constant 0 : i32
    %c0_i32_1 = arith.constant 0 : i32
    return %c0_i32, %c0_i32_0 : i32, i32
  }
  func.func @transform_7(%arg0: i32) -> (i32, i32, i32) {
    %c0_i32 = arith.constant 0 : i32
    %c0_i32_0 = arith.constant 0 : i32
    %c0_i32_1 = arith.constant 0 : i32
    %c0_i32_2 = arith.constant 0 : i32
    return %c0_i32, %c0_i32_0, %c0_i32_1 : i32, i32, i32
  }
  func.func @transform_8(%arg0: i32) -> (i32, i32, i32) {
    %c0_i32 = arith.constant 0 : i32
    %c0_i32_0 = arith.constant 0 : i32
    %c0_i32_1 = arith.constant 0 : i32
    %c0_i32_2 = arith.constant 0 : i32
    return %c0_i32, %c0_i32_0, %c0_i32_1 : i32, i32, i32
  }
  func.func @transform_9(%arg0: i32) -> (i32, i32) {
    %c0_i32 = arith.constant 0 : i32
    %c0_i32_0 = arith.constant 0 : i32
    %c0_i32_1 = arith.constant 0 : i32
    return %c0_i32, %c0_i32_0 : i32, i32
  }
  func.func @transform_10(%arg0: i32) -> (i32, i32, i32) {
    %c0_i32 = arith.constant 0 : i32
    %c0_i32_0 = arith.constant 0 : i32
    %c0_i32_1 = arith.constant 0 : i32
    %c0_i32_2 = arith.constant 0 : i32
    return %c0_i32, %c0_i32_0, %c0_i32_1 : i32, i32, i32
  }
  func.func @transform_11(%arg0: i32) -> (i32, i32, i32) {
    %c0_i32 = arith.constant 0 : i32
    %c0_i32_0 = arith.constant 0 : i32
    %c0_i32_1 = arith.constant 0 : i32
    %c0_i32_2 = arith.constant 0 : i32
    return %c0_i32, %c0_i32_0, %c0_i32_1 : i32, i32, i32
  }
  func.func @transform_12(%arg0: i32) -> (i32, i32) {
    %c0_i32 = arith.constant 0 : i32
    %c0_i32_0 = arith.constant 0 : i32
    %c0_i32_1 = arith.constant 0 : i32
    return %c0_i32, %c0_i32_0 : i32, i32
  }
  func.func @transform_13(%arg0: i32) -> (i32, i32, i32) {
    %c0_i32 = arith.constant 0 : i32
    %c0_i32_0 = arith.constant 0 : i32
    %c0_i32_1 = arith.constant 0 : i32
    %c0_i32_2 = arith.constant 0 : i32
    return %c0_i32, %c0_i32_0, %c0_i32_1 : i32, i32, i32
  }
  func.func @transform_14(%arg0: i32) -> (i32, i32, i32) {
    %c0_i32 = arith.constant 0 : i32
    %c0_i32_0 = arith.constant 0 : i32
    %c0_i32_1 = arith.constant 0 : i32
    %c0_i32_2 = arith.constant 0 : i32
    return %c0_i32, %c0_i32_0, %c0_i32_1 : i32, i32, i32
  }
  func.func @transform_15(%arg0: i32) -> (i32, i32) {
    %c0_i32 = arith.constant 0 : i32
    %c0_i32_0 = arith.constant 0 : i32
    %c0_i32_1 = arith.constant 0 : i32
    return %c0_i32, %c0_i32_0 : i32, i32
  }
  func.func @transform_16(%arg0: i32) -> (i32, i32, i32) {
    %c0_i32 = arith.constant 0 : i32
    %c0_i32_0 = arith.constant 0 : i32
    %c0_i32_1 = arith.constant 0 : i32
    %c0_i32_2 = arith.constant 0 : i32
    return %c0_i32, %c0_i32_0, %c0_i32_1 : i32, i32, i32
  }
  func.func @transform_17(%arg0: i32) -> (i32, i32, i32) {
    %c0_i32 = arith.constant 0 : i32
    %c0_i32_0 = arith.constant 0 : i32
    %c0_i32_1 = arith.constant 0 : i32
    %c0_i32_2 = arith.constant 0 : i32
    return %c0_i32, %c0_i32_0, %c0_i32_1 : i32, i32, i32
  }
  func.func @transform_18(%arg0: i32) -> (i32, i32) {
    %c0_i32 = arith.constant 0 : i32
    %c0_i32_0 = arith.constant 0 : i32
    %c0_i32_1 = arith.constant 0 : i32
    return %c0_i32, %c0_i32_0 : i32, i32
  }
  func.func @transform_19(%arg0: i32) -> (i32, i32) {
    %c0_i32 = arith.constant 0 : i32
    %c0_i32_0 = arith.constant 0 : i32
    %c0_i32_1 = arith.constant 0 : i32
    return %c0_i32, %c0_i32_0 : i32, i32
  }
  func.func @transform_20(%arg0: i32) -> (i32, i32) {
    %c0_i32 = arith.constant 0 : i32
    %c0_i32_0 = arith.constant 0 : i32
    %c0_i32_1 = arith.constant 0 : i32
    return %c0_i32, %c0_i32_0 : i32, i32
  }
  func.func @transform_21(%arg0: i32) -> (i32, i32) {
    %c0_i32 = arith.constant 0 : i32
    %c0_i32_0 = arith.constant 0 : i32
    %c0_i32_1 = arith.constant 0 : i32
    return %c0_i32, %c0_i32_0 : i32, i32
  }
  func.func @transform_22(%arg0: i32) -> (i32, i32) {
    %c0_i32 = arith.constant 0 : i32
    %c0_i32_0 = arith.constant 0 : i32
    %c0_i32_1 = arith.constant 0 : i32
    return %c0_i32, %c0_i32_0 : i32, i32
  }
  func.func @transform_23(%arg0: i32) -> (i32, i32) {
    %c0_i32 = arith.constant 0 : i32
    %c0_i32_0 = arith.constant 0 : i32
    %c0_i32_1 = arith.constant 0 : i32
    return %c0_i32, %c0_i32_0 : i32, i32
  }
  func.func @transform_24(%arg0: i32) -> (i32, i32) {
    %c0_i32 = arith.constant 0 : i32
    %c0_i32_0 = arith.constant 0 : i32
    %c0_i32_1 = arith.constant 0 : i32
    return %c0_i32, %c0_i32_0 : i32, i32
  }
  func.func @transform_25(%arg0: i32) -> (i32, i32, i32) {
    %c0_i32 = arith.constant 0 : i32
    %c0_i32_0 = arith.constant 0 : i32
    %c0_i32_1 = arith.constant 0 : i32
    return %arg0, %c0_i32, %c0_i32_0 : i32, i32, i32
  }
  func.func @transform_26(%arg0: i32) -> (i32, i32, i32) {
    %c0_i32 = arith.constant 0 : i32
    %c0_i32_0 = arith.constant 0 : i32
    %c0_i32_1 = arith.constant 0 : i32
    return %arg0, %c0_i32, %c0_i32_0 : i32, i32, i32
  }
}

</mosaic_0001>

<bundles_post_ra>
// kernel: cnn_base_forward.1
= control target key start
LH: loop header
LB: loop body
LE: loop exit
PB: predicated region body
PF: predicated region fallthrough
CT: control target
= control target key end

     0   :  { %s13785_s0 = inlined_call_operand.vmem [shape: f32[2,64,64], index: 0, kind: input, shape index: {}]   ;;  %s13786_s1 = inlined_call_operand.vmem [shape: f32[3,128,64], index: 1, kind: input, shape index: {}]   ;;  %s13787_s2 = inlined_call_operand.vmem [shape: f32[3,64,32], index: 2, kind: input, shape index: {}]   ;;  %s13788_s3 = inlined_call_operand.vmem [shape: f32[128,1], index: 3, kind: input, shape index: {}]   ;;  %s13789_s4 = inlined_call_operand.vmem [shape: f32[3,128,128], index: 4, kind: input, shape index: {}]   ;;  %s13790_s5 = inlined_call_operand.vmem [shape: f32[3,32,16], index: 5, kind: input, shape index: {}]   ;;  %s13791_s6 = inlined_call_operand.vmem [shape: f32[128,1], index: 6, kind: input, shape index: {}]   ;;  %s13792_s7 = inlined_call_operand.vmem [shape: f32[3,128,128], index: 7, kind: input, shape index: {}]   ;;  %s13793_s8 = inlined_call_operand.vmem [shape: f32[3,16,8], index: 8, kind: input, shape index: {}]   ;;  %s13794_s9 = inlined_call_operand.vmem [shape: f32[128,1], index: 9, kind: input, shape index: {}]   ;;  %s13795_s10 = inlined_call_operand.vmem [shape: f32[3,128,128], index: 10, kind: input, shape index: {}]   ;;  %s13796_s11 = inlined_call_operand.vmem [shape: f32[3,8,4], index: 11, kind: input, shape index: {}]   ;;  %s13797_s12 = inlined_call_operand.vmem [shape: f32[128,1], index: 12, kind: input, shape index: {}]   ;;  %s13798_s13 = inlined_call_operand.vmem [shape: f32[3,128,128], index: 13, kind: input, shape index: {}]   ;;  %s13799_s14 = inlined_call_operand.vmem [shape: f32[3,4,2], index: 14, kind: input, shape index: {}]   ;;  %s13800_s15 = inlined_call_operand.vmem [shape: f32[128,1], index: 15, kind: input, shape index: {}]   ;;  %s13801_s16 = inlined_call_operand.vmem [shape: f32[2,128,128], index: 16, kind: input, shape index: {}]   ;;  %s13802_s17 = inlined_call_operand.vmem [shape: f32[2,2,1], index: 17, kind: input, shape index: {}]   ;;  %s13803_s18 = inlined_call_operand.vmem [shape: f32[128,1], index: 18, kind: input, shape index: {}]   ;;  %s13804_s19 = inlined_call_operand.hbm [shape: f32[64,128], index: 19, kind: input, shape index: {}]   ;;  %s13805_s20 = inlined_call_operand.vmem [shape: f32[64,1], index: 20, kind: input, shape index: {}]   ;;  %s13806_s21 = inlined_call_operand.hbm [shape: f32[32,64], index: 21, kind: input, shape index: {}]   ;;  %s13807_s22 = inlined_call_operand.vmem [shape: f32[32,1], index: 22, kind: input, shape index: {}]   ;;  %s13808_s23 = inlined_call_operand.hbm [shape: f32[1,32], index: 23, kind: input, shape index: {}]   ;;  %s13809_s24 = inlined_call_operand.<no memory space> [shape: f32[1,1], index: 24, kind: input, shape index: {}]   ;;  %s13810_s25 = inlined_call_operand.vmem [shape: f32[2,32,1], index: 25, kind: output, shape index: {0}]   ;;  %s13811_s26 = inlined_call_operand.vmem [shape: f32[2,1,1], index: 26, kind: output, shape index: {1}]  }
   0x1   :  { %13829 = sst [smem:[#allocation11_spill]] %s13785_s0  ;;  %v32_v0 = vstv %s13809_s24 }
   0x2   :  { %13830 = sst [smem:[#allocation12_spill]] %s13786_s1  ;;  %33 = vst [vmem:[#allocation2] sm:$0x1] %v32_v0 }
   0x3   :  { %13831 = sst [smem:[#allocation13_spill]] %s13787_s2 }
   0x4   :  { %13832 = sst [smem:[#allocation14_spill]] %s13788_s3 }
   0x5   :  { %13833 = sst [smem:[#allocation15_spill]] %s13789_s4 }
   0x6   :  { %13834 = sst [smem:[#allocation16_spill]] %s13790_s5 }
   0x7   :  { %13835 = sst [smem:[#allocation17_spill]] %s13791_s6 }
   0x8   :  { %13836 = sst [smem:[#allocation18_spill]] %s13792_s7 }
   0x9   :  { %13837 = sst [smem:[#allocation19_spill]] %s13793_s8 }
   0xa   :  { %13838 = sst [smem:[#allocation20_spill]] %s13794_s9 }
   0xb   :  { %13839 = sst [smem:[#allocation21_spill]] %s13795_s10 }
   0xc   :  { %13840 = sst [smem:[#allocation22_spill]] %s13810_s25 }
   0xd   :  { %13841 = sst [smem:[#allocation23_spill]] %s13811_s26 }
   0xe   :  { %34 = vsyncpa [#allocation4], 0 }
   0xf   :  { %35 = vsyncpa [#allocation6], 0  ;;  %s11584_s7 = smov 0  }
  0x10 LB: > { %13842 = sst [smem:[#allocation10_spill]] %s11435_s7  ;;  %s11590_s28 = sadd.s32 4294967295, %s11435_s7   ;;  %s11435_s7 = sphi %s11584_s7, %s41_s7  }
  0x11   : > { %p7632_p0 = scmp.ge.s32.totalorder %s11435_s7, 1  ;;  %p628_p1 = scmp.lt.s32.totalorder %s11435_s7, 3 }
  0x12   : > { %p13822_p2 = scmp.eq.s32.totalorder %s11590_s28, 0  ;;  %s11437_s8 = smov [#allocation5]  }
  0x13   : > { %p11595_p3 = pnand %p7632_p0, %p628_p1  ;;  %s710_s4 = sshll.u32 %s11437_s8, 4  ;;  %s711_s4 = int_to_ptr.vmem [resolvable:$true] %s710_s4 }
  0x14   : > { %s11438_s29 = smov [#allocation3]   ;;  %s11439_s30 = smov [#allocation7]  }
  0x15   : > { %s13843_s24 = scalar_select %p11595_p3, 1, 0 }
  0x16   : > { %p11302_p4 = pneg %p11595_p3  ;;  %s694_s0 = sshll.u32 %s11438_s29, 4  ;;  %s11607_s0 = int_to_ptr.vmem [resolvable:$true] %s694_s0 }
  0x17   : > { %s727_s2 = sshll.u32 %s11439_s30, 4  ;;  %s11337_s6 = scalar_lea.hbm %s13806_s21, 512  ;;  %s11609_s2 = int_to_ptr.vmem [resolvable:$true] %s727_s2 }
  0x18   : > { %p11603_p5 = pnand %p13822_p2, %p11302_p4  ;;  %p11338_p6 = scmp.ne.s32.totalorder %s13806_s21, %s11337_s6 }
  0x19   : > { %p11344_p10 = scmp.lt.u32.totalorder %s11337_s6, %s13806_s21 }
  0x1a   : > { %p11619_p7 = pneg %p11603_p5 }
  0x1c   : > { %p11340_p8 = pnand %p11619_p7, %p11338_p6 }
  0x1e   : > { %p11341_p9 = pneg %p11340_p8 }
  0x20   : > { %p11346_p11 = pnand %p11344_p10, %p11341_p9 }
  0x22   : > { %11349 = shalt.err (!%p11346_p11)
}
  0x23   : > { %s11350_s30 = scalar_lea.vmem %s711_s4, 512  ;;  %p11358_p1 = scmp.lt.s32.totalorder %s711_s4, %s711_s4 }
  0x24   : > { %p11351_p12 = scmp.ne.s32.totalorder %s711_s4, %s11350_s30  ;;  %p11359_p4 = scmp.lt.s32.totalorder %s11350_s30, %s11350_s30 }
  0x26   : > { %p11353_p13 = pnand %p11351_p12, %p11619_p7  ;;  %p11360_p2 = por %p11359_p4, %p11358_p1 }
  0x28   : > { %p11354_p0 = pneg %p11353_p13 }
  0x2a   : > { %p11361_p3 = pnand %p11360_p2, %p11354_p0 }
  0x2c   : > { %11364 = shalt.err (!%p11361_p3)
}
  0x2d   : > { %s11440_s5 = smov 128   ;;  %s11441_s10 = smov 8  }
  0x2e   : > { %11308 = dma.hbm_to_vmem [thread:$0]  (!%p11603_p5), %s13806_s21, 512, %s711_s4, [#allocation6], %s11440_s5, %s11440_s5, %s11441_s10  }
  0x2f   : > { %s11365_s29 = scalar_lea.hbm %s13804_s19, 1024 }
  0x30   : > { %p11366_p6 = scmp.ne.s32.totalorder %s13804_s19, %s11365_s29  ;;  %p11372_p8 = scmp.lt.u32.totalorder %s11365_s29, %s13804_s19 }
  0x32   : > { %p11368_p2 = pnand %p11366_p6, %p11619_p7 }
  0x34   : > { %p11369_p3 = pneg %p11368_p2 }
  0x36   : > { %p11374_p9 = pnand %p11372_p8, %p11369_p3 }
  0x38   : > { %11377 = shalt.err (!%p11374_p9)
}
  0x39   : > { %s11378_s4 = scalar_lea.vmem %s11607_s0, 1024  ;;  %p11386_p13 = scmp.lt.s32.totalorder %s11607_s0, %s11607_s0 }
  0x3a   : > { %p11379_p10 = scmp.ne.s32.totalorder %s11607_s0, %s11378_s4  ;;  %p11387_p0 = scmp.lt.s32.totalorder %s11378_s4, %s11378_s4 }
  0x3c   : > { %p11381_p11 = pnand %p11379_p10, %p11619_p7  ;;  %p11388_p1 = por %p11387_p0, %p11386_p13 }
  0x3e   : > { %p11382_p12 = pneg %p11381_p11 }
  0x40   : > { %p11389_p4 = pnand %p11388_p1, %p11382_p12 }
  0x42   : > { %11392 = shalt.err (!%p11389_p4)
}
  0x43   : > { %11305 = dma.hbm_to_vmem [thread:$0]  (!%p11603_p5), %s13804_s19, 1024, %s11607_s0, [#allocation4], %s11440_s5, %s11440_s5, %s11441_s10  }
  0x44   : > { %s11393_s6 = scalar_lea.hbm %s13808_s23, 16 }
  0x45   : > { %p11394_p6 = scmp.ne.s32.totalorder %s13808_s23, %s11393_s6  ;;  %p11400_p8 = scmp.lt.u32.totalorder %s11393_s6, %s13808_s23 }
  0x47   : > { %p11396_p2 = pnand %p11394_p6, %p11619_p7 }
  0x49   : > { %p11397_p3 = pneg %p11396_p2 }
  0x4b   : > { %p11402_p9 = pnand %p11400_p8, %p11397_p3 }
  0x4d   : > { %11405 = shalt.err (!%p11402_p9)
}
  0x4e   : > { %s11406_s0 = scalar_lea.vmem %s11609_s2, 16  ;;  %s11413_s5 = scalar_lea.vmem %s11609_s2, 32 }
  0x4f   : > { %p11407_p10 = scmp.ne.s32.totalorder %s11609_s2, %s11406_s0  ;;  %p11414_p13 = scmp.lt.s32.totalorder %s11609_s2, %s11609_s2 }
  0x50   : > { %p11415_p0 = scmp.lt.s32.totalorder %s11413_s5, %s11406_s0 }
  0x51   : > { %p11409_p11 = pnand %p11407_p10, %p11619_p7 }
  0x52   : > { %p11416_p1 = por %p11415_p0, %p11414_p13 }
  0x53   : > { %p11410_p12 = pneg %p11409_p11 }
  0x55   : > { %p11417_p4 = pnand %p11416_p1, %p11410_p12 }
  0x57   : > { %11420 = shalt.err (!%p11417_p4)
}
  0x58   : > { %11311 = dma.hbm_to_vmem [thread:$0]  (!%p11603_p5), %s13808_s23, 16, %s11609_s2, [#allocation6]  }
  0x59   : > { %p13846_p6 = scmp.ne.s32.totalorder %s13843_s24, 0 }
  0x5a   : > { %p13847_p7 = scmp.eq.s32.totalorder (!%p13846_p6), %s11590_s28, 0 }
  0x5b   : > { %751 = sbr.rel (%p13846_p6) target bundleno = 4123 (0x101b), region = 120 }
  0x62   : > { %11426 = dma.done.wait (%p13847_p7), [#allocation4], 1024   ;;  %p13848_p2 = pmov %p13847_p7 }
  0x64   : > { %11428 = vsyncadd (%p13848_p2), [#allocation4], 4294966272  ;;  %p13849_p3 = pmov %p13848_p2 }
  0x65   : > { %p13850_p8 = pmov %p13848_p2 }
  0x66   : > { %11430 = dma.done.wait (%p13849_p3), [#allocation6], 528  }
  0x67   : > { %11432 = vsyncadd (%p13850_p8), [#allocation6], 4294966768  ;;  %p832_p9 = scmp.lt.s32.totalorder %s11590_s28, 1  ;;  %s13851_s3 = sld [smem:[#allocation13_spill]]  ;;  %vm861_vm0 = vcmask 523264   ;;  %v11442_v45 = vmov 0  }
  0x68   : > { %s13852_s8 = sld [smem:[#allocation11_spill]]  ;;  %11335 = vset.pattern.permute.xlu0 %v11442_v45  ;;  %s13853_s27 = sld [smem:[#allocation14_spill]]  ;;  %11336 = vset.pattern.permute.xlu1 %v11442_v45  ;;  %v5240_v45 = vld [vmem:[%s13797_s12 + $0x50] sm:$0xff]  ;;  %vm1996_vm1 = vcmask 261120   ;;  %vm3121_vm2 = vcmask 130048   ;;  %vm4241_vm3 = vcmask 64512  }
  0x69   : > { %s13866_s28 = smov (!%p832_p9, %s11590_s28), 1  ;;  %s13854_s0 = sld [smem:[#allocation12_spill]]  ;;  %vm5408_vm4 = vcmask 1043456   ;;  %vm5359_vm5 = vcmask 31744   ;;  %vm6536_vm6 = vcmask 1041408   ;;  %vm6487_vm7 = vcmask 15360  }
  0x6a   : > { %s8162_s24 = sshll.u32 %s13866_s28, 6  ;;  %s13855_s2 = sld [smem:[#allocation17_spill]]  ;;  %vm11444_vm8 = vmmov 0   ;;  %vm7512_vm9 = vcmask 7168   ;;  %vm7517_vm10 = vcmask 0  }
  0x6b   : > { %s13856_s6 = sld [smem:[#allocation20_spill]]  ;;  %s13857_s5 = sld [smem:[#allocation16_spill]] }
  0x6c   : > { %s13858_s26 = sld [smem:[#allocation15_spill]]  ;;  %s13860_s4 = sld [smem:[#allocation18_spill]] }
  0x6d   : > { %v7653_v1 = vld [vmem:[%s13851_s3 + $0x40] sm:$0xff]  ;;  %v7654_v2 = vld [vmem:[%s13851_s3 + $0x48] sm:$0xff]  ;;  %v7655_v3 = vld [vmem:[%s13851_s3 + $0x50] sm:$0xff]  ;;  %s13861_s9 = sld [smem:[#allocation21_spill]]  ;;  %s13862_s30 = sld [smem:[#allocation22_spill]] }
  0x6e   : > { %s11709_s29 = scalar_lea.vmem %s13852_s8, %s8162_s24  ;;  %v10492_v4 = vpack.c.bf16 %v7654_v2, %v7653_v1  ;;  %v7656_v5 = vld [vmem:[%s13851_s3 + $0x58] sm:$0xff]  ;;  %v7657_v7 = vld [vmem:[%s13851_s3 + $0x60] sm:$0xff]  ;;  %v7658_v8 = vld [vmem:[%s13851_s3 + $0x68] sm:$0xff]  ;;  %s13863_s24 = sld [smem:[#allocation23_spill]] }
  0x6f   : > { %v10496_v6 = vpack.c.bf16 %v7656_v5, %v7655_v3  ;;  %v853_v9 = vld [vmem:[%s13851_s3] sm:$0xff]  ;;  %v854_v10 = vld [vmem:[%s13851_s3 + $0x8] sm:$0xff]  ;;  %v855_v13 = vld [vmem:[%s13851_s3 + $0x10] sm:$0xff]  ;;  %v10500_v15 = vpack.c.bf16 %v7658_v8, %v7657_v7 }
  0x70   : > { %10493 = vmatprep.subr.bf16.mxu1 %v10492_v4  ;;  %v11727_v11 = vld [vmem:[%s11709_s29] sm:$0xff]  ;;  %v10476_v12 = vpack.c.bf16 %v854_v10, %v853_v9  ;;  %v856_v14 = vld [vmem:[%s13851_s3 + $0x18] sm:$0xff]  ;;  %v858_v18 = vld [vmem:[%s13851_s3 + $0x28] sm:$0xff] }
  0x71   : > { %10495 = vmatpush3.bf16.msra.mxu1 %v10492_v4  ;;  %9067 = vmatprep.mubr.msk.f32.mxu1 %vm861_vm0, %v11727_v11  ;;  %v10480_v16 = vpack.c.bf16 %v856_v14, %v855_v13  ;;  %v857_v17 = vld [vmem:[%s13851_s3 + $0x20] sm:$0xff]  ;;  %v7659_v19 = vld [vmem:[%s13851_s3 + $0x70] sm:$0xff]  ;;  %v7660_v20 = vld [vmem:[%s13851_s3 + $0x78] sm:$0xff] }
  0x72   : > { %10497 = vmatprep.subr.bf16.mxu1 %v10496_v6  ;;  %9039 = vmatprep.mubr.msk.f32.mxu0 %vm861_vm0, %v11727_v11  ;;  %v10484_v21 = vpack.c.bf16 %v858_v18, %v857_v17  ;;  %v10504_v22 = vpack.c.bf16 %v7660_v20, %v7659_v19  ;;  %v859_v23 = vld [vmem:[%s13851_s3 + $0x30] sm:$0xff]  ;;  %v860_v24 = vld [vmem:[%s13851_s3 + $0x38] sm:$0xff]  ;;  %v7717_v25 = vld [vmem:[%s13851_s3 + $0x80] sm:$0xff] }
  0x73   : > { %10477 = vmatprep.subr.bf16.mxu0 %v10476_v12  ;;  %v7718_v26 = vld [vmem:[%s13851_s3 + $0x88] sm:$0xff]  ;;  %v10488_v27 = vpack.c.bf16 %v860_v24, %v859_v23  ;;  %v7719_v29 = vld [vmem:[%s13851_s3 + $0x90] sm:$0xff]  ;;  %v7720_v30 = vld [vmem:[%s13851_s3 + $0x98] sm:$0xff] }
  0x74   : > { %10479 = vmatpush3.bf16.msra.mxu0 %v10476_v12  ;;  %v10540_v28 = vpack.c.bf16 %v7718_v26, %v7717_v25  ;;  %v846_v31 = vld [vmem:[%s11709_s29 + $0x8] sm:$0xff]  ;;  %v847_v32 = vld [vmem:[%s11709_s29 + $0x10] sm:$0xff]  ;;  %v10544_v33 = vpack.c.bf16 %v7720_v30, %v7719_v29  ;;  %v7721_v34 = vld [vmem:[%s13851_s3 + $0xa0] sm:$0xff]  ;;  %s844_s7 = scalar_lea.vmem %s13863_s24, %s13866_s28 }
  0x75   : > { %10499 = vmatpush3.bf16.msra.mxu1 %v10496_v6  ;;  %10481 = vmatprep.subr.bf16.mxu0 %v10480_v16  ;;  %v7722_v35 = vld [vmem:[%s13851_s3 + $0xa8] sm:$0xff]  ;;  %v848_v36 = vld [vmem:[%s11709_s29 + $0x18] sm:$0xff]  ;;  %v849_v37 = vld [vmem:[%s11709_s29 + $0x20] sm:$0xff] }
  0x76   : > { %10501 = vmatprep.subr.bf16.mxu1 %v10500_v15  ;;  %v10548_v38 = vpack.c.bf16 %v7722_v35, %v7721_v34  ;;  %v7723_v39 = vld [vmem:[%s13851_s3 + $0xb0] sm:$0xff]  ;;  %v7724_v40 = vld [vmem:[%s13851_s3 + $0xb8] sm:$0xff]  ;;  %v850_v41 = vld [vmem:[%s11709_s29 + $0x28] sm:$0xff]  ;;  %s8163_s3 = sshll.u32 %s13866_s28, 5 }
  0x77   : > { %v851_v42 = vld [vmem:[%s11709_s29 + $0x30] sm:$0xff]  ;;  %v10552_v43 = vpack.c.bf16 %v7724_v40, %v7723_v39  ;;  %v852_v44 = vld [vmem:[%s11709_s29 + $0x38] sm:$0xff]  ;;  %v1868_v46 = vld [vmem:[%s13853_s27 + $0x20] sm:$0xff]  ;;  %s13859_s29 = sld [smem:[#allocation19_spill]] }
  0x78   : > { %10483 = vmatpush3.bf16.msra.mxu0 %v10480_v16  ;;  %v7669_v47 = vld [vmem:[%s13854_s0 + $0x80] sm:$0xff]  ;;  %1902 = vperm.xlu0 %11335, %v1868_v46   ;;  %v1870_v48 = vld [vmem:[%s13853_s27 + $0x30] sm:$0xff]  ;;  %v1869_v49 = vld [vmem:[%s13853_s27 + $0x28] sm:$0xff] }
  0x79   : > { %10503 = vmatpush3.bf16.msra.mxu1 %v10500_v15  ;;  %10485 = vmatprep.subr.bf16.mxu0 %v10484_v21  ;;  %v1871_v50 = vld [vmem:[%s13853_s27 + $0x38] sm:$0xff]  ;;  %v1872_v51 = vld [vmem:[%s13853_s27 + $0x40] sm:$0xff]  ;;  %v1873_v52 = vld [vmem:[%s13853_s27 + $0x48] sm:$0xff] }
  0x7a   : > { %10505 = vmatprep.subr.bf16.mxu1 %v10504_v22  ;;  %1912 = vperm.xlu1 %11336, %v1870_v48   ;;  %v1874_v53 = vld [vmem:[%s13853_s27 + $0x50] sm:$0xff]  ;;  %v1875_v54 = vld [vmem:[%s13853_s27 + $0x58] sm:$0xff]  ;;  %v1876_v55 = vld [vmem:[%s13853_s27 + $0x60] sm:$0xff] }
  0x7b   : > { %v1877_v56 = vld [vmem:[%s13853_s27 + $0x68] sm:$0xff]  ;;  %v1878_v57 = vld [vmem:[%s13853_s27 + $0x70] sm:$0xff]  ;;  %v1879_v58 = vld [vmem:[%s13853_s27 + $0x78] sm:$0xff] }
  0x7c   : > { %10487 = vmatpush3.bf16.msra.mxu0 %v10484_v21  ;;  %1907 = vperm.xlu0 %11335, %v1869_v49   ;;  %v1864_v59 = vld [vmem:[%s13853_s27] sm:$0xff]  ;;  %v1865_v60 = vld [vmem:[%s13853_s27 + $0x8] sm:$0xff]  ;;  %v1866_v61 = vld [vmem:[%s13853_s27 + $0x10] sm:$0xff] }
  0x7d   : > { %10507 = vmatpush3.bf16.msra.mxu1 %v10504_v22  ;;  %10489 = vmatprep.subr.bf16.mxu0 %v10488_v27  ;;  %v1867_v62 = vld [vmem:[%s13853_s27 + $0x18] sm:$0xff]  ;;  %v2991_v63 = vld [vmem:[%s13855_s2] sm:$0xff]  ;;  %v2992_v0 = vld [vmem:[%s13855_s2 + $0x8] sm:$0xff] }
  0x7e   : > { %10541 = vmatprep.subr.bf16.mxu1 %v10540_v28  ;;  %1917 = vperm.xlu1 %11336, %v1871_v50   ;;  %v2993_v1 = vld [vmem:[%s13855_s2 + $0x10] sm:$0xff]  ;;  %v2994_v2 = vld [vmem:[%s13855_s2 + $0x18] sm:$0xff]  ;;  %v2995_v3 = vld [vmem:[%s13855_s2 + $0x20] sm:$0xff] }
  0x7f   : > { %v2996_v4 = vld [vmem:[%s13855_s2 + $0x28] sm:$0xff]  ;;  %v2997_v5 = vld [vmem:[%s13855_s2 + $0x30] sm:$0xff]  ;;  %v2998_v6 = vld [vmem:[%s13855_s2 + $0x38] sm:$0xff] }
  0x80   : > { %9068 = vmatmul.mubr.msk.f32.vlgmr.msra.gmra.mrb[0].mxu1 %vm861_vm0, %v846_v31  ;;  %10491 = vmatpush3.bf16.msra.mxu0 %v10488_v27  ;;  %v2999_v7 = vld [vmem:[%s13855_s2 + $0x40] sm:$0xff]  ;;  %v3000_v8 = vld [vmem:[%s13855_s2 + $0x48] sm:$0xff]  ;;  %v3001_v9 = vld [vmem:[%s13855_s2 + $0x50] sm:$0xff] }
  0x81   : > { %9070 = vmatprep.mubr.msk.f32.mxu1 %vm861_vm0, %v847_v32  ;;  %10543 = vmatpush3.bf16.msra.mxu1 %v10540_v28  ;;  %v3002_v10 = vld [vmem:[%s13855_s2 + $0x58] sm:$0xff]  ;;  %v3004_v12 = vld [vmem:[%s13855_s2 + $0x68] sm:$0xff]  ;;  %v3005_v13 = vld [vmem:[%s13855_s2 + $0x70] sm:$0xff] }
  0x82   : > { %10545 = vmatprep.subr.bf16.mxu1 %v10544_v33  ;;  %1922 = vperm.xlu0 %11335, %v1872_v51   ;;  %v3006_v14 = vld [vmem:[%s13855_s2 + $0x78] sm:$0xff]  ;;  %v4112_v15 = vld [vmem:[%s13856_s6] sm:$0xff]  ;;  %v4113_v16 = vld [vmem:[%s13856_s6 + $0x8] sm:$0xff] }
  0x83   : > { %9040 = vmatmul.mubr.msk.f32.vlgmr.msra.gmra.mrb[0].mxu0 %vm861_vm0, %v846_v31  ;;  %1927 = vperm.xlu1 %11336, %v1873_v52   ;;  %v4114_v17 = vld [vmem:[%s13856_s6 + $0x10] sm:$0xff]  ;;  %v4115_v18 = vld [vmem:[%s13856_s6 + $0x18] sm:$0xff]  ;;  %v4116_v19 = vld [vmem:[%s13856_s6 + $0x20] sm:$0xff] }
  0x84   : > { %9071 = vmatmul.mubr.msk.f32.gmra.mrb[2].mxu1 %vm861_vm0, %v848_v36  ;;  %9042 = vmatprep.mubr.msk.f32.mxu0 %vm861_vm0, %v847_v32  ;;  %v4117_v20 = vld [vmem:[%s13856_s6 + $0x28] sm:$0xff]  ;;  %v4118_v21 = vld [vmem:[%s13856_s6 + $0x30] sm:$0xff]  ;;  %v4119_v22 = vld [vmem:[%s13856_s6 + $0x38] sm:$0xff] }
  0x85   : > { %9073 = vmatprep.mubr.msk.f32.mxu1 %vm861_vm0, %v849_v37  ;;  %10547 = vmatpush3.bf16.msra.mxu1 %v10544_v33  ;;  %v4120_v23 = vld [vmem:[%s13856_s6 + $0x40] sm:$0xff]  ;;  %v4121_v24 = vld [vmem:[%s13856_s6 + $0x48] sm:$0xff]  ;;  %v4122_v25 = vld [vmem:[%s13856_s6 + $0x50] sm:$0xff] }
  0x86   : > { %10549 = vmatprep.subr.bf16.mxu1 %v10548_v38  ;;  %1932 = vperm.xlu0 %11335, %v1874_v53   ;;  %v4123_v26 = vld [vmem:[%s13856_s6 + $0x58] sm:$0xff]  ;;  %v4124_v27 = vld [vmem:[%s13856_s6 + $0x60] sm:$0xff]  ;;  %v4125_v28 = vld [vmem:[%s13856_s6 + $0x68] sm:$0xff] }
  0x87   : > { %9043 = vmatmul.mubr.msk.f32.gmra.mrb[2].mxu0 %vm861_vm0, %v848_v36  ;;  %1937 = vperm.xlu1 %11336, %v1875_v54   ;;  %v4126_v29 = vld [vmem:[%s13856_s6 + $0x70] sm:$0xff]  ;;  %v4127_v30 = vld [vmem:[%s13856_s6 + $0x78] sm:$0xff]  ;;  %v5234_v35 = vld [vmem:[%s13797_s12 + $0x20] sm:$0xff] }
  0x88   : > { %9074 = vmatmul.mubr.msk.f32.gmra.mrb[4].mxu1 %vm861_vm0, %v850_v41  ;;  %9045 = vmatprep.mubr.msk.f32.mxu0 %vm861_vm0, %v849_v37  ;;  %v5232_v33 = vld [vmem:[%s13797_s12 + $0x10] sm:$0xff]  ;;  %v5233_v34 = vld [vmem:[%s13797_s12 + $0x18] sm:$0xff]  ;;  %v5238_v39 = vld [vmem:[%s13797_s12 + $0x40] sm:$0xff] }
  0x89   : > { %9076 = vmatprep.mubr.msk.f32.mxu1 %vm861_vm0, %v851_v42  ;;  %10551 = vmatpush3.bf16.msra.mxu1 %v10548_v38  ;;  %v5237_v38 = vld [vmem:[%s13797_s12 + $0x38] sm:$0xff]  ;;  %v5242_v53 = vld [vmem:[%s13797_s12 + $0x60] sm:$0xff] }
  0x8a   : > { %10553 = vmatprep.subr.bf16.mxu1 %v10552_v43  ;;  %1942 = vperm.xlu0 %11335, %v1876_v55   ;;  %v5241_v52 = vld [vmem:[%s13797_s12 + $0x58] sm:$0xff] }
  0x8b   : > { %9046 = vmatmul.mubr.msk.f32.gmra.mrb[4].mxu0 %vm861_vm0, %v850_v41  ;;  %1947 = vperm.xlu1 %11336, %v1877_v56  }
  0x8c   : > { %9077 = vmatmul.mubr.msk.f32.gmra.mrb[6].mxu1 %vm861_vm0, %v852_v44  ;;  %9048 = vmatprep.mubr.msk.f32.mxu0 %vm861_vm0, %v851_v42 }
  0x8d   : > { %10555 = vmatpush3.bf16.msra.mxu1 %v10552_v43  ;;  %9175 = vmatprep.mubr.msk.f32.mxu1 %vm861_vm0, %v11727_v11  ;;  %v3003_v11 = vld [vmem:[%s13855_s2 + $0x60] sm:$0xff] }
  0x8e   : > { %1952 = vperm.xlu0 %11335, %v1878_v57  }
  0x8f   : > { %9049 = vmatmul.mubr.msk.f32.gmra.mrb[6].mxu0 %vm861_vm0, %v852_v44  ;;  %1957 = vperm.xlu1 %11336, %v1879_v58  }
  0x90   : > { %9176 = vmatmul.mubr.msk.f32.vlgmr.msra.gmra.mrb[8].mxu1 %vm861_vm0, %v846_v31  ;;  %9095 = vmatprep.mubr.msk.f32.mxu0 %vm861_vm0, %v7669_v47  ;;  %v5230_v31 = vld [vmem:[%s13797_s12] sm:$0xff] }
  0x91   : > { %9178 = vmatprep.mubr.msk.f32.mxu1 %vm861_vm0, %v847_v32  ;;  %v5231_v32 = vld [vmem:[%s13797_s12 + $0x8] sm:$0xff] }
  0x92   : > { %1882 = vperm.xlu0 %11335, %v1864_v59  }
  0x93   : > { %1887 = vperm.xlu1 %11336, %v1865_v60   ;;  %v5243_v60 = vld [vmem:[%s13797_s12 + $0x68] sm:$0xff] }
  0x94   : > { %9179 = vmatmul.mubr.msk.f32.gmra.mrb[10].mxu1 %vm861_vm0, %v848_v36  ;;  %v5235_v36 = vld [vmem:[%s13797_s12 + $0x28] sm:$0xff] }
  0x95   : > { %9181 = vmatprep.mubr.msk.f32.mxu1 %vm861_vm0, %v849_v37  ;;  %v5236_v37 = vld [vmem:[%s13797_s12 + $0x30] sm:$0xff] }
  0x96   : > { %1892 = vperm.xlu0 %11335, %v1866_v61   ;;  %v5244_v61 = vld [vmem:[%s13797_s12 + $0x70] sm:$0xff] }
  0x97   : > { %1897 = vperm.xlu1 %11336, %v1867_v62  }
  0x98   : > { %9182 = vmatmul.mubr.msk.f32.gmra.mrb[12].mxu1 %vm861_vm0, %v850_v41 }
  0x99   : > { %9184 = vmatprep.mubr.msk.f32.mxu1 %vm861_vm0, %v851_v42 }
  0x9a   : > { %3009 = vperm.xlu0 %11335, %v2991_v63  }
  0x9b   : > { %3014 = vperm.xlu1 %11336, %v2992_v0  }
  0x9c   : > { %9185 = vmatmul.mubr.msk.f32.gmra.mrb[14].mxu1 %vm861_vm0, %v852_v44  ;;  %v5239_v44 = vld [vmem:[%s13797_s12 + $0x48] sm:$0xff] }
  0x9e   : > { %3019 = vperm.xlu0 %11335, %v2993_v1  }
  0x9f   : > { %3024 = vperm.xlu1 %11336, %v2994_v2  }
  0xa2   : > { %3029 = vperm.xlu0 %11335, %v2995_v3  }
  0xa3   : > { %3034 = vperm.xlu1 %11336, %v2996_v4   ;;  %v5245_v4 = vld [vmem:[%s13797_s12 + $0x78] sm:$0xff] }
  0xa6   : > { %3039 = vperm.xlu0 %11335, %v2997_v5  }
  0xa7   : > { %3044 = vperm.xlu1 %11336, %v2998_v6  }
  0xaa   : > { %3049 = vperm.xlu0 %11335, %v2999_v7   ;;  %v6358_v7 = vld [vmem:[%s13800_s15] sm:$0xff] }
  0xab   : > { %3054 = vperm.xlu1 %11336, %v3000_v8   ;;  %v7670_v8 = vld [vmem:[%s13854_s0 + $0x88] sm:$0xff] }
  0xae   : > { %3059 = vperm.xlu0 %11335, %v3001_v9  }
  0xaf   : > { %3064 = vperm.xlu1 %11336, %v3002_v10  }
  0xb2   : > { %3069 = vperm.xlu0 %11335, %v3003_v11   ;;  %v7671_v11 = vld [vmem:[%s13854_s0 + $0x90] sm:$0xff] }
  0xb3   : > { %3074 = vperm.xlu1 %11336, %v3004_v12  }
  0xb6   : > { %3079 = vperm.xlu0 %11335, %v3005_v13   ;;  %v6359_v13 = vld [vmem:[%s13800_s15 + $0x8] sm:$0xff] }
  0xb7   : > { %3084 = vperm.xlu1 %11336, %v3006_v14  }
  0xba   : > { %4130 = vperm.xlu0 %11335, %v4112_v15   ;;  %v6360_v15 = vld [vmem:[%s13800_s15 + $0x10] sm:$0xff] }
  0xbb   : > { %4135 = vperm.xlu1 %11336, %v4113_v16   ;;  %v7672_v16 = vld [vmem:[%s13854_s0 + $0x98] sm:$0xff] }
  0xbe   : > { %4140 = vperm.xlu0 %11335, %v4114_v17  }
  0xbf   : > { %4145 = vperm.xlu1 %11336, %v4115_v18   ;;  %v7673_v18 = vld [vmem:[%s13854_s0 + $0xa0] sm:$0xff] }
  0xc2   : > { %4150 = vperm.xlu0 %11335, %v4116_v19  }
  0xc3   : > { %4155 = vperm.xlu1 %11336, %v4117_v20   ;;  %v6361_v20 = vld [vmem:[%s13800_s15 + $0x18] sm:$0xff] }
  0xc6   : > { %4160 = vperm.xlu0 %11335, %v4118_v21  }
  0xc7   : > { %4165 = vperm.xlu1 %11336, %v4119_v22   ;;  %v6362_v22 = vld [vmem:[%s13800_s15 + $0x20] sm:$0xff] }
  0xca   : > { %4170 = vperm.xlu0 %11335, %v4120_v23   ;;  %v7674_v23 = vld [vmem:[%s13854_s0 + $0xa8] sm:$0xff] }
  0xcb   : > { %4175 = vperm.xlu1 %11336, %v4121_v24  }
  0xce   : > { %4180 = vperm.xlu0 %11335, %v4122_v25   ;;  %v7675_v25 = vld [vmem:[%s13854_s0 + $0xb0] sm:$0xff] }
  0xcf   : > { %4185 = vperm.xlu1 %11336, %v4123_v26  }
  0xd2   : > { %4190 = vperm.xlu0 %11335, %v4124_v27   ;;  %v6363_v27 = vld [vmem:[%s13800_s15 + $0x28] sm:$0xff] }
  0xd3   : > { %4195 = vperm.xlu1 %11336, %v4125_v28  }
  0xd6   : > { %4200 = vperm.xlu0 %11335, %v4126_v29   ;;  %v6364_v29 = vld [vmem:[%s13800_s15 + $0x30] sm:$0xff] }
  0xd7   : > { %4205 = vperm.xlu1 %11336, %v4127_v30   ;;  %v7676_v30 = vld [vmem:[%s13854_s0 + $0xb8] sm:$0xff] }
  0xda   : > { %5248 = vperm.xlu0 %11335, %v5230_v31  }
  0xdb   : > { %5253 = vperm.xlu1 %11336, %v5231_v32   ;;  %v7677_v32 = vld [vmem:[%s13854_s0 + $0xc0] sm:$0xff] }
  0xde   : > { %5258 = vperm.xlu0 %11335, %v5232_v33  }
  0xdf   : > { %5263 = vperm.xlu1 %11336, %v5233_v34   ;;  %v6365_v34 = vld [vmem:[%s13800_s15 + $0x38] sm:$0xff] }
  0xe2   : > { %5268 = vperm.xlu0 %11335, %v5234_v35   ;;  %v6366_v35 = vld [vmem:[%s13800_s15 + $0x40] sm:$0xff] }
  0xe3   : > { %5273 = vperm.xlu1 %11336, %v5235_v36   ;;  %v7678_v36 = vld [vmem:[%s13854_s0 + $0xc8] sm:$0xff] }
  0xe6   : > { %5278 = vperm.xlu0 %11335, %v5236_v37   ;;  %v7679_v37 = vld [vmem:[%s13854_s0 + $0xd0] sm:$0xff] }
  0xe7   : > { %5283 = vperm.xlu1 %11336, %v5237_v38   ;;  %v6367_v38 = vld [vmem:[%s13800_s15 + $0x48] sm:$0xff] }
  0xea   : > { %5288 = vperm.xlu0 %11335, %v5238_v39   ;;  %v6368_v39 = vld [vmem:[%s13800_s15 + $0x50] sm:$0xff] }
  0xeb   : > { %5293 = vperm.xlu1 %11336, %v5239_v44   ;;  %v6369_v44 = vld [vmem:[%s13800_s15 + $0x58] sm:$0xff] }
  0xee   : > { %5298 = vperm.xlu0 %11335, %v5240_v45  }
  0xef   : > { %5303 = vperm.xlu1 %11336, %v5241_v52   ;;  %v991_v52 = vld [vmem:[%s13854_s0] sm:$0xff] }
  0xf2   : > { %5308 = vperm.xlu0 %11335, %v5242_v53   ;;  %v6373_v53 = vld [vmem:[%s13800_s15 + $0x78] sm:$0xff] }
  0xf3   : > { %5313 = vperm.xlu1 %11336, %v5243_v60   ;;  %v998_v60 = vld [vmem:[%s13854_s0 + $0x38] sm:$0xff] }
  0xf6   : > { %5318 = vperm.xlu0 %11335, %v5244_v61   ;;  %v999_v61 = vld [vmem:[%s13854_s0 + $0x40] sm:$0xff] }
  0xf7   : > { %5323 = vperm.xlu1 %11336, %v5245_v4   ;;  %v1006_v4 = vld [vmem:[%s13854_s0 + $0x78] sm:$0xff] }
  0xfa   : > { %6376 = vperm.xlu0 %11335, %v6358_v7   ;;  %v7735_v7 = vld [vmem:[%s13854_s0 + $0x110] sm:$0xff] }
  0xfb   : > { %6381 = vperm.xlu1 %11336, %v6359_v13   ;;  %v7741_v13 = vld [vmem:[%s13854_s0 + $0x140] sm:$0xff] }
  0xfe   : > { %6386 = vperm.xlu0 %11335, %v6360_v15   ;;  %v7743_v15 = vld [vmem:[%s13854_s0 + $0x150] sm:$0xff] }
  0xff   : > { %6391 = vperm.xlu1 %11336, %v6361_v20   ;;  %v7748_v20 = vld [vmem:[%s13854_s0 + $0x178] sm:$0xff] }
 0x102   : > { %6396 = vperm.xlu0 %11335, %v6362_v22   ;;  %v1995_v22 = vld [vmem:[%s13857_s5 + $0x18] sm:$0xff] }
 0x103   : > { %6401 = vperm.xlu1 %11336, %v6363_v27   ;;  %v7781_v27 = vld [vmem:[%s13857_s5 + $0x20] sm:$0xff] }
 0x106   : > { %6406 = vperm.xlu0 %11335, %v6364_v29  }
 0x107   : > { %6411 = vperm.xlu1 %11336, %v6365_v34  }
 0x10a   : > { %6416 = vperm.xlu0 %11335, %v6366_v35  }
 0x10b   : > { %6421 = vperm.xlu1 %11336, %v6367_v38  }
 0x10e   : > { %6426 = vperm.xlu0 %11335, %v6368_v39  }
 0x10f   : > { %6431 = vperm.xlu1 %11336, %v6369_v44  }
 0x153   : > { %v9069_v40 = vpop.f32.mrb[0].mxu1 }
 0x154   : > { %v1082_v41 = vpop.f32.mrb[1].mxu1 }
 0x155   : > { %v10508_v42 = vpack.c.bf16 %v9069_v40, %v1082_v41  ;;  %v7680_v40 = vld [vmem:[%s13854_s0 + $0xd8] sm:$0xff]  ;;  %v7681_v41 = vld [vmem:[%s13854_s0 + $0xe0] sm:$0xff] }
 0x156   : > { %v9041_v43 = vpop.f32.mrb[0].mxu0 }
 0x157   : > { %v9072_v46 = vpop.f32.mrb[2].mxu1  ;;  %10509 = vmatprep.subr.bf16.mxu0 %v10508_v42  ;;  %v952_v47 = vpop.f32.mrb[1].mxu0 }
 0x158   : > { %v1092_v48 = vpop.f32.mrb[3].mxu1  ;;  %10511 = vmatpush3.bf16.msra.mxu0 %v10508_v42  ;;  %v10524_v49 = vpack.c.bf16 %v9041_v43, %v952_v47  ;;  %v1992_v42 = vld [vmem:[%s13857_s5] sm:$0xff]  ;;  %v1993_v43 = vld [vmem:[%s13857_s5 + $0x8] sm:$0xff] }
 0x159   : > { %v10512_v50 = vpack.c.bf16 %v9072_v46, %v1092_v48  ;;  %v12104_v45 = vpack.c.bf16 %v1993_v43, %v1992_v42  ;;  %v6370_v46 = vld [vmem:[%s13800_s15 + $0x60] sm:$0xff]  ;;  %v7682_v47 = vld [vmem:[%s13854_s0 + $0xe8] sm:$0xff]  ;;  %v7683_v48 = vld [vmem:[%s13854_s0 + $0xf0] sm:$0xff] }
 0x15a   : > { %v9044_v51 = vpop.f32.mrb[2].mxu0  ;;  %6436 = vperm.xlu0 %11335, %v6370_v46  }
 0x15b   : > { %v9075_v54 = vpop.f32.mrb[4].mxu1  ;;  %10513 = vmatprep.subr.bf16.mxu0 %v10512_v50  ;;  %v962_v55 = vpop.f32.mrb[3].mxu0  ;;  %11110 = vmatprep.subr.bf16.mxu1 %v12104_v45 }
 0x15c   : > { %v1102_v56 = vpop.f32.mrb[5].mxu1  ;;  %10515 = vmatpush3.bf16.msra.mxu0 %v10512_v50  ;;  %v10528_v57 = vpack.c.bf16 %v9044_v51, %v962_v55  ;;  %11112 = vmatpush3.bf16.msra.mxu1 %v12104_v45  ;;  %v6372_v50 = vld [vmem:[%s13800_s15 + $0x70] sm:$0xff]  ;;  %v7684_v51 = vld [vmem:[%s13854_s0 + $0xf8] sm:$0xff] }
 0x15d   : > { %v10516_v58 = vpack.c.bf16 %v9075_v54, %v1102_v56  ;;  %v992_v54 = vld [vmem:[%s13854_s0 + $0x8] sm:$0xff]  ;;  %v993_v55 = vld [vmem:[%s13854_s0 + $0x10] sm:$0xff]  ;;  %v994_v56 = vld [vmem:[%s13854_s0 + $0x18] sm:$0xff] }
 0x15e   : > { %v9047_v59 = vpop.f32.mrb[4].mxu0  ;;  %6446 = vperm.xlu0 %11335, %v6372_v50  }
 0x15f   : > { %v9078_v62 = vpop.f32.mrb[6].mxu1  ;;  %10517 = vmatprep.subr.bf16.mxu0 %v10516_v58  ;;  %v972_v63 = vpop.f32.mrb[5].mxu0 }
 0x160   : > { %v1112_v0 = vpop.f32.mrb[7].mxu1  ;;  %10519 = vmatpush3.bf16.msra.mxu0 %v10516_v58  ;;  %v10532_v1 = vpack.c.bf16 %v9047_v59, %v972_v63  ;;  %v996_v58 = vld [vmem:[%s13854_s0 + $0x28] sm:$0xff]  ;;  %v997_v59 = vld [vmem:[%s13854_s0 + $0x30] sm:$0xff] }
 0x161   : > { %v10520_v2 = vpack.c.bf16 %v9078_v62, %v1112_v0  ;;  %v1000_v62 = vld [vmem:[%s13854_s0 + $0x48] sm:$0xff]  ;;  %v1001_v63 = vld [vmem:[%s13854_s0 + $0x50] sm:$0xff]  ;;  %v1002_v0 = vld [vmem:[%s13854_s0 + $0x58] sm:$0xff] }
 0x162   : > { %v9050_v3 = vpop.f32.mrb[6].mxu0 }
 0x163   : > { %10521 = vmatprep.subr.bf16.mxu0 %v10520_v2  ;;  %v982_v5 = vpop.f32.mrb[7].mxu0  ;;  %v9177_v6 = vpop.f32.mrb[8].mxu1 }
 0x164   : > { %10523 = vmatpush3.bf16.msra.mxu0 %v10520_v2  ;;  %v10536_v9 = vpack.c.bf16 %v9050_v3, %v982_v5  ;;  %v1599_v10 = vpop.f32.mrb[9].mxu1  ;;  %v1004_v2 = vld [vmem:[%s13854_s0 + $0x68] sm:$0xff]  ;;  %v1005_v3 = vld [vmem:[%s13854_s0 + $0x70] sm:$0xff]  ;;  %v7733_v5 = vld [vmem:[%s13854_s0 + $0x100] sm:$0xff] }
 0x165   : > { %10525 = vmatprep.subr.bf16.mxu0 %v10524_v49  ;;  %v12016_v12 = vpack.c.bf16 %v9177_v6, %v1599_v10  ;;  %v7734_v6 = vld [vmem:[%s13854_s0 + $0x108] sm:$0xff] }
 0x166   : > { %v7738_v10 = vld [vmem:[%s13854_s0 + $0x128] sm:$0xff] }
 0x167   : > { %9096 = vmatmul.mubr.msk.f32.vlgmr.msra.gmra.mrb[8].mxu0 %vm861_vm0, %v7670_v8  ;;  %v9180_v14 = vpop.f32.mrb[10].mxu1  ;;  %v7736_v8 = vld [vmem:[%s13854_s0 + $0x118] sm:$0xff] }
 0x168   : > { %10527 = vmatpush3.bf16.msra.mxu0 %v10524_v49  ;;  %9098 = vmatprep.mubr.msk.f32.mxu0 %vm861_vm0, %v7671_v11  ;;  %v1609_v17 = vpop.f32.mrb[11].mxu1  ;;  %v6371_v49 = vld [vmem:[%s13800_s15 + $0x68] sm:$0xff]  ;;  %v7739_v11 = vld [vmem:[%s13854_s0 + $0x130] sm:$0xff] }
 0x169   : > { %10529 = vmatprep.subr.bf16.mxu0 %v10528_v57  ;;  %v12032_v19 = vpack.c.bf16 %v9180_v14, %v1609_v17  ;;  %6441 = vperm.xlu1 %11336, %v6371_v49   ;;  %v7742_v14 = vld [vmem:[%s13854_s0 + $0x148] sm:$0xff]  ;;  %v7745_v17 = vld [vmem:[%s13854_s0 + $0x160] sm:$0xff]  ;;  %v7820_v49 = vld [vmem:[%s13857_s5 + $0x58] sm:$0xff] }
 0x16b   : > { %9099 = vmatmul.mubr.msk.f32.gmra.mrb[10].mxu0 %vm861_vm0, %v7672_v16  ;;  %v9183_v21 = vpop.f32.mrb[12].mxu1  ;;  %v7744_v16 = vld [vmem:[%s13854_s0 + $0x158] sm:$0xff] }
 0x16c   : > { %9101 = vmatprep.mubr.msk.f32.mxu0 %vm861_vm0, %v7673_v18  ;;  %10531 = vmatpush3.bf16.msra.mxu0 %v10528_v57  ;;  %v1619_v24 = vpop.f32.mrb[13].mxu1  ;;  %v995_v57 = vld [vmem:[%s13854_s0 + $0x20] sm:$0xff]  ;;  %v7746_v18 = vld [vmem:[%s13854_s0 + $0x168] sm:$0xff] }
 0x16d   : > { %10533 = vmatprep.subr.bf16.mxu0 %v10532_v1  ;;  %v12048_v26 = vpack.c.bf16 %v9183_v21, %v1619_v24  ;;  %6451 = vperm.xlu1 %11336, %v6373_v53   ;;  %v1994_v21 = vld [vmem:[%s13857_s5 + $0x10] sm:$0xff]  ;;  %v7817_v24 = vld [vmem:[%s13857_s5 + $0x40] sm:$0xff] }
 0x16f   : > { %9102 = vmatmul.mubr.msk.f32.gmra.mrb[12].mxu0 %vm861_vm0, %v7674_v23  ;;  %v9186_v28 = vpop.f32.mrb[14].mxu1  ;;  %v10576_v23 = vpack.c.bf16 %v1995_v22, %v1994_v21 }
 0x170   : > { %9104 = vmatprep.mubr.msk.f32.mxu0 %vm861_vm0, %v7675_v25  ;;  %10535 = vmatpush3.bf16.msra.mxu0 %v10532_v1  ;;  %v1629_v31 = vpop.f32.mrb[15].mxu1  ;;  %v1003_v1 = vld [vmem:[%s13854_s0 + $0x60] sm:$0xff]  ;;  %v7818_v25 = vld [vmem:[%s13857_s5 + $0x48] sm:$0xff] }
 0x171   : > { %10537 = vmatprep.subr.bf16.mxu0 %v10536_v9  ;;  %v12064_v33 = vpack.c.bf16 %v9186_v28, %v1629_v31  ;;  %11111 = vmatprep.subr.bf16.mxu1 %v10576_v23  ;;  %v7782_v28 = vld [vmem:[%s13857_s5 + $0x28] sm:$0xff]  ;;  %v1903_v31 = vpop.permute.xlu0 %1902 }
 0x172   : > { %11113 = vmatpush3.bf16.msra.mxu1 %v10576_v23  ;;  %v10580_v29 = vpack.c.bf16 %v7782_v28, %v7781_v27 }
 0x173   : > { %9105 = vmatmul.mubr.msk.f32.gmra.mrb[14].mxu0 %vm861_vm0, %v7676_v30  ;;  %v1913_v30 = vpop.permute.xlu1 %1912 }
 0x174   : > { %9107 = vmatprep.mubr.msk.f32.mxu0 %vm861_vm0, %v7677_v32  ;;  %10539 = vmatpush3.bf16.msra.mxu0 %v10536_v9  ;;  %v7737_v9 = vld [vmem:[%s13854_s0 + $0x120] sm:$0xff] }
 0x175   : > { %10557 = vmatprep.subr.bf16.mxu0 %v12016_v12  ;;  %10581 = vmatprep.subr.bf16.mxu1 %v10580_v29 }
 0x177   : > { %9108 = vmatmul.mubr.msk.f32.gmra.mrb[16].mxu0 %vm861_vm0, %v7678_v36  ;;  %v1918_v32 = vpop.permute.xlu1 %1917 }
 0x178   : > { %9110 = vmatprep.mubr.msk.f32.mxu0 %vm861_vm0, %v7679_v37 }
 0x17b   : > { %9111 = vmatmul.mubr.msk.f32.gmra.mrb[18].mxu0 %vm861_vm0, %v7680_v40  ;;  %v1928_v34 = vpop.permute.xlu1 %1927 }
 0x17c   : > { %9113 = vmatprep.mubr.msk.f32.mxu0 %vm861_vm0, %v7681_v41 }
 0x17f   : > { %9114 = vmatmul.mubr.msk.f32.gmra.mrb[20].mxu0 %vm861_vm0, %v7682_v47  ;;  %v12289_v36 = vpop.permute.xlu1 %1937 }
 0x180   : > { %9116 = vmatprep.mubr.msk.f32.mxu0 %vm861_vm0, %v7683_v48  ;;  %v7819_v48 = vld [vmem:[%s13857_s5 + $0x50] sm:$0xff] }
 0x183   : > { %9117 = vmatmul.mubr.msk.f32.gmra.mrb[22].mxu0 %vm861_vm0, %v7684_v51  ;;  %v12293_v38 = vpop.permute.xlu1 %1947 }
 0x184   : > { %9135 = vmatprep.mubr.msk.f32.mxu0 %vm861_vm0, %v991_v52 }
 0x187   : > { %9136 = vmatmul.mubr.msk.f32.vlgmr.msra.gmra.mrb[8].mxu0 %vm861_vm0, %v992_v54  ;;  %v12297_v40 = vpop.permute.xlu1 %1957 }
 0x188   : > { %10559 = vmatpush3.bf16.msra.mxu0 %v12016_v12  ;;  %9138 = vmatprep.mubr.msk.f32.mxu0 %vm861_vm0, %v993_v55  ;;  %v7740_v12 = vld [vmem:[%s13854_s0 + $0x138] sm:$0xff] }
 0x189   : > { %10561 = vmatprep.subr.bf16.mxu0 %v12032_v19 }
 0x18b   : > { %9139 = vmatmul.mubr.msk.f32.gmra.mrb[10].mxu0 %vm861_vm0, %v994_v56  ;;  %v1888_v42 = vpop.permute.xlu1 %1887 }
 0x18c   : > { %9141 = vmatprep.mubr.msk.f32.mxu0 %vm861_vm0, %v995_v57  ;;  %10563 = vmatpush3.bf16.msra.mxu0 %v12032_v19  ;;  %v7747_v19 = vld [vmem:[%s13854_s0 + $0x170] sm:$0xff]  ;;  %v10656_v57 = vpack.c.bf16 %v7820_v49, %v7819_v48  ;;  %s841_s0 = scalar_lea.vmem %s13862_s30, %s8163_s3 }
 0x18d   : > { %10565 = vmatprep.subr.bf16.mxu0 %v12048_v26 }
 0x18f   : > { %9142 = vmatmul.mubr.msk.f32.gmra.mrb[12].mxu0 %vm861_vm0, %v996_v58  ;;  %v1898_v50 = vpop.permute.xlu1 %1897 }
 0x190   : > { %9144 = vmatprep.mubr.msk.f32.mxu0 %vm861_vm0, %v997_v59  ;;  %10567 = vmatpush3.bf16.msra.mxu0 %v12048_v26  ;;  %v10652_v26 = vpack.c.bf16 %v7818_v25, %v7817_v24 }
 0x191   : > { %10569 = vmatprep.subr.bf16.mxu0 %v12064_v33 }
 0x193   : > { %9145 = vmatmul.mubr.msk.f32.gmra.mrb[14].mxu0 %vm861_vm0, %v998_v60 }
 0x194   : > { %9147 = vmatprep.mubr.msk.f32.mxu0 %vm861_vm0, %v999_v61  ;;  %10571 = vmatpush3.bf16.msra.mxu0 %v12064_v33  ;;  %v1908_v33 = vpop.permute.xlu0 %1907 }
 0x195   : > { %10573 = vmatprep.subr.bf16.mxu0 %v12104_v45 }
 0x197   : > { %9148 = vmatmul.mubr.msk.f32.gmra.mrb[16].mxu0 %vm861_vm0, %v1000_v62 }
 0x198   : > { %9150 = vmatprep.mubr.msk.f32.mxu0 %vm861_vm0, %v1001_v63  ;;  %v1923_v35 = vpop.permute.xlu0 %1922 }
 0x19b   : > { %9151 = vmatmul.mubr.msk.f32.gmra.mrb[18].mxu0 %vm861_vm0, %v1002_v0 }
 0x19c   : > { %9153 = vmatprep.mubr.msk.f32.mxu0 %vm861_vm0, %v1003_v1  ;;  %v12291_v37 = vpop.permute.xlu0 %1932  ;;  %v7783_v1 = vld [vmem:[%s13857_s5 + $0x30] sm:$0xff] }
 0x19f   : > { %9154 = vmatmul.mubr.msk.f32.gmra.mrb[20].mxu0 %vm861_vm0, %v1004_v2  ;;  %v7784_v2 = vld [vmem:[%s13857_s5 + $0x38] sm:$0xff] }
 0x1a0   : > { %9156 = vmatprep.mubr.msk.f32.mxu0 %vm861_vm0, %v1005_v3  ;;  %v12295_v39 = vpop.permute.xlu0 %1942 }
 0x1a3   : > { %9157 = vmatmul.mubr.msk.f32.gmra.mrb[22].mxu0 %vm861_vm0, %v1006_v4 }
 0x1a4   : > { %9203 = vmatprep.mubr.msk.f32.mxu0 %vm861_vm0, %v7733_v5  ;;  %v12299_v41 = vpop.permute.xlu0 %1952 }
 0x1a7   : > { %9204 = vmatmul.mubr.msk.f32.vlgmr.msra.gmra.mrb[8].mxu0 %vm861_vm0, %v7734_v6 }
 0x1a8   : > { %9206 = vmatprep.mubr.msk.f32.mxu0 %vm861_vm0, %v7735_v7  ;;  %10575 = vmatpush3.bf16.msra.mxu0 %v12104_v45  ;;  %v1883_v43 = vpop.permute.xlu0 %1882 }
 0x1a9   : > { %10577 = vmatprep.subr.bf16.mxu0 %v10576_v23 }
 0x1ab   : > { %9207 = vmatmul.mubr.msk.f32.gmra.mrb[10].mxu0 %vm861_vm0, %v7736_v8  ;;  %v10584_v8 = vpack.c.bf16 %v7784_v2, %v7783_v1 }
 0x1ac   : > { %9209 = vmatprep.mubr.msk.f32.mxu0 %vm861_vm0, %v7737_v9  ;;  %10579 = vmatpush3.bf16.msra.mxu0 %v10576_v23  ;;  %v1893_v53 = vpop.permute.xlu0 %1892 }
 0x1ad   : > { %10653 = vmatprep.subr.bf16.mxu0 %v10652_v26 }
 0x1af   : > { %9210 = vmatmul.mubr.msk.f32.gmra.mrb[12].mxu0 %vm861_vm0, %v7738_v10 }
 0x1b0   : > { %9212 = vmatprep.mubr.msk.f32.mxu0 %vm861_vm0, %v7739_v11 }
 0x1b3   : > { %9213 = vmatmul.mubr.msk.f32.gmra.mrb[14].mxu0 %vm861_vm0, %v7740_v12 }
 0x1b4   : > { %9215 = vmatprep.mubr.msk.f32.mxu0 %vm861_vm0, %v7741_v13 }
 0x1b7   : > { %9216 = vmatmul.mubr.msk.f32.gmra.mrb[16].mxu0 %vm861_vm0, %v7742_v14 }
 0x1b8   : > { %9218 = vmatprep.mubr.msk.f32.mxu0 %vm861_vm0, %v7743_v15 }
 0x1bb   : > { %9219 = vmatmul.mubr.msk.f32.gmra.mrb[18].mxu0 %vm861_vm0, %v7744_v16 }
 0x1bc   : > { %9221 = vmatprep.mubr.msk.f32.mxu0 %vm861_vm0, %v7745_v17 }
 0x1bf   : > { %9222 = vmatmul.mubr.msk.f32.gmra.mrb[20].mxu0 %vm861_vm0, %v7746_v18 }
 0x1c0   : > { %9224 = vmatprep.mubr.msk.f32.mxu0 %vm861_vm0, %v7747_v19 }
 0x1c3   : > { %9225 = vmatmul.mubr.msk.f32.gmra.mrb[22].mxu0 %vm861_vm0, %v7748_v20 }
 0x27a   : > { %v9205_v44 = vpop.f32.mrb[8].mxu0 }
 0x27b   : > { %v1961_v45 = vadd.f32 %v9205_v44, %v1888_v42  ;;  %v1769_v46 = vpop.f32.mrb[9].mxu0 }
 0x27c   : > { %v1960_v47 = vadd.f32 %v1883_v43, %v1769_v46 }
 0x27d   : > { %v12309_v54 = vmax.f32 %v1961_v45, 0.0 }
 0x27e   : > { %v12307_v51 = vmax.f32 %v1960_v47, 0.0  ;;  %v9208_v52 = vpop.f32.mrb[10].mxu0 }
 0x27f   : > { %v1963_v55 = vadd.f32 %v9208_v52, %v1898_v50  ;;  %v1779_v56 = vpop.f32.mrb[11].mxu0 }
 0x280   : > { %v1962_v58 = vadd.f32 %v1893_v53, %v1779_v56  ;;  %9235 = vmatprep.mubr.msk.f32.mxu0 %vm1996_vm1, %v12307_v51 }
 0x281   : > { %9236 = vmatmul.mubr.msk.f32.vlgmr.msra.gmra.mrb[24].mxu0 %vm1996_vm1, %v12309_v54  ;;  %v12317_v61 = vmax.f32 %v1963_v55, 0.0 }
 0x282   : > { %v12315_v59 = vmax.f32 %v1962_v58, 0.0  ;;  %v9211_v60 = vpop.f32.mrb[12].mxu0  ;;  %10655 = vmatpush3.bf16.msra.mxu0 %v10652_v26 }
 0x283   : > { %v1965_v62 = vadd.f32 %v9211_v60, %v1908_v33  ;;  %v1789_v63 = vpop.f32.mrb[13].mxu0  ;;  %10657 = vmatprep.subr.bf16.mxu0 %v10656_v57 }
 0x284   : > { %v1964_v0 = vadd.f32 %v1903_v31, %v1789_v63  ;;  %9238 = vmatprep.mubr.msk.f32.mxu0 %vm1996_vm1, %v12315_v59 }
 0x285   : > { %9239 = vmatmul.mubr.msk.f32.gmra.mrb[26].mxu0 %vm1996_vm1, %v12317_v61  ;;  %v12333_v5 = vmax.f32 %v1965_v62, 0.0 }
 0x286   : > { %v12329_v3 = vmax.f32 %v1964_v0, 0.0  ;;  %v9214_v4 = vpop.f32.mrb[14].mxu0  ;;  %10659 = vmatpush3.bf16.msra.mxu0 %v10656_v57  ;;  %9411 = vmatprep.mubr.msk.f32.mxu0 %vm1996_vm1, %v12307_v51 }
 0x287   : > { %v1967_v6 = vadd.f32 %v9214_v4, %v1918_v32  ;;  %v1799_v7 = vpop.f32.mrb[15].mxu0 }
 0x288   : > { %v1966_v9 = vadd.f32 %v1913_v30, %v1799_v7  ;;  %9241 = vmatprep.mubr.msk.f32.mxu1 %vm1996_vm1, %v12329_v3 }
 0x289   : > { %9242 = vmatmul.mubr.msk.f32.vlgmr.msra.gmra.mrb[16].mxu1 %vm1996_vm1, %v12333_v5  ;;  %9412 = vmatmul.mubr.msk.f32.vlgmr.msra.gmra.mrb[28].mxu0 %vm1996_vm1, %v12309_v54  ;;  %v1983_v12 = vmax.f32 %v1967_v6, 0.0 }
 0x28a   : > { %v1982_v10 = vmax.f32 %v1966_v9, 0.0  ;;  %v9217_v11 = vpop.f32.mrb[16].mxu0  ;;  %10583 = vmatpush3.bf16.msra.mxu1 %v10580_v29  ;;  %9414 = vmatprep.mubr.msk.f32.mxu0 %vm1996_vm1, %v12315_v59 }
 0x28b   : > { %v1969_v13 = vadd.f32 %v9217_v11, %v1928_v34  ;;  %v1809_v14 = vpop.f32.mrb[17].mxu0  ;;  %10585 = vmatprep.subr.bf16.mxu1 %v10584_v8 }
 0x28c   : > { %v1968_v15 = vadd.f32 %v1923_v35, %v1809_v14  ;;  %9244 = vmatprep.mubr.msk.f32.mxu1 %vm1996_vm1, %v1982_v10 }
 0x28d   : > { %9245 = vmatmul.mubr.msk.f32.gmra.mrb[18].mxu1 %vm1996_vm1, %v1983_v12  ;;  %9415 = vmatmul.mubr.msk.f32.gmra.mrb[30].mxu0 %vm1996_vm1, %v12317_v61  ;;  %v1985_v18 = vmax.f32 %v1969_v13, 0.0 }
 0x28e   : > { %v1984_v16 = vmax.f32 %v1968_v15, 0.0  ;;  %v9220_v17 = vpop.f32.mrb[18].mxu0  ;;  %9417 = vmatprep.mubr.msk.f32.mxu0 %vm1996_vm1, %v12329_v3  ;;  %10587 = vmatpush3.bf16.msra.mxu1 %v10584_v8 }
 0x28f   : > { %v1971_v19 = vadd.f32 %v9220_v17, %v12289_v36  ;;  %v1819_v20 = vpop.f32.mrb[19].mxu0  ;;  %v7801_v36 = vld [vmem:[%s13858_s26 + $0x80] sm:$0xff] }
 0x290   : > { %v1970_v21 = vadd.f32 %v12291_v37, %v1819_v20  ;;  %9247 = vmatprep.mubr.msk.f32.mxu1 %vm1996_vm1, %v1984_v16  ;;  %v3119_v17 = vld [vmem:[%s13859_s29] sm:$0xff] }
 0x291   : > { %9248 = vmatmul.mubr.msk.f32.gmra.mrb[20].mxu1 %vm1996_vm1, %v1985_v18  ;;  %9418 = vmatmul.mubr.msk.f32.gmra.mrb[32].mxu0 %vm1996_vm1, %v12333_v5  ;;  %v1987_v24 = vmax.f32 %v1971_v19, 0.0 }
 0x292   : > { %v1986_v22 = vmax.f32 %v1970_v21, 0.0  ;;  %v9223_v23 = vpop.f32.mrb[20].mxu0  ;;  %9420 = vmatprep.mubr.msk.f32.mxu0 %vm1996_vm1, %v1982_v10 }
 0x293   : > { %v1973_v25 = vadd.f32 %v9223_v23, %v12293_v38  ;;  %v1829_v26 = vpop.f32.mrb[21].mxu0 }
 0x294   : > { %v1972_v27 = vadd.f32 %v12295_v39, %v1829_v26  ;;  %9250 = vmatprep.mubr.msk.f32.mxu1 %vm1996_vm1, %v1986_v22 }
 0x295   : > { %9251 = vmatmul.mubr.msk.f32.gmra.mrb[22].mxu1 %vm1996_vm1, %v1987_v24  ;;  %9421 = vmatmul.mubr.msk.f32.gmra.mrb[34].mxu0 %vm1996_vm1, %v1983_v12  ;;  %v1989_v30 = vmax.f32 %v1973_v25, 0.0 }
 0x296   : > { %v1988_v28 = vmax.f32 %v1972_v27, 0.0  ;;  %v9226_v29 = vpop.f32.mrb[22].mxu0  ;;  %9423 = vmatprep.mubr.msk.f32.mxu0 %vm1996_vm1, %v1984_v16 }
 0x297   : > { %v1975_v31 = vadd.f32 %v9226_v29, %v12297_v40  ;;  %v1839_v32 = vpop.f32.mrb[23].mxu0 }
 0x298   : > { %v1974_v33 = vadd.f32 %v12299_v41, %v1839_v32  ;;  %9253 = vmatprep.mubr.msk.f32.mxu1 %vm1996_vm1, %v1988_v28 }
 0x299   : > { %9254 = vmatmul.mubr.msk.f32.gmra.mrb[24].mxu1 %vm1996_vm1, %v1989_v30  ;;  %9424 = vmatmul.mubr.msk.f32.gmra.mrb[36].mxu0 %vm1996_vm1, %v1985_v18  ;;  %v1991_v35 = vmax.f32 %v1975_v31, 0.0 }
 0x29a   : > { %v1990_v34 = vmax.f32 %v1974_v33, 0.0  ;;  %9426 = vmatprep.mubr.msk.f32.mxu0 %vm1996_vm1, %v1986_v22 }
 0x29c   : > { %9256 = vmatprep.mubr.msk.f32.mxu1 %vm1996_vm1, %v1990_v34 }
 0x29d   : > { %9257 = vmatmul.mubr.msk.f32.gmra.mrb[26].mxu1 %vm1996_vm1, %v1991_v35  ;;  %9427 = vmatmul.mubr.msk.f32.gmra.mrb[38].mxu0 %vm1996_vm1, %v1987_v24 }
 0x29e   : > { %9267 = vmatprep.mubr.msk.f32.mxu1 %vm1996_vm1, %v12307_v51  ;;  %9429 = vmatprep.mubr.msk.f32.mxu0 %vm1996_vm1, %v1988_v28 }
 0x2a1   : > { %9268 = vmatmul.mubr.msk.f32.vlgmr.msra.gmra.mrb[28].mxu1 %vm1996_vm1, %v12309_v54  ;;  %9430 = vmatmul.mubr.msk.f32.gmra.mrb[40].mxu0 %vm1996_vm1, %v1989_v30 }
 0x2a2   : > { %9270 = vmatprep.mubr.msk.f32.mxu1 %vm1996_vm1, %v12315_v59  ;;  %9432 = vmatprep.mubr.msk.f32.mxu0 %vm1996_vm1, %v1990_v34 }
 0x2a5   : > { %9271 = vmatmul.mubr.msk.f32.gmra.mrb[30].mxu1 %vm1996_vm1, %v12317_v61  ;;  %9433 = vmatmul.mubr.msk.f32.gmra.mrb[42].mxu0 %vm1996_vm1, %v1991_v35 }
 0x2a6   : > { %9273 = vmatprep.mubr.msk.f32.mxu1 %vm1996_vm1, %v12329_v3 }
 0x2a9   : > { %9274 = vmatmul.mubr.msk.f32.gmra.mrb[32].mxu1 %vm1996_vm1, %v12333_v5 }
 0x2aa   : > { %9276 = vmatprep.mubr.msk.f32.mxu1 %vm1996_vm1, %v1982_v10 }
 0x2ad   : > { %9277 = vmatmul.mubr.msk.f32.gmra.mrb[34].mxu1 %vm1996_vm1, %v1983_v12 }
 0x2ae   : > { %9279 = vmatprep.mubr.msk.f32.mxu1 %vm1996_vm1, %v1984_v16 }
 0x2b1   : > { %9280 = vmatmul.mubr.msk.f32.gmra.mrb[36].mxu1 %vm1996_vm1, %v1985_v18  ;;  %v3120_v18 = vld [vmem:[%s13859_s29 + $0x8] sm:$0xff] }
 0x2b2   : > { %9282 = vmatprep.mubr.msk.f32.mxu1 %vm1996_vm1, %v1986_v22  ;;  %v10692_v21 = vpack.c.bf16 %v3120_v18, %v3119_v17  ;;  %v7839_v17 = vld [vmem:[%s13858_s26 + $0x110] sm:$0xff]  ;;  %v7840_v18 = vld [vmem:[%s13858_s26 + $0x118] sm:$0xff] }
 0x2b4   : > { %10693 = vmatprep.subr.bf16.mxu0 %v10692_v21 }
 0x2b5   : > { %9283 = vmatmul.mubr.msk.f32.gmra.mrb[38].mxu1 %vm1996_vm1, %v1987_v24  ;;  %10695 = vmatpush3.bf16.msra.mxu0 %v10692_v21  ;;  %v7843_v21 = vld [vmem:[%s13858_s26 + $0x130] sm:$0xff] }
 0x2b6   : > { %9285 = vmatprep.mubr.msk.f32.mxu1 %vm1996_vm1, %v1988_v28 }
 0x2b9   : > { %9286 = vmatmul.mubr.msk.f32.gmra.mrb[40].mxu1 %vm1996_vm1, %v1989_v30 }
 0x2ba   : > { %9288 = vmatprep.mubr.msk.f32.mxu1 %vm1996_vm1, %v1990_v34 }
 0x2bd   : > { %9289 = vmatmul.mubr.msk.f32.gmra.mrb[42].mxu1 %vm1996_vm1, %v1991_v35 }
 0x2be   : > { %9323 = vmatprep.mubr.f32.mxu1 %v7801_v36 }
 0x354   : > { %v9237_v37 = vpop.f32.mrb[24].mxu0 }
 0x355   : > { %v2111_v38 = vpop.f32.mrb[25].mxu0 }
 0x356   : > { %v12400_v39 = vpack.c.bf16 %v9237_v37, %v2111_v38 }
 0x358   : > { %v9240_v40 = vpop.f32.mrb[26].mxu0 }
 0x359   : > { %v2121_v41 = vpop.f32.mrb[27].mxu0 }
 0x35a   : > { %v12402_v42 = vpack.c.bf16 %v9240_v40, %v2121_v41 }
 0x35c   : > { %v9243_v43 = vpop.f32.mrb[16].mxu1  ;;  %v9413_v44 = vpop.f32.mrb[28].mxu0 }
 0x35d   : > { %v2131_v45 = vpop.f32.mrb[17].mxu1  ;;  %v2734_v46 = vpop.f32.mrb[29].mxu0 }
 0x35e   : > { %v12404_v47 = vpack.c.bf16 %v9243_v43, %v2131_v45  ;;  %v12406_v48 = vpack.c.bf16 %v9413_v44, %v2734_v46 }
 0x360   : > { %v9246_v49 = vpop.f32.mrb[18].mxu1  ;;  %v9416_v50 = vpop.f32.mrb[30].mxu0 }
 0x361   : > { %v2141_v51 = vpop.f32.mrb[19].mxu1  ;;  %v2744_v52 = vpop.f32.mrb[31].mxu0 }
 0x362   : > { %v12408_v53 = vpack.c.bf16 %v9246_v49, %v2141_v51  ;;  %v12410_v54 = vpack.c.bf16 %v9416_v50, %v2744_v52  ;;  %v7802_v52 = vld [vmem:[%s13858_s26 + $0x88] sm:$0xff] }
 0x364   : > { %v9249_v55 = vpop.f32.mrb[20].mxu1  ;;  %v9419_v56 = vpop.f32.mrb[32].mxu0 }
 0x365   : > { %v2151_v57 = vpop.f32.mrb[21].mxu1  ;;  %v2754_v58 = vpop.f32.mrb[33].mxu0 }
 0x366   : > { %v12412_v59 = vpack.c.bf16 %v9249_v55, %v2151_v57  ;;  %v12414_v60 = vpack.c.bf16 %v9419_v56, %v2754_v58  ;;  %v7803_v55 = vld [vmem:[%s13858_s26 + $0x90] sm:$0xff]  ;;  %v7804_v56 = vld [vmem:[%s13858_s26 + $0x98] sm:$0xff]  ;;  %v7805_v57 = vld [vmem:[%s13858_s26 + $0xa0] sm:$0xff] }
 0x367   : > { %v7806_v58 = vld [vmem:[%s13858_s26 + $0xa8] sm:$0xff] }
 0x368   : > { %v9252_v61 = vpop.f32.mrb[22].mxu1  ;;  %v9422_v62 = vpop.f32.mrb[34].mxu0 }
 0x369   : > { %v2161_v63 = vpop.f32.mrb[23].mxu1  ;;  %v2764_v0 = vpop.f32.mrb[35].mxu0 }
 0x36a   : > { %v12416_v1 = vpack.c.bf16 %v9252_v61, %v2161_v63  ;;  %v12418_v2 = vpack.c.bf16 %v9422_v62, %v2764_v0  ;;  %v7808_v61 = vld [vmem:[%s13858_s26 + $0xb8] sm:$0xff]  ;;  %v7810_v62 = vld [vmem:[%s13858_s26 + $0xc8] sm:$0xff] }
 0x36b   : > { %v7812_v63 = vld [vmem:[%s13858_s26 + $0xd8] sm:$0xff]  ;;  %v7814_v0 = vld [vmem:[%s13858_s26 + $0xe8] sm:$0xff] }
 0x36c   : > { %v9255_v3 = vpop.f32.mrb[24].mxu1  ;;  %v9425_v4 = vpop.f32.mrb[36].mxu0 }
 0x36d   : > { %v2171_v5 = vpop.f32.mrb[25].mxu1  ;;  %v2774_v6 = vpop.f32.mrb[37].mxu0 }
 0x36e   : > { %v12420_v7 = vpack.c.bf16 %v9255_v3, %v2171_v5  ;;  %v12422_v8 = vpack.c.bf16 %v9425_v4, %v2774_v6  ;;  %v7816_v3 = vld [vmem:[%s13858_s26 + $0xf8] sm:$0xff]  ;;  %v2191_v4 = vld [vmem:[%s13858_s26 + $0x8] sm:$0xff]  ;;  %v2192_v5 = vld [vmem:[%s13858_s26 + $0x10] sm:$0xff] }
 0x36f   : > { %v2193_v6 = vld [vmem:[%s13858_s26 + $0x18] sm:$0xff] }
 0x370   : > { %v9258_v9 = vpop.f32.mrb[26].mxu1  ;;  %v9428_v10 = vpop.f32.mrb[38].mxu0 }
 0x371   : > { %v2181_v11 = vpop.f32.mrb[27].mxu1  ;;  %v2784_v12 = vpop.f32.mrb[39].mxu0 }
 0x372   : > { %v12424_v13 = vpack.c.bf16 %v9258_v9, %v2181_v11  ;;  %v12426_v14 = vpack.c.bf16 %v9428_v10, %v2784_v12  ;;  %v2195_v9 = vld [vmem:[%s13858_s26 + $0x28] sm:$0xff]  ;;  %v2197_v10 = vld [vmem:[%s13858_s26 + $0x38] sm:$0xff] }
 0x373   : > { %v2199_v11 = vld [vmem:[%s13858_s26 + $0x48] sm:$0xff]  ;;  %v2201_v12 = vld [vmem:[%s13858_s26 + $0x58] sm:$0xff] }
 0x374   : > { %v9269_v15 = vpop.f32.mrb[28].mxu1  ;;  %v9431_v16 = vpop.f32.mrb[40].mxu0 }
 0x375   : > { %v2277_v19 = vpop.f32.mrb[29].mxu1  ;;  %v2794_v20 = vpop.f32.mrb[41].mxu0 }
 0x376   : > { %v10588_v22 = vpack.c.bf16 %v9269_v15, %v2277_v19  ;;  %v12434_v23 = vpack.c.bf16 %v9431_v16, %v2794_v20  ;;  %v2205_v15 = vld [vmem:[%s13858_s26 + $0x78] sm:$0xff]  ;;  %v7838_v16 = vld [vmem:[%s13858_s26 + $0x108] sm:$0xff]  ;;  %v7841_v19 = vld [vmem:[%s13858_s26 + $0x120] sm:$0xff] }
 0x377   : > { %v7842_v20 = vld [vmem:[%s13858_s26 + $0x128] sm:$0xff] }
 0x378   : > { %v9272_v24 = vpop.f32.mrb[30].mxu1  ;;  %10589 = vmatprep.subr.bf16.mxu1 %v10588_v22  ;;  %v9434_v25 = vpop.f32.mrb[42].mxu0 }
 0x379   : > { %v2287_v26 = vpop.f32.mrb[31].mxu1  ;;  %10591 = vmatpush3.bf16.msra.mxu1 %v10588_v22  ;;  %v2804_v27 = vpop.f32.mrb[43].mxu0  ;;  %v7844_v22 = vld [vmem:[%s13858_s26 + $0x138] sm:$0xff] }
 0x37a   : > { %v10592_v28 = vpack.c.bf16 %v9272_v24, %v2287_v26  ;;  %v12436_v29 = vpack.c.bf16 %v9434_v25, %v2804_v27  ;;  %v7846_v24 = vld [vmem:[%s13858_s26 + $0x148] sm:$0xff]  ;;  %v7847_v25 = vld [vmem:[%s13858_s26 + $0x150] sm:$0xff]  ;;  %v7848_v26 = vld [vmem:[%s13858_s26 + $0x158] sm:$0xff] }
 0x37b   : > { %v7849_v27 = vld [vmem:[%s13858_s26 + $0x160] sm:$0xff] }
 0x37c   : > { %v9275_v30 = vpop.f32.mrb[32].mxu1  ;;  %10593 = vmatprep.subr.bf16.mxu1 %v10592_v28 }
 0x37d   : > { %v2297_v31 = vpop.f32.mrb[33].mxu1  ;;  %10595 = vmatpush3.bf16.msra.mxu1 %v10592_v28  ;;  %v7850_v28 = vld [vmem:[%s13858_s26 + $0x168] sm:$0xff] }
 0x37e   : > { %v10596_v32 = vpack.c.bf16 %v9275_v30, %v2297_v31  ;;  %v7852_v30 = vld [vmem:[%s13858_s26 + $0x178] sm:$0xff]  ;;  %v7869_v31 = vld [vmem:[%s13859_s29 + $0x10] sm:$0xff] }
 0x380   : > { %v9278_v33 = vpop.f32.mrb[34].mxu1  ;;  %10597 = vmatprep.subr.bf16.mxu1 %v10596_v32 }
 0x381   : > { %v2307_v34 = vpop.f32.mrb[35].mxu1  ;;  %10599 = vmatpush3.bf16.msra.mxu1 %v10596_v32  ;;  %v7870_v32 = vld [vmem:[%s13859_s29 + $0x18] sm:$0xff] }
 0x382   : > { %v10600_v35 = vpack.c.bf16 %v9278_v33, %v2307_v34  ;;  %v10696_v33 = vpack.c.bf16 %v7870_v32, %v7869_v31  ;;  %v3015_v34 = vpop.permute.xlu1 %3014 }
 0x384   : > { %v9281_v36 = vpop.f32.mrb[36].mxu1  ;;  %10601 = vmatprep.subr.bf16.mxu1 %v10600_v35  ;;  %10697 = vmatprep.subr.bf16.mxu0 %v10696_v33 }
 0x385   : > { %v2317_v37 = vpop.f32.mrb[37].mxu1  ;;  %10603 = vmatpush3.bf16.msra.mxu1 %v10600_v35  ;;  %v3010_v35 = vpop.permute.xlu0 %3009 }
 0x386   : > { %v10604_v38 = vpack.c.bf16 %v9281_v36, %v2317_v37  ;;  %v3025_v36 = vpop.permute.xlu1 %3024 }
 0x388   : > { %v9284_v40 = vpop.f32.mrb[38].mxu1  ;;  %10605 = vmatprep.subr.bf16.mxu1 %v10604_v38 }
 0x389   : > { %v2327_v41 = vpop.f32.mrb[39].mxu1  ;;  %10607 = vmatpush3.bf16.msra.mxu1 %v10604_v38  ;;  %v3020_v37 = vpop.permute.xlu0 %3019 }
 0x38a   : > { %v10608_v43 = vpack.c.bf16 %v9284_v40, %v2327_v41  ;;  %v3035_v38 = vpop.permute.xlu1 %3034 }
 0x38c   : > { %v9287_v44 = vpop.f32.mrb[40].mxu1  ;;  %10609 = vmatprep.subr.bf16.mxu1 %v10608_v43 }
 0x38d   : > { %v2337_v45 = vpop.f32.mrb[41].mxu1  ;;  %10611 = vmatpush3.bf16.msra.mxu1 %v10608_v43  ;;  %v3030_v40 = vpop.permute.xlu0 %3029 }
 0x38e   : > { %v10612_v46 = vpack.c.bf16 %v9287_v44, %v2337_v45 }
 0x390   : > { %v9290_v49 = vpop.f32.mrb[42].mxu1  ;;  %10613 = vmatprep.subr.bf16.mxu1 %v10612_v46 }
 0x391   : > { %v2347_v50 = vpop.f32.mrb[43].mxu1  ;;  %10615 = vmatpush3.bf16.msra.mxu1 %v10612_v46  ;;  %v7903_v46 = vld [vmem:[%s13859_s29 + $0x20] sm:$0xff] }
 0x392   : > { %v10616_v51 = vpack.c.bf16 %v9290_v49, %v2347_v50  ;;  %v7904_v49 = vld [vmem:[%s13859_s29 + $0x28] sm:$0xff]  ;;  %v3045_v50 = vpop.permute.xlu1 %3044 }
 0x394   : > { %10617 = vmatprep.subr.bf16.mxu1 %v10616_v51 }
 0x395   : > { %10619 = vmatpush3.bf16.msra.mxu1 %v10616_v51 }
 0x396   : > { %10621 = vmatprep.subr.bf16.mxu1 %v12400_v39 }
 0x398   : > { %9324 = vmatmul.mubr.f32.vlgmr.msra.gmra.mrb[44].mxu1 %v7802_v52 }
 0x399   : > { %10623 = vmatpush3.bf16.msra.mxu1 %v12400_v39  ;;  %9326 = vmatprep.mubr.f32.mxu1 %v7803_v55  ;;  %v7807_v39 = vld [vmem:[%s13858_s26 + $0xb0] sm:$0xff]  ;;  %v3040_v55 = vpop.permute.xlu0 %3039 }
 0x39a   : > { %10625 = vmatprep.subr.bf16.mxu1 %v12402_v42 }
 0x39c   : > { %9327 = vmatmul.mubr.f32.gmra.mrb[46].mxu1 %v7804_v56 }
 0x39d   : > { %10627 = vmatpush3.bf16.msra.mxu1 %v12402_v42  ;;  %9329 = vmatprep.mubr.f32.mxu1 %v7805_v57  ;;  %v7809_v42 = vld [vmem:[%s13858_s26 + $0xc0] sm:$0xff] }
 0x39e   : > { %10629 = vmatprep.subr.bf16.mxu1 %v12404_v47 }
 0x3a0   : > { %9330 = vmatmul.mubr.f32.gmra.mrb[48].mxu1 %v7806_v58 }
 0x3a1   : > { %10631 = vmatpush3.bf16.msra.mxu1 %v12404_v47  ;;  %9332 = vmatprep.mubr.f32.mxu1 %v7807_v39  ;;  %v7811_v47 = vld [vmem:[%s13858_s26 + $0xd0] sm:$0xff]  ;;  %v12627_v39 = vpack.c.bf16 %v7904_v49, %v7903_v46 }
 0x3a2   : > { %10633 = vmatprep.subr.bf16.mxu1 %v12408_v53 }
 0x3a4   : > { %9333 = vmatmul.mubr.f32.gmra.mrb[50].mxu1 %v7808_v61 }
 0x3a5   : > { %10635 = vmatpush3.bf16.msra.mxu1 %v12408_v53  ;;  %9335 = vmatprep.mubr.f32.mxu1 %v7809_v42  ;;  %v7813_v53 = vld [vmem:[%s13858_s26 + $0xe0] sm:$0xff] }
 0x3a6   : > { %10637 = vmatprep.subr.bf16.mxu1 %v12412_v59 }
 0x3a8   : > { %9336 = vmatmul.mubr.f32.gmra.mrb[52].mxu1 %v7810_v62 }
 0x3a9   : > { %10639 = vmatpush3.bf16.msra.mxu1 %v12412_v59  ;;  %9338 = vmatprep.mubr.f32.mxu1 %v7811_v47  ;;  %v7815_v59 = vld [vmem:[%s13858_s26 + $0xf0] sm:$0xff] }
 0x3aa   : > { %10641 = vmatprep.subr.bf16.mxu1 %v12416_v1 }
 0x3ac   : > { %9339 = vmatmul.mubr.f32.gmra.mrb[54].mxu1 %v7812_v63 }
 0x3ad   : > { %10643 = vmatpush3.bf16.msra.mxu1 %v12416_v1  ;;  %9341 = vmatprep.mubr.f32.mxu1 %v7813_v53  ;;  %v2190_v1 = vld [vmem:[%s13858_s26] sm:$0xff] }
 0x3ae   : > { %10645 = vmatprep.subr.bf16.mxu1 %v12420_v7 }
 0x3b0   : > { %9342 = vmatmul.mubr.f32.gmra.mrb[56].mxu1 %v7814_v0  ;;  %v3055_v0 = vpop.permute.xlu1 %3054 }
 0x3b1   : > { %10647 = vmatpush3.bf16.msra.mxu1 %v12420_v7  ;;  %9344 = vmatprep.mubr.f32.mxu1 %v7815_v59  ;;  %v2194_v7 = vld [vmem:[%s13858_s26 + $0x20] sm:$0xff] }
 0x3b2   : > { %10649 = vmatprep.subr.bf16.mxu1 %v12424_v13 }
 0x3b4   : > { %9345 = vmatmul.mubr.f32.gmra.mrb[58].mxu1 %v7816_v3  ;;  %v3050_v3 = vpop.permute.xlu0 %3049 }
 0x3b5   : > { %10651 = vmatpush3.bf16.msra.mxu1 %v12424_v13  ;;  %9379 = vmatprep.mubr.f32.mxu1 %v2190_v1  ;;  %v2203_v13 = vld [vmem:[%s13858_s26 + $0x68] sm:$0xff] }
 0x3b6   : > { %10661 = vmatprep.subr.bf16.mxu1 %v12406_v48 }
 0x3b8   : > { %9380 = vmatmul.mubr.f32.vlgmr.msra.gmra.mrb[44].mxu1 %v2191_v4 }
 0x3b9   : > { %10663 = vmatpush3.bf16.msra.mxu1 %v12406_v48  ;;  %9382 = vmatprep.mubr.f32.mxu1 %v2192_v5  ;;  %v2196_v48 = vld [vmem:[%s13858_s26 + $0x30] sm:$0xff] }
 0x3ba   : > { %10665 = vmatprep.subr.bf16.mxu1 %v12410_v54 }
 0x3bc   : > { %9383 = vmatmul.mubr.f32.gmra.mrb[46].mxu1 %v2193_v6 }
 0x3bd   : > { %10667 = vmatpush3.bf16.msra.mxu1 %v12410_v54  ;;  %9385 = vmatprep.mubr.f32.mxu1 %v2194_v7  ;;  %v2198_v54 = vld [vmem:[%s13858_s26 + $0x40] sm:$0xff] }
 0x3be   : > { %10669 = vmatprep.subr.bf16.mxu1 %v12414_v60 }
 0x3c0   : > { %9386 = vmatmul.mubr.f32.gmra.mrb[48].mxu1 %v2195_v9 }
 0x3c1   : > { %10671 = vmatpush3.bf16.msra.mxu1 %v12414_v60  ;;  %9388 = vmatprep.mubr.f32.mxu1 %v2196_v48  ;;  %v2200_v60 = vld [vmem:[%s13858_s26 + $0x50] sm:$0xff]  ;;  %v3065_v48 = vpop.permute.xlu1 %3064 }
 0x3c2   : > { %10673 = vmatprep.subr.bf16.mxu1 %v12418_v2 }
 0x3c4   : > { %9389 = vmatmul.mubr.f32.gmra.mrb[50].mxu1 %v2197_v10 }
 0x3c5   : > { %10675 = vmatpush3.bf16.msra.mxu1 %v12418_v2  ;;  %9391 = vmatprep.mubr.f32.mxu1 %v2198_v54  ;;  %v2202_v2 = vld [vmem:[%s13858_s26 + $0x60] sm:$0xff] }
 0x3c6   : > { %10677 = vmatprep.subr.bf16.mxu1 %v12422_v8 }
 0x3c8   : > { %9392 = vmatmul.mubr.f32.gmra.mrb[52].mxu1 %v2199_v11  ;;  %v3060_v11 = vpop.permute.xlu0 %3059 }
 0x3c9   : > { %10679 = vmatpush3.bf16.msra.mxu1 %v12422_v8  ;;  %9394 = vmatprep.mubr.f32.mxu1 %v2200_v60  ;;  %v2204_v8 = vld [vmem:[%s13858_s26 + $0x70] sm:$0xff] }
 0x3ca   : > { %10681 = vmatprep.subr.bf16.mxu1 %v12426_v14 }
 0x3cc   : > { %9395 = vmatmul.mubr.f32.gmra.mrb[54].mxu1 %v2201_v12 }
 0x3cd   : > { %10683 = vmatpush3.bf16.msra.mxu1 %v12426_v14  ;;  %9397 = vmatprep.mubr.f32.mxu1 %v2202_v2  ;;  %v7837_v14 = vld [vmem:[%s13858_s26 + $0x100] sm:$0xff] }
 0x3ce   : > { %10685 = vmatprep.subr.bf16.mxu1 %v12434_v23 }
 0x3d0   : > { %9398 = vmatmul.mubr.f32.gmra.mrb[56].mxu1 %v2203_v13 }
 0x3d1   : > { %10687 = vmatpush3.bf16.msra.mxu1 %v12434_v23  ;;  %9400 = vmatprep.mubr.f32.mxu1 %v2204_v8  ;;  %v7845_v23 = vld [vmem:[%s13858_s26 + $0x140] sm:$0xff] }
 0x3d2   : > { %10689 = vmatprep.subr.bf16.mxu1 %v12436_v29 }
 0x3d4   : > { %9401 = vmatmul.mubr.f32.gmra.mrb[58].mxu1 %v2205_v15 }
 0x3d5   : > { %10691 = vmatpush3.bf16.msra.mxu1 %v12436_v29  ;;  %9467 = vmatprep.mubr.f32.mxu1 %v7837_v14  ;;  %v7851_v29 = vld [vmem:[%s13858_s26 + $0x170] sm:$0xff] }
 0x3d8   : > { %9468 = vmatmul.mubr.f32.vlgmr.msra.gmra.mrb[44].mxu1 %v7838_v16 }
 0x3d9   : > { %9470 = vmatprep.mubr.f32.mxu1 %v7839_v17 }
 0x3dc   : > { %9471 = vmatmul.mubr.f32.gmra.mrb[46].mxu1 %v7840_v18  ;;  %v3075_v18 = vpop.permute.xlu1 %3074 }
 0x3dd   : > { %9473 = vmatprep.mubr.f32.mxu1 %v7841_v19 }
 0x3e0   : > { %9474 = vmatmul.mubr.f32.gmra.mrb[48].mxu1 %v7842_v20  ;;  %v3070_v20 = vpop.permute.xlu0 %3069 }
 0x3e1   : > { %9476 = vmatprep.mubr.f32.mxu1 %v7843_v21 }
 0x3e4   : > { %9477 = vmatmul.mubr.f32.gmra.mrb[50].mxu1 %v7844_v22 }
 0x3e5   : > { %9479 = vmatprep.mubr.f32.mxu1 %v7845_v23 }
 0x3e8   : > { %9480 = vmatmul.mubr.f32.gmra.mrb[52].mxu1 %v7846_v24 }
 0x3e9   : > { %9482 = vmatprep.mubr.f32.mxu1 %v7847_v25 }
 0x3ec   : > { %9483 = vmatmul.mubr.f32.gmra.mrb[54].mxu1 %v7848_v26 }
 0x3ed   : > { %9485 = vmatprep.mubr.f32.mxu1 %v7849_v27  ;;  %v3085_v27 = vpop.permute.xlu1 %3084 }
 0x3f0   : > { %9486 = vmatmul.mubr.f32.gmra.mrb[56].mxu1 %v7850_v28 }
 0x3f1   : > { %9488 = vmatprep.mubr.f32.mxu1 %v7851_v29 }
 0x3f4   : > { %9489 = vmatmul.mubr.f32.gmra.mrb[58].mxu1 %v7852_v30  ;;  %v3080_v30 = vpop.permute.xlu0 %3079 }
 0x4ab   : > { %v9469_v41 = vpop.f32.mrb[44].mxu1 }
 0x4ac   : > { %v3088_v43 = vadd.f32 %v9469_v41, %v3015_v34  ;;  %v2896_v44 = vpop.f32.mrb[45].mxu1 }
 0x4ad   : > { %v3087_v45 = vadd.f32 %v3010_v35, %v2896_v44 }
 0x4ae   : > { %v12625_v56 = vmax.f32 %v3088_v43, 0.0 }
 0x4af   : > { %v12623_v51 = vmax.f32 %v3087_v45, 0.0  ;;  %v9472_v52 = vpop.f32.mrb[46].mxu1 }
 0x4b0   : > { %v3090_v57 = vadd.f32 %v9472_v52, %v3025_v36  ;;  %v2906_v58 = vpop.f32.mrb[47].mxu1 }
 0x4b1   : > { %v3089_v61 = vadd.f32 %v3020_v37, %v2906_v58  ;;  %9495 = vmatprep.mubr.msk.f32.mxu0 %vm3121_vm2, %v12623_v51  ;;  %v7887_v37 = vld [vmem:[%s13860_s4 + $0x80] sm:$0xff] }
 0x4b2   : > { %9496 = vmatmul.mubr.msk.f32.vlgmr.msra.gmra.mrb[44].mxu0 %vm3121_vm2, %v12625_v56  ;;  %v12635_v47 = vmax.f32 %v3090_v57, 0.0  ;;  %9579 = vmatprep.mubr.f32.mxu1 %v7887_v37  ;;  %v7893_v37 = vld [vmem:[%s13860_s4 + $0xb0] sm:$0xff] }
 0x4b3   : > { %v12633_v42 = vmax.f32 %v3089_v61, 0.0  ;;  %v9475_v62 = vpop.f32.mrb[48].mxu1  ;;  %10699 = vmatpush3.bf16.msra.mxu0 %v10696_v33 }
 0x4b4   : > { %v3092_v63 = vadd.f32 %v9475_v62, %v3035_v38  ;;  %v2916_v53 = vpop.f32.mrb[49].mxu1  ;;  %10765 = vmatprep.subr.bf16.mxu0 %v12627_v39 }
 0x4b5   : > { %v3091_v59 = vadd.f32 %v3030_v40, %v2916_v53  ;;  %9498 = vmatprep.mubr.msk.f32.mxu0 %vm3121_vm2, %v12633_v42 }
 0x4b6   : > { %9499 = vmatmul.mubr.msk.f32.gmra.mrb[46].mxu0 %vm3121_vm2, %v12635_v47  ;;  %v12644_v5 = vmax.f32 %v3092_v63, 0.0 }
 0x4b7   : > { %v12642_v1 = vmax.f32 %v3091_v59, 0.0  ;;  %v9478_v4 = vpop.f32.mrb[50].mxu1 }
 0x4b8   : > { %v3094_v6 = vadd.f32 %v9478_v4, %v3045_v50  ;;  %v2926_v7 = vpop.f32.mrb[51].mxu1 }
 0x4b9   : > { %v3093_v9 = vadd.f32 %v3040_v55, %v2926_v7  ;;  %9501 = vmatprep.mubr.msk.f32.mxu0 %vm3121_vm2, %v12642_v1 }
 0x4ba   : > { %9502 = vmatmul.mubr.msk.f32.gmra.mrb[48].mxu0 %vm3121_vm2, %v12644_v5  ;;  %v3110_v60 = vmax.f32 %v3094_v6, 0.0 }
 0x4bb   : > { %v12650_v10 = vmax.f32 %v3093_v9, 0.0  ;;  %v9481_v54 = vpop.f32.mrb[52].mxu1 }
 0x4bc   : > { %v3096_v12 = vadd.f32 %v9481_v54, %v3055_v0  ;;  %v2936_v2 = vpop.f32.mrb[53].mxu1 }
 0x4bd   : > { %v3095_v13 = vadd.f32 %v3050_v3, %v2936_v2  ;;  %9504 = vmatprep.mubr.msk.f32.mxu0 %vm3121_vm2, %v12650_v10 }
 0x4be   : > { %9505 = vmatmul.mubr.msk.f32.gmra.mrb[50].mxu0 %vm3121_vm2, %v3110_v60  ;;  %v3112_v14 = vmax.f32 %v3096_v12, 0.0 }
 0x4bf   : > { %v3111_v8 = vmax.f32 %v3095_v13, 0.0  ;;  %v9484_v15 = vpop.f32.mrb[54].mxu1 }
 0x4c0   : > { %v3098_v16 = vadd.f32 %v9484_v15, %v3065_v48  ;;  %v2946_v17 = vpop.f32.mrb[55].mxu1 }
 0x4c1   : > { %v3097_v19 = vadd.f32 %v3060_v11, %v2946_v17  ;;  %9507 = vmatprep.mubr.msk.f32.mxu0 %vm3121_vm2, %v3111_v8 }
 0x4c2   : > { %9508 = vmatmul.mubr.msk.f32.gmra.mrb[52].mxu0 %vm3121_vm2, %v3112_v14  ;;  %v3114_v23 = vmax.f32 %v3098_v16, 0.0 }
 0x4c3   : > { %v3113_v21 = vmax.f32 %v3097_v19, 0.0  ;;  %v9487_v22 = vpop.f32.mrb[56].mxu1 }
 0x4c4   : > { %v3100_v24 = vadd.f32 %v9487_v22, %v3075_v18  ;;  %v2956_v25 = vpop.f32.mrb[57].mxu1 }
 0x4c5   : > { %v3099_v26 = vadd.f32 %v3070_v20, %v2956_v25  ;;  %9510 = vmatprep.mubr.msk.f32.mxu0 %vm3121_vm2, %v3113_v21  ;;  %v7888_v25 = vld [vmem:[%s13860_s4 + $0x88] sm:$0xff] }
 0x4c6   : > { %9511 = vmatmul.mubr.msk.f32.gmra.mrb[54].mxu0 %vm3121_vm2, %v3114_v23  ;;  %v3116_v31 = vmax.f32 %v3100_v24, 0.0 }
 0x4c7   : > { %v3115_v28 = vmax.f32 %v3099_v26, 0.0  ;;  %v9490_v29 = vpop.f32.mrb[58].mxu1 }
 0x4c8   : > { %v3102_v32 = vadd.f32 %v9490_v29, %v3085_v27  ;;  %v2966_v33 = vpop.f32.mrb[59].mxu1  ;;  %v7889_v27 = vld [vmem:[%s13860_s4 + $0x90] sm:$0xff] }
 0x4c9   : > { %v3101_v34 = vadd.f32 %v3080_v30, %v2966_v33  ;;  %9513 = vmatprep.mubr.msk.f32.mxu0 %vm3121_vm2, %v3115_v28  ;;  %v7890_v30 = vld [vmem:[%s13860_s4 + $0x98] sm:$0xff] }
 0x4ca   : > { %9514 = vmatmul.mubr.msk.f32.gmra.mrb[56].mxu0 %vm3121_vm2, %v3116_v31  ;;  %v3118_v36 = vmax.f32 %v3102_v32, 0.0  ;;  %v7891_v32 = vld [vmem:[%s13860_s4 + $0xa0] sm:$0xff] }
 0x4cb   : > { %v3117_v35 = vmax.f32 %v3101_v34, 0.0 }
 0x4cd   : > { %9516 = vmatprep.mubr.msk.f32.mxu0 %vm3121_vm2, %v3117_v35 }
 0x4ce   : > { %9517 = vmatmul.mubr.msk.f32.gmra.mrb[58].mxu0 %vm3121_vm2, %v3118_v36 }
 0x4cf   : > { %9523 = vmatprep.mubr.msk.f32.mxu0 %vm3121_vm2, %v12623_v51 }
 0x4d2   : > { %9524 = vmatmul.mubr.msk.f32.vlgmr.msra.gmra.mrb[60].mxu0 %vm3121_vm2, %v12625_v56 }
 0x4d3   : > { %9526 = vmatprep.mubr.msk.f32.mxu0 %vm3121_vm2, %v12633_v42  ;;  %10767 = vmatpush3.bf16.msra.mxu0 %v12627_v39 }
 0x4d6   : > { %9527 = vmatmul.mubr.msk.f32.gmra.mrb[62].mxu0 %vm3121_vm2, %v12635_v47 }
 0x4d7   : > { %9529 = vmatprep.mubr.msk.f32.mxu0 %vm3121_vm2, %v12642_v1 }
 0x4da   : > { %9530 = vmatmul.mubr.msk.f32.gmra.mrb[64].mxu0 %vm3121_vm2, %v12644_v5 }
 0x4db   : > { %9532 = vmatprep.mubr.msk.f32.mxu0 %vm3121_vm2, %v12650_v10 }
 0x4de   : > { %9533 = vmatmul.mubr.msk.f32.gmra.mrb[66].mxu0 %vm3121_vm2, %v3110_v60 }
 0x4df   : > { %9535 = vmatprep.mubr.msk.f32.mxu0 %vm3121_vm2, %v3111_v8 }
 0x4e2   : > { %9536 = vmatmul.mubr.msk.f32.gmra.mrb[68].mxu0 %vm3121_vm2, %v3112_v14 }
 0x4e3   : > { %9538 = vmatprep.mubr.msk.f32.mxu0 %vm3121_vm2, %v3113_v21 }
 0x4e6   : > { %9539 = vmatmul.mubr.msk.f32.gmra.mrb[70].mxu0 %vm3121_vm2, %v3114_v23 }
 0x4e7   : > { %9541 = vmatprep.mubr.msk.f32.mxu0 %vm3121_vm2, %v3115_v28 }
 0x4ea   : > { %9542 = vmatmul.mubr.msk.f32.gmra.mrb[72].mxu0 %vm3121_vm2, %v3116_v31 }
 0x4eb   : > { %9544 = vmatprep.mubr.msk.f32.mxu0 %vm3121_vm2, %v3117_v35 }
 0x4ee   : > { %9545 = vmatmul.mubr.msk.f32.gmra.mrb[74].mxu0 %vm3121_vm2, %v3118_v36 }
 0x4ef   : > { %9663 = vmatprep.mubr.msk.f32.mxu0 %vm3121_vm2, %v12623_v51 }
 0x4f2   : > { %9664 = vmatmul.mubr.msk.f32.vlgmr.msra.gmra.mrb[76].mxu0 %vm3121_vm2, %v12625_v56 }
 0x4f3   : > { %9666 = vmatprep.mubr.msk.f32.mxu0 %vm3121_vm2, %v12633_v42 }
 0x4f6   : > { %9667 = vmatmul.mubr.msk.f32.gmra.mrb[78].mxu0 %vm3121_vm2, %v12635_v47 }
 0x4f7   : > { %9669 = vmatprep.mubr.msk.f32.mxu0 %vm3121_vm2, %v12642_v1  ;;  %v4240_v1 = vld [vmem:[%s13796_s11] sm:$0xff] }
 0x4f8   : > { %9743 = vmatprep.subr.mxu0 %v4240_v1 }
 0x4f9   : > { %9744 = vmatpush3.msra.mxu0 %v4240_v1 }
 0x4fa   : > { %9670 = vmatmul.mubr.msk.f32.gmra.mrb[80].mxu0 %vm3121_vm2, %v12644_v5 }
 0x4fb   : > { %9672 = vmatprep.mubr.msk.f32.mxu0 %vm3121_vm2, %v12650_v10 }
 0x4fe   : > { %9673 = vmatmul.mubr.msk.f32.gmra.mrb[82].mxu0 %vm3121_vm2, %v3110_v60 }
 0x4ff   : > { %9675 = vmatprep.mubr.msk.f32.mxu0 %vm3121_vm2, %v3111_v8 }
 0x502   : > { %9676 = vmatmul.mubr.msk.f32.gmra.mrb[84].mxu0 %vm3121_vm2, %v3112_v14 }
 0x503   : > { %9678 = vmatprep.mubr.msk.f32.mxu0 %vm3121_vm2, %v3113_v21 }
 0x506   : > { %9679 = vmatmul.mubr.msk.f32.gmra.mrb[86].mxu0 %vm3121_vm2, %v3114_v23 }
 0x507   : > { %9681 = vmatprep.mubr.msk.f32.mxu0 %vm3121_vm2, %v3115_v28 }
 0x50a   : > { %9682 = vmatmul.mubr.msk.f32.gmra.mrb[88].mxu0 %vm3121_vm2, %v3116_v31 }
 0x50b   : > { %9684 = vmatprep.mubr.msk.f32.mxu0 %vm3121_vm2, %v3117_v35  ;;  %v7892_v35 = vld [vmem:[%s13860_s4 + $0xa8] sm:$0xff] }
 0x50e   : > { %9685 = vmatmul.mubr.msk.f32.gmra.mrb[90].mxu0 %vm3121_vm2, %v3118_v36 }
 0x585   : > { %v9497_v38 = vpop.f32.mrb[44].mxu0 }
 0x586   : > { %v3236_v40 = vpop.f32.mrb[45].mxu0 }
 0x587   : > { %v12713_v41 = vpack.c.bf16 %v9497_v38, %v3236_v40 }
 0x589   : > { %v9500_v43 = vpop.f32.mrb[46].mxu0 }
 0x58a   : > { %v3246_v44 = vpop.f32.mrb[47].mxu0 }
 0x58b   : > { %v12715_v45 = vpack.c.bf16 %v9500_v43, %v3246_v44  ;;  %v7895_v44 = vld [vmem:[%s13860_s4 + $0xc0] sm:$0xff] }
 0x58d   : > { %v9503_v46 = vpop.f32.mrb[48].mxu0 }
 0x58e   : > { %v3256_v49 = vpop.f32.mrb[49].mxu0 }
 0x58f   : > { %v12717_v50 = vpack.c.bf16 %v9503_v46, %v3256_v49  ;;  %v7896_v49 = vld [vmem:[%s13860_s4 + $0xc8] sm:$0xff] }
 0x591   : > { %v9506_v51 = vpop.f32.mrb[50].mxu0 }
 0x592   : > { %v3266_v52 = vpop.f32.mrb[51].mxu0 }
 0x593   : > { %v12719_v55 = vpack.c.bf16 %v9506_v51, %v3266_v52  ;;  %v7897_v51 = vld [vmem:[%s13860_s4 + $0xd0] sm:$0xff] }
 0x595   : > { %v9509_v56 = vpop.f32.mrb[52].mxu0 }
 0x596   : > { %v3276_v57 = vpop.f32.mrb[53].mxu0 }
 0x597   : > { %v12721_v58 = vpack.c.bf16 %v9509_v56, %v3276_v57 }
 0x599   : > { %v9512_v39 = vpop.f32.mrb[54].mxu0 }
 0x59a   : > { %v3286_v61 = vpop.f32.mrb[55].mxu0 }
 0x59b   : > { %v12723_v42 = vpack.c.bf16 %v9512_v39, %v3286_v61  ;;  %v7899_v39 = vld [vmem:[%s13860_s4 + $0xe0] sm:$0xff] }
 0x59d   : > { %v9515_v62 = vpop.f32.mrb[56].mxu0 }
 0x59e   : > { %v3296_v47 = vpop.f32.mrb[57].mxu0 }
 0x59f   : > { %v12725_v63 = vpack.c.bf16 %v9515_v62, %v3296_v47 }
 0x5a1   : > { %v9518_v53 = vpop.f32.mrb[58].mxu0 }
 0x5a2   : > { %v3306_v0 = vpop.f32.mrb[59].mxu0 }
 0x5a3   : > { %v12727_v59 = vpack.c.bf16 %v9518_v53, %v3306_v0  ;;  %v7901_v53 = vld [vmem:[%s13860_s4 + $0xf0] sm:$0xff] }
 0x5a5   : > { %v9525_v3 = vpop.f32.mrb[60].mxu0 }
 0x5a6   : > { %v3400_v4 = vpop.f32.mrb[61].mxu0 }
 0x5a7   : > { %v10700_v5 = vpack.c.bf16 %v9525_v3, %v3400_v4  ;;  %v3315_v4 = vld [vmem:[%s13860_s4] sm:$0xff] }
 0x5a9   : > { %v9528_v6 = vpop.f32.mrb[62].mxu0  ;;  %10701 = vmatprep.subr.bf16.mxu1 %v10700_v5 }
 0x5aa   : > { %v3410_v7 = vpop.f32.mrb[63].mxu0  ;;  %10703 = vmatpush3.bf16.msra.mxu1 %v10700_v5  ;;  %v3317_v5 = vld [vmem:[%s13860_s4 + $0x10] sm:$0xff] }
 0x5ab   : > { %v10704_v9 = vpack.c.bf16 %v9528_v6, %v3410_v7  ;;  %v3318_v6 = vld [vmem:[%s13860_s4 + $0x18] sm:$0xff]  ;;  %v3320_v7 = vld [vmem:[%s13860_s4 + $0x28] sm:$0xff] }
 0x5ad   : > { %v9531_v48 = vpop.f32.mrb[64].mxu0  ;;  %10705 = vmatprep.subr.bf16.mxu1 %v10704_v9 }
 0x5ae   : > { %v3420_v10 = vpop.f32.mrb[65].mxu0  ;;  %10707 = vmatpush3.bf16.msra.mxu1 %v10704_v9  ;;  %v3321_v9 = vld [vmem:[%s13860_s4 + $0x30] sm:$0xff] }
 0x5af   : > { %v10708_v54 = vpack.c.bf16 %v9531_v48, %v3420_v10  ;;  %v3322_v48 = vld [vmem:[%s13860_s4 + $0x38] sm:$0xff]  ;;  %v3323_v10 = vld [vmem:[%s13860_s4 + $0x40] sm:$0xff] }
 0x5b1   : > { %v9534_v11 = vpop.f32.mrb[66].mxu0  ;;  %10709 = vmatprep.subr.bf16.mxu1 %v10708_v54 }
 0x5b2   : > { %v3430_v60 = vpop.f32.mrb[67].mxu0  ;;  %10711 = vmatpush3.bf16.msra.mxu1 %v10708_v54  ;;  %v3324_v54 = vld [vmem:[%s13860_s4 + $0x48] sm:$0xff] }
 0x5b3   : > { %v10712_v12 = vpack.c.bf16 %v9534_v11, %v3430_v60  ;;  %v3325_v11 = vld [vmem:[%s13860_s4 + $0x50] sm:$0xff]  ;;  %v3326_v60 = vld [vmem:[%s13860_s4 + $0x58] sm:$0xff] }
 0x5b5   : > { %v9537_v2 = vpop.f32.mrb[68].mxu0  ;;  %10713 = vmatprep.subr.bf16.mxu1 %v10712_v12 }
 0x5b6   : > { %v3440_v13 = vpop.f32.mrb[69].mxu0  ;;  %10715 = vmatpush3.bf16.msra.mxu1 %v10712_v12  ;;  %v3327_v12 = vld [vmem:[%s13860_s4 + $0x60] sm:$0xff] }
 0x5b7   : > { %v10716_v8 = vpack.c.bf16 %v9537_v2, %v3440_v13  ;;  %v3328_v2 = vld [vmem:[%s13860_s4 + $0x68] sm:$0xff]  ;;  %v3329_v13 = vld [vmem:[%s13860_s4 + $0x70] sm:$0xff] }
 0x5b9   : > { %v9540_v15 = vpop.f32.mrb[70].mxu0  ;;  %10717 = vmatprep.subr.bf16.mxu1 %v10716_v8 }
 0x5ba   : > { %v3450_v14 = vpop.f32.mrb[71].mxu0  ;;  %10719 = vmatpush3.bf16.msra.mxu1 %v10716_v8  ;;  %v3330_v8 = vld [vmem:[%s13860_s4 + $0x78] sm:$0xff] }
 0x5bb   : > { %v10720_v16 = vpack.c.bf16 %v9540_v15, %v3450_v14  ;;  %v7921_v15 = vld [vmem:[%s13860_s4 + $0x100] sm:$0xff]  ;;  %v7922_v14 = vld [vmem:[%s13860_s4 + $0x108] sm:$0xff] }
 0x5bd   : > { %v9543_v17 = vpop.f32.mrb[72].mxu0  ;;  %10721 = vmatprep.subr.bf16.mxu1 %v10720_v16 }
 0x5be   : > { %v3460_v18 = vpop.f32.mrb[73].mxu0  ;;  %10723 = vmatpush3.bf16.msra.mxu1 %v10720_v16  ;;  %v7923_v16 = vld [vmem:[%s13860_s4 + $0x110] sm:$0xff] }
 0x5bf   : > { %v10724_v19 = vpack.c.bf16 %v9543_v17, %v3460_v18  ;;  %v7924_v17 = vld [vmem:[%s13860_s4 + $0x118] sm:$0xff]  ;;  %v7925_v18 = vld [vmem:[%s13860_s4 + $0x120] sm:$0xff] }
 0x5c1   : > { %v9546_v20 = vpop.f32.mrb[74].mxu0  ;;  %10725 = vmatprep.subr.bf16.mxu1 %v10724_v19 }
 0x5c2   : > { %v3470_v21 = vpop.f32.mrb[75].mxu0  ;;  %10727 = vmatpush3.bf16.msra.mxu1 %v10724_v19  ;;  %v7926_v19 = vld [vmem:[%s13860_s4 + $0x128] sm:$0xff] }
 0x5c3   : > { %v10728_v22 = vpack.c.bf16 %v9546_v20, %v3470_v21  ;;  %v7927_v20 = vld [vmem:[%s13860_s4 + $0x130] sm:$0xff]  ;;  %v7928_v21 = vld [vmem:[%s13860_s4 + $0x138] sm:$0xff] }
 0x5c5   : > { %10729 = vmatprep.subr.bf16.mxu1 %v10728_v22  ;;  %v9665_v23 = vpop.f32.mrb[76].mxu0 }
 0x5c6   : > { %10731 = vmatpush3.bf16.msra.mxu1 %v10728_v22  ;;  %v3855_v24 = vpop.f32.mrb[77].mxu0  ;;  %v7929_v22 = vld [vmem:[%s13860_s4 + $0x140] sm:$0xff] }
 0x5c7   : > { %v12735_v26 = vpack.c.bf16 %v9665_v23, %v3855_v24  ;;  %10733 = vmatprep.subr.bf16.mxu1 %v12713_v41  ;;  %v7930_v23 = vld [vmem:[%s13860_s4 + $0x148] sm:$0xff]  ;;  %v7931_v24 = vld [vmem:[%s13860_s4 + $0x150] sm:$0xff] }
 0x5c9   : > { %9580 = vmatmul.mubr.f32.vlgmr.msra.gmra.mrb[60].mxu1 %v7888_v25  ;;  %v9668_v28 = vpop.f32.mrb[78].mxu0  ;;  %v7932_v25 = vld [vmem:[%s13860_s4 + $0x158] sm:$0xff] }
 0x5ca   : > { %10735 = vmatpush3.bf16.msra.mxu1 %v12713_v41  ;;  %v3865_v29 = vpop.f32.mrb[79].mxu0  ;;  %9582 = vmatprep.mubr.f32.mxu1 %v7889_v27  ;;  %v7894_v41 = vld [vmem:[%s13860_s4 + $0xb8] sm:$0xff]  ;;  %v7934_v27 = vld [vmem:[%s13860_s4 + $0x168] sm:$0xff] }
 0x5cb   : > { %v12745_v31 = vpack.c.bf16 %v9668_v28, %v3865_v29  ;;  %10737 = vmatprep.subr.bf16.mxu1 %v12715_v45  ;;  %v7935_v28 = vld [vmem:[%s13860_s4 + $0x170] sm:$0xff]  ;;  %v7936_v29 = vld [vmem:[%s13860_s4 + $0x178] sm:$0xff] }
 0x5cd   : > { %9583 = vmatmul.mubr.f32.gmra.mrb[62].mxu1 %v7890_v30  ;;  %v9671_v33 = vpop.f32.mrb[80].mxu0  ;;  %v7953_v30 = vld [vmem:[%s13796_s11 + $0x8] sm:$0xff] }
 0x5ce   : > { %10739 = vmatpush3.bf16.msra.mxu1 %v12715_v45  ;;  %v3875_v34 = vpop.f32.mrb[81].mxu0  ;;  %9585 = vmatprep.mubr.f32.mxu1 %v7891_v32  ;;  %v4131_v32 = vpop.permute.xlu0 %4130 }
 0x5cf   : > { %v12755_v36 = vpack.c.bf16 %v9671_v33, %v3875_v34  ;;  %10741 = vmatprep.subr.bf16.mxu1 %v12717_v50  ;;  %9769 = vmatprep.subr.mxu0 %v7953_v30 }
 0x5d1   : > { %9586 = vmatmul.mubr.f32.gmra.mrb[64].mxu1 %v7892_v35  ;;  %v9674_v38 = vpop.f32.mrb[82].mxu0 }
 0x5d2   : > { %10743 = vmatpush3.bf16.msra.mxu1 %v12717_v50  ;;  %v3885_v40 = vpop.f32.mrb[83].mxu0  ;;  %9588 = vmatprep.mubr.f32.mxu1 %v7893_v37  ;;  %v4141_v34 = vpop.permute.xlu0 %4140 }
 0x5d3   : > { %v12765_v43 = vpack.c.bf16 %v9674_v38, %v3885_v40  ;;  %10745 = vmatprep.subr.bf16.mxu1 %v12719_v55 }
 0x5d5   : > { %9589 = vmatmul.mubr.f32.gmra.mrb[66].mxu1 %v7894_v41  ;;  %v9677_v45 = vpop.f32.mrb[84].mxu0 }
 0x5d6   : > { %10747 = vmatpush3.bf16.msra.mxu1 %v12719_v55  ;;  %v3895_v46 = vpop.f32.mrb[85].mxu0  ;;  %9591 = vmatprep.mubr.f32.mxu1 %v7895_v44  ;;  %v7898_v55 = vld [vmem:[%s13860_s4 + $0xd8] sm:$0xff] }
 0x5d7   : > { %v10784_v50 = vpack.c.bf16 %v9677_v45, %v3895_v46  ;;  %10749 = vmatprep.subr.bf16.mxu1 %v12721_v58 }
 0x5d9   : > { %9592 = vmatmul.mubr.f32.gmra.mrb[68].mxu1 %v7896_v49  ;;  %v9680_v52 = vpop.f32.mrb[86].mxu0 }
 0x5da   : > { %10751 = vmatpush3.bf16.msra.mxu1 %v12721_v58  ;;  %v3905_v56 = vpop.f32.mrb[87].mxu0  ;;  %9594 = vmatprep.mubr.f32.mxu1 %v7897_v51  ;;  %v7900_v58 = vld [vmem:[%s13860_s4 + $0xe8] sm:$0xff] }
 0x5db   : > { %v10788_v57 = vpack.c.bf16 %v9680_v52, %v3905_v56  ;;  %10753 = vmatprep.subr.bf16.mxu1 %v12723_v42  ;;  %v12917_v56 = vld [vmem:[%s13796_s11 + $0x10] sm:$0xff] }
 0x5dd   : > { %9595 = vmatmul.mubr.f32.gmra.mrb[70].mxu1 %v7898_v55  ;;  %v9683_v61 = vpop.f32.mrb[88].mxu0 }
 0x5de   : > { %10755 = vmatpush3.bf16.msra.mxu1 %v12723_v42  ;;  %v3915_v62 = vpop.f32.mrb[89].mxu0  ;;  %9597 = vmatprep.mubr.f32.mxu1 %v7899_v39  ;;  %v7902_v42 = vld [vmem:[%s13860_s4 + $0xf8] sm:$0xff] }
 0x5df   : > { %v10792_v47 = vpack.c.bf16 %v9683_v61, %v3915_v62  ;;  %10757 = vmatprep.subr.bf16.mxu1 %v12725_v63 }
 0x5e1   : > { %9598 = vmatmul.mubr.f32.gmra.mrb[72].mxu1 %v7900_v58  ;;  %v9686_v0 = vpop.f32.mrb[90].mxu0 }
 0x5e2   : > { %10759 = vmatpush3.bf16.msra.mxu1 %v12725_v63  ;;  %v3925_v3 = vpop.f32.mrb[91].mxu0  ;;  %9600 = vmatprep.mubr.f32.mxu1 %v7901_v53  ;;  %v3316_v63 = vld [vmem:[%s13860_s4 + $0x8] sm:$0xff] }
 0x5e3   : > { %v10796_v1 = vpack.c.bf16 %v9686_v0, %v3925_v3  ;;  %10761 = vmatprep.subr.bf16.mxu1 %v12727_v59 }
 0x5e5   : > { %9601 = vmatmul.mubr.f32.gmra.mrb[74].mxu1 %v7902_v42 }
 0x5e6   : > { %10763 = vmatpush3.bf16.msra.mxu1 %v12727_v59  ;;  %9635 = vmatprep.mubr.f32.mxu1 %v3315_v4  ;;  %v3319_v59 = vld [vmem:[%s13860_s4 + $0x20] sm:$0xff] }
 0x5e7   : > { %10769 = vmatprep.subr.bf16.mxu1 %v12735_v26 }
 0x5e9   : > { %9636 = vmatmul.mubr.f32.vlgmr.msra.gmra.mrb[60].mxu1 %v3316_v63 }
 0x5ea   : > { %10771 = vmatpush3.bf16.msra.mxu1 %v12735_v26  ;;  %9638 = vmatprep.mubr.f32.mxu1 %v3317_v5  ;;  %v7933_v26 = vld [vmem:[%s13860_s4 + $0x160] sm:$0xff] }
 0x5eb   : > { %10773 = vmatprep.subr.bf16.mxu1 %v12745_v31 }
 0x5ed   : > { %9639 = vmatmul.mubr.f32.gmra.mrb[62].mxu1 %v3318_v6 }
 0x5ee   : > { %10775 = vmatpush3.bf16.msra.mxu1 %v12745_v31  ;;  %9641 = vmatprep.mubr.f32.mxu1 %v3319_v59  ;;  %v4136_v31 = vpop.permute.xlu1 %4135 }
 0x5ef   : > { %10777 = vmatprep.subr.bf16.mxu1 %v12755_v36 }
 0x5f1   : > { %9642 = vmatmul.mubr.f32.gmra.mrb[64].mxu1 %v3320_v7 }
 0x5f2   : > { %10779 = vmatpush3.bf16.msra.mxu1 %v12755_v36  ;;  %9644 = vmatprep.mubr.f32.mxu1 %v3321_v9  ;;  %v4146_v33 = vpop.permute.xlu1 %4145  ;;  %v4151_v36 = vpop.permute.xlu0 %4150 }
 0x5f3   : > { %10781 = vmatprep.subr.bf16.mxu1 %v12765_v43 }
 0x5f5   : > { %9645 = vmatmul.mubr.f32.gmra.mrb[66].mxu1 %v3322_v48 }
 0x5f6   : > { %10783 = vmatpush3.bf16.msra.mxu1 %v12765_v43  ;;  %9647 = vmatprep.mubr.f32.mxu1 %v3323_v10  ;;  %v4156_v35 = vpop.permute.xlu1 %4155  ;;  %v4161_v46 = vpop.permute.xlu0 %4160 }
 0x5f7   : > { %10785 = vmatprep.subr.bf16.mxu1 %v10784_v50 }
 0x5f9   : > { %9648 = vmatmul.mubr.f32.gmra.mrb[68].mxu1 %v3324_v54 }
 0x5fa   : > { %10787 = vmatpush3.bf16.msra.mxu1 %v10784_v50  ;;  %9650 = vmatprep.mubr.f32.mxu1 %v3325_v11  ;;  %v4166_v43 = vpop.permute.xlu1 %4165  ;;  %v4171_v53 = vpop.permute.xlu0 %4170 }
 0x5fb   : > { %10789 = vmatprep.subr.bf16.mxu1 %v10788_v57 }
 0x5fd   : > { %9651 = vmatmul.mubr.f32.gmra.mrb[70].mxu1 %v3326_v60 }
 0x5fe   : > { %10791 = vmatpush3.bf16.msra.mxu1 %v10788_v57  ;;  %9653 = vmatprep.mubr.f32.mxu1 %v3327_v12  ;;  %v4176_v58 = vpop.permute.xlu1 %4175  ;;  %v4181_v7 = vpop.permute.xlu0 %4180 }
 0x5ff   : > { %10793 = vmatprep.subr.bf16.mxu1 %v10792_v47 }
 0x601   : > { %9654 = vmatmul.mubr.f32.gmra.mrb[72].mxu1 %v3328_v2 }
 0x602   : > { %10795 = vmatpush3.bf16.msra.mxu1 %v10792_v47  ;;  %9656 = vmatprep.mubr.f32.mxu1 %v3329_v13  ;;  %v4186_v5 = vpop.permute.xlu1 %4185 }
 0x603   : > { %10797 = vmatprep.subr.bf16.mxu1 %v10796_v1 }
 0x605   : > { %9657 = vmatmul.mubr.f32.gmra.mrb[74].mxu1 %v3330_v8 }
 0x606   : > { %10799 = vmatpush3.bf16.msra.mxu1 %v10796_v1  ;;  %9719 = vmatprep.mubr.f32.mxu1 %v7921_v15  ;;  %v4196_v8 = vpop.permute.xlu1 %4195 }
 0x609   : > { %9720 = vmatmul.mubr.f32.vlgmr.msra.gmra.mrb[60].mxu1 %v7922_v14  ;;  %v4191_v14 = vpop.permute.xlu0 %4190 }
 0x60a   : > { %9722 = vmatprep.mubr.f32.mxu1 %v7923_v16 }
 0x60d   : > { %9723 = vmatmul.mubr.f32.gmra.mrb[62].mxu1 %v7924_v17 }
 0x60e   : > { %9725 = vmatprep.mubr.f32.mxu1 %v7925_v18 }
 0x611   : > { %9726 = vmatmul.mubr.f32.gmra.mrb[64].mxu1 %v7926_v19 }
 0x612   : > { %9728 = vmatprep.mubr.f32.mxu1 %v7927_v20 }
 0x615   : > { %9729 = vmatmul.mubr.f32.gmra.mrb[66].mxu1 %v7928_v21 }
 0x616   : > { %9731 = vmatprep.mubr.f32.mxu1 %v7929_v22  ;;  %v4206_v22 = vpop.permute.xlu1 %4205 }
 0x619   : > { %9732 = vmatmul.mubr.f32.gmra.mrb[68].mxu1 %v7930_v23 }
 0x61a   : > { %9734 = vmatprep.mubr.f32.mxu1 %v7931_v24 }
 0x61d   : > { %9735 = vmatmul.mubr.f32.gmra.mrb[70].mxu1 %v7932_v25  ;;  %v4201_v25 = vpop.permute.xlu0 %4200 }
 0x61e   : > { %9737 = vmatprep.mubr.f32.mxu1 %v7933_v26 }
 0x621   : > { %9738 = vmatmul.mubr.f32.gmra.mrb[72].mxu1 %v7934_v27 }
 0x622   : > { %9740 = vmatprep.mubr.f32.mxu1 %v7935_v28 }
 0x625   : > { %9741 = vmatmul.mubr.f32.gmra.mrb[74].mxu1 %v7936_v29 }
 0x6dc   : > { %v9721_v37 = vpop.f32.mrb[60].mxu1 }
 0x6dd   : > { %v4209_v38 = vadd.f32 %v9721_v37, %v4136_v31  ;;  %v4017_v40 = vpop.f32.mrb[61].mxu1 }
 0x6de   : > { %v4208_v41 = vadd.f32 %v4131_v32, %v4017_v40  ;;  %v7970_v32 = vld [vmem:[%s13861_s9 + $0x80] sm:$0xff] }
 0x6df   : > { %v12910_v49 = vmax.f32 %v4209_v38, 0.0  ;;  %9827 = vmatprep.mubr.f32.mxu1 %v7970_v32  ;;  %v7976_v32 = vld [vmem:[%s13861_s9 + $0xb0] sm:$0xff] }
 0x6e0   : > { %v12908_v44 = vmax.f32 %v4208_v41, 0.0  ;;  %v9724_v45 = vpop.f32.mrb[62].mxu1 }
 0x6e1   : > { %v4211_v50 = vadd.f32 %v9724_v45, %v4146_v33  ;;  %v4027_v51 = vpop.f32.mrb[63].mxu1 }
 0x6e2   : > { %v4210_v52 = vadd.f32 %v4141_v34, %v4027_v51  ;;  %9745 = vmatprep.mubr.msk.f32.mxu0 %vm4241_vm3, %v12908_v44 }
 0x6e3   : > { %9746 = vmatmul.mubr.msk.f32.vlgmr.msra.gmra.mrb[92].mxu0 %vm4241_vm3, %v12910_v49  ;;  %v12923_v39 = vmax.f32 %v4211_v50, 0.0 }
 0x6e4   : > { %v12921_v55 = vmax.f32 %v4210_v52, 0.0  ;;  %v9727_v57 = vpop.f32.mrb[64].mxu1  ;;  %9770 = vmatpush3.msra.mxu0 %v7953_v30 }
 0x6e5   : > { %v4213_v61 = vadd.f32 %v9727_v57, %v4156_v35  ;;  %v4037_v62 = vpop.f32.mrb[65].mxu1  ;;  %9907 = vmatprep.subr.mxu0 %v12917_v56 }
 0x6e6   : > { %v4212_v47 = vadd.f32 %v4151_v36, %v4037_v62  ;;  %9748 = vmatprep.mubr.msk.f32.mxu0 %vm4241_vm3, %v12921_v55 }
 0x6e7   : > { %9749 = vmatmul.mubr.msk.f32.gmra.mrb[94].mxu0 %vm4241_vm3, %v12923_v39  ;;  %v12932_v42 = vmax.f32 %v4213_v61, 0.0 }
 0x6e8   : > { %v12930_v0 = vmax.f32 %v4212_v47, 0.0  ;;  %v9730_v3 = vpop.f32.mrb[66].mxu1 }
 0x6e9   : > { %v4215_v1 = vadd.f32 %v9730_v3, %v4166_v43  ;;  %v4047_v4 = vpop.f32.mrb[67].mxu1 }
 0x6ea   : > { %v4214_v63 = vadd.f32 %v4161_v46, %v4047_v4  ;;  %9751 = vmatprep.mubr.msk.f32.mxu0 %vm4241_vm3, %v12930_v0 }
 0x6eb   : > { %9752 = vmatmul.mubr.msk.f32.gmra.mrb[96].mxu0 %vm4241_vm3, %v12932_v42  ;;  %v4231_v9 = vmax.f32 %v4215_v1, 0.0 }
 0x6ec   : > { %v12938_v6 = vmax.f32 %v4214_v63, 0.0  ;;  %v9733_v59 = vpop.f32.mrb[68].mxu1 }
 0x6ed   : > { %v4217_v48 = vadd.f32 %v9733_v59, %v4176_v58  ;;  %v4057_v10 = vpop.f32.mrb[69].mxu1 }
 0x6ee   : > { %v4216_v54 = vadd.f32 %v4171_v53, %v4057_v10  ;;  %9754 = vmatprep.mubr.msk.f32.mxu0 %vm4241_vm3, %v12938_v6 }
 0x6ef   : > { %9755 = vmatmul.mubr.msk.f32.gmra.mrb[98].mxu0 %vm4241_vm3, %v4231_v9  ;;  %v4233_v12 = vmax.f32 %v4217_v48, 0.0 }
 0x6f0   : > { %v4232_v11 = vmax.f32 %v4216_v54, 0.0  ;;  %v9736_v60 = vpop.f32.mrb[70].mxu1 }
 0x6f1   : > { %v4219_v2 = vadd.f32 %v9736_v60, %v4186_v5  ;;  %v4067_v13 = vpop.f32.mrb[71].mxu1 }
 0x6f2   : > { %v4218_v15 = vadd.f32 %v4181_v7, %v4067_v13  ;;  %9757 = vmatprep.mubr.msk.f32.mxu0 %vm4241_vm3, %v4232_v11 }
 0x6f3   : > { %9758 = vmatmul.mubr.msk.f32.gmra.mrb[100].mxu0 %vm4241_vm3, %v4233_v12  ;;  %v4235_v18 = vmax.f32 %v4219_v2, 0.0 }
 0x6f4   : > { %v4234_v16 = vmax.f32 %v4218_v15, 0.0  ;;  %v9739_v17 = vpop.f32.mrb[72].mxu1 }
 0x6f5   : > { %v4221_v19 = vadd.f32 %v9739_v17, %v4196_v8  ;;  %v4077_v20 = vpop.f32.mrb[73].mxu1 }
 0x6f6   : > { %v4220_v21 = vadd.f32 %v4191_v14, %v4077_v20  ;;  %9760 = vmatprep.mubr.msk.f32.mxu0 %vm4241_vm3, %v4234_v16  ;;  %v7971_v20 = vld [vmem:[%s13861_s9 + $0x88] sm:$0xff] }
 0x6f7   : > { %9761 = vmatmul.mubr.msk.f32.gmra.mrb[102].mxu0 %vm4241_vm3, %v4235_v18  ;;  %v4237_v26 = vmax.f32 %v4221_v19, 0.0 }
 0x6f8   : > { %v4236_v23 = vmax.f32 %v4220_v21, 0.0  ;;  %v9742_v24 = vpop.f32.mrb[74].mxu1 }
 0x6f9   : > { %v4223_v27 = vadd.f32 %v9742_v24, %v4206_v22  ;;  %v4087_v28 = vpop.f32.mrb[75].mxu1  ;;  %v7972_v22 = vld [vmem:[%s13861_s9 + $0x90] sm:$0xff] }
 0x6fa   : > { %v4222_v29 = vadd.f32 %v4201_v25, %v4087_v28  ;;  %9763 = vmatprep.mubr.msk.f32.mxu0 %vm4241_vm3, %v4236_v23  ;;  %v7973_v25 = vld [vmem:[%s13861_s9 + $0x98] sm:$0xff] }
 0x6fb   : > { %9764 = vmatmul.mubr.msk.f32.gmra.mrb[104].mxu0 %vm4241_vm3, %v4237_v26  ;;  %v4239_v31 = vmax.f32 %v4223_v27, 0.0  ;;  %v7974_v27 = vld [vmem:[%s13861_s9 + $0xa0] sm:$0xff] }
 0x6fc   : > { %v4238_v30 = vmax.f32 %v4222_v29, 0.0 }
 0x6fe   : > { %9766 = vmatprep.mubr.msk.f32.mxu0 %vm4241_vm3, %v4238_v30 }
 0x6ff   : > { %9767 = vmatmul.mubr.msk.f32.gmra.mrb[106].mxu0 %vm4241_vm3, %v4239_v31 }
 0x700   : > { %9771 = vmatprep.mubr.msk.f32.mxu0 %vm4241_vm3, %v12908_v44 }
 0x703   : > { %9772 = vmatmul.mubr.msk.f32.vlgmr.msra.gmra.mrb[108].mxu0 %vm4241_vm3, %v12910_v49 }
 0x704   : > { %9774 = vmatprep.mubr.msk.f32.mxu0 %vm4241_vm3, %v12921_v55  ;;  %9908 = vmatpush3.msra.mxu0 %v12917_v56 }
 0x707   : > { %9775 = vmatmul.mubr.msk.f32.gmra.mrb[110].mxu0 %vm4241_vm3, %v12923_v39 }
 0x708   : > { %9777 = vmatprep.mubr.msk.f32.mxu0 %vm4241_vm3, %v12930_v0 }
 0x70b   : > { %9778 = vmatmul.mubr.msk.f32.gmra.mrb[112].mxu0 %vm4241_vm3, %v12932_v42 }
 0x70c   : > { %9780 = vmatprep.mubr.msk.f32.mxu0 %vm4241_vm3, %v12938_v6 }
 0x70f   : > { %9781 = vmatmul.mubr.msk.f32.gmra.mrb[114].mxu0 %vm4241_vm3, %v4231_v9 }
 0x710   : > { %9783 = vmatprep.mubr.msk.f32.mxu0 %vm4241_vm3, %v4232_v11 }
 0x713   : > { %9784 = vmatmul.mubr.msk.f32.gmra.mrb[116].mxu0 %vm4241_vm3, %v4233_v12 }
 0x714   : > { %9786 = vmatprep.mubr.msk.f32.mxu0 %vm4241_vm3, %v4234_v16 }
 0x717   : > { %9787 = vmatmul.mubr.msk.f32.gmra.mrb[118].mxu0 %vm4241_vm3, %v4235_v18 }
 0x718   : > { %9789 = vmatprep.mubr.msk.f32.mxu0 %vm4241_vm3, %v4236_v23 }
 0x71b   : > { %9790 = vmatmul.mubr.msk.f32.gmra.mrb[120].mxu0 %vm4241_vm3, %v4237_v26 }
 0x71c   : > { %9792 = vmatprep.mubr.msk.f32.mxu0 %vm4241_vm3, %v4238_v30 }
 0x71f   : > { %9793 = vmatmul.mubr.msk.f32.gmra.mrb[122].mxu0 %vm4241_vm3, %v4239_v31 }
 0x720   : > { %9909 = vmatprep.mubr.msk.f32.mxu0 %vm4241_vm3, %v12908_v44 }
 0x723   : > { %9910 = vmatmul.mubr.msk.f32.vlgmr.msra.gmra.mrb[124].mxu0 %vm4241_vm3, %v12910_v49 }
 0x724   : > { %9912 = vmatprep.mubr.msk.f32.mxu0 %vm4241_vm3, %v12921_v55 }
 0x727   : > { %9913 = vmatmul.mubr.msk.f32.gmra.mrb[126].mxu0 %vm4241_vm3, %v12923_v39 }
 0x728   : > { %9915 = vmatprep.mubr.msk.f32.mxu0 %vm4241_vm3, %v12930_v0  ;;  %v5358_v0 = vld [vmem:[%s13799_s14] sm:$0xf] }
 0x729   : > { %9989 = vmatprep.subr.msk.mxu0 %vm5408_vm4, %v5358_v0 }
 0x72a   : > { %9990 = vmatpush3.msk.msra.mxu0 %vm5408_vm4, %v5358_v0 }
 0x72b   : > { %9916 = vmatmul.mubr.msk.f32.gmra.mrb[128].mxu0 %vm4241_vm3, %v12932_v42 }
 0x72c   : > { %9918 = vmatprep.mubr.msk.f32.mxu0 %vm4241_vm3, %v12938_v6 }
 0x72f   : > { %9919 = vmatmul.mubr.msk.f32.gmra.mrb[130].mxu0 %vm4241_vm3, %v4231_v9 }
 0x730   : > { %9921 = vmatprep.mubr.msk.f32.mxu0 %vm4241_vm3, %v4232_v11 }
 0x733   : > { %9922 = vmatmul.mubr.msk.f32.gmra.mrb[132].mxu0 %vm4241_vm3, %v4233_v12 }
 0x734   : > { %9924 = vmatprep.mubr.msk.f32.mxu0 %vm4241_vm3, %v4234_v16 }
 0x737   : > { %9925 = vmatmul.mubr.msk.f32.gmra.mrb[134].mxu0 %vm4241_vm3, %v4235_v18 }
 0x738   : > { %9927 = vmatprep.mubr.msk.f32.mxu0 %vm4241_vm3, %v4236_v23 }
 0x73b   : > { %9928 = vmatmul.mubr.msk.f32.gmra.mrb[136].mxu0 %vm4241_vm3, %v4237_v26 }
 0x73c   : > { %9930 = vmatprep.mubr.msk.f32.mxu0 %vm4241_vm3, %v4238_v30  ;;  %v7975_v30 = vld [vmem:[%s13861_s9 + $0xa8] sm:$0xff] }
 0x73f   : > { %9931 = vmatmul.mubr.msk.f32.gmra.mrb[138].mxu0 %vm4241_vm3, %v4239_v31 }
 0x7b6   : > { %v9747_v33 = vpop.f32.mrb[92].mxu0 }
 0x7b7   : > { %v4356_v34 = vpop.f32.mrb[93].mxu0 }
 0x7b8   : > { %v13001_v35 = vpack.c.bf16 %v9747_v33, %v4356_v34 }
 0x7ba   : > { %v9750_v36 = vpop.f32.mrb[94].mxu0 }
 0x7bb   : > { %v4366_v37 = vpop.f32.mrb[95].mxu0 }
 0x7bc   : > { %v13003_v38 = vpack.c.bf16 %v9750_v36, %v4366_v37  ;;  %v7978_v37 = vld [vmem:[%s13861_s9 + $0xc0] sm:$0xff] }
 0x7be   : > { %v9753_v40 = vpop.f32.mrb[96].mxu0 }
 0x7bf   : > { %v4376_v41 = vpop.f32.mrb[97].mxu0 }
 0x7c0   : > { %v13005_v43 = vpack.c.bf16 %v9753_v40, %v4376_v41  ;;  %v7979_v41 = vld [vmem:[%s13861_s9 + $0xc8] sm:$0xff] }
 0x7c2   : > { %v9756_v44 = vpop.f32.mrb[98].mxu0 }
 0x7c3   : > { %v4386_v45 = vpop.f32.mrb[99].mxu0 }
 0x7c4   : > { %v13007_v46 = vpack.c.bf16 %v9756_v44, %v4386_v45  ;;  %v7980_v44 = vld [vmem:[%s13861_s9 + $0xd0] sm:$0xff] }
 0x7c6   : > { %v9759_v49 = vpop.f32.mrb[100].mxu0 }
 0x7c7   : > { %v4396_v50 = vpop.f32.mrb[101].mxu0 }
 0x7c8   : > { %v13009_v51 = vpack.c.bf16 %v9759_v49, %v4396_v50 }
 0x7ca   : > { %v9762_v52 = vpop.f32.mrb[102].mxu0 }
 0x7cb   : > { %v4406_v56 = vpop.f32.mrb[103].mxu0 }
 0x7cc   : > { %v13011_v55 = vpack.c.bf16 %v9762_v52, %v4406_v56  ;;  %v7982_v52 = vld [vmem:[%s13861_s9 + $0xe0] sm:$0xff] }
 0x7ce   : > { %v9765_v57 = vpop.f32.mrb[104].mxu0 }
 0x7cf   : > { %v4416_v39 = vpop.f32.mrb[105].mxu0 }
 0x7d0   : > { %v13013_v61 = vpack.c.bf16 %v9765_v57, %v4416_v39 }
 0x7d2   : > { %v9768_v62 = vpop.f32.mrb[106].mxu0 }
 0x7d3   : > { %v4426_v58 = vpop.f32.mrb[107].mxu0 }
 0x7d4   : > { %v13015_v47 = vpack.c.bf16 %v9768_v62, %v4426_v58  ;;  %v7984_v62 = vld [vmem:[%s13861_s9 + $0xf0] sm:$0xff] }
 0x7d6   : > { %v9773_v53 = vpop.f32.mrb[108].mxu0 }
 0x7d7   : > { %v4519_v3 = vpop.f32.mrb[109].mxu0 }
 0x7d8   : > { %v10800_v42 = vpack.c.bf16 %v9773_v53, %v4519_v3  ;;  %v4435_v3 = vld [vmem:[%s13861_s9] sm:$0xff] }
 0x7da   : > { %v9776_v1 = vpop.f32.mrb[110].mxu0  ;;  %10801 = vmatprep.subr.bf16.mxu1 %v10800_v42 }
 0x7db   : > { %v4529_v4 = vpop.f32.mrb[111].mxu0  ;;  %10803 = vmatpush3.bf16.msra.mxu1 %v10800_v42  ;;  %v4437_v42 = vld [vmem:[%s13861_s9 + $0x10] sm:$0xff] }
 0x7dc   : > { %v10804_v63 = vpack.c.bf16 %v9776_v1, %v4529_v4  ;;  %v4438_v1 = vld [vmem:[%s13861_s9 + $0x18] sm:$0xff]  ;;  %v4440_v4 = vld [vmem:[%s13861_s9 + $0x28] sm:$0xff] }
 0x7de   : > { %v9779_v5 = vpop.f32.mrb[112].mxu0  ;;  %10805 = vmatprep.subr.bf16.mxu1 %v10804_v63 }
 0x7df   : > { %v4539_v6 = vpop.f32.mrb[113].mxu0  ;;  %10807 = vmatpush3.bf16.msra.mxu1 %v10804_v63  ;;  %v4441_v63 = vld [vmem:[%s13861_s9 + $0x30] sm:$0xff] }
 0x7e0   : > { %v10808_v59 = vpack.c.bf16 %v9779_v5, %v4539_v6  ;;  %v4442_v5 = vld [vmem:[%s13861_s9 + $0x38] sm:$0xff]  ;;  %v4443_v6 = vld [vmem:[%s13861_s9 + $0x40] sm:$0xff] }
 0x7e2   : > { %v9782_v7 = vpop.f32.mrb[114].mxu0  ;;  %10809 = vmatprep.subr.bf16.mxu1 %v10808_v59 }
 0x7e3   : > { %v4549_v9 = vpop.f32.mrb[115].mxu0  ;;  %10811 = vmatpush3.bf16.msra.mxu1 %v10808_v59  ;;  %v4444_v59 = vld [vmem:[%s13861_s9 + $0x48] sm:$0xff] }
 0x7e4   : > { %v10812_v48 = vpack.c.bf16 %v9782_v7, %v4549_v9  ;;  %v4445_v7 = vld [vmem:[%s13861_s9 + $0x50] sm:$0xff]  ;;  %v4446_v9 = vld [vmem:[%s13861_s9 + $0x58] sm:$0xff] }
 0x7e6   : > { %v9785_v10 = vpop.f32.mrb[116].mxu0  ;;  %10813 = vmatprep.subr.bf16.mxu1 %v10812_v48 }
 0x7e7   : > { %v4559_v54 = vpop.f32.mrb[117].mxu0  ;;  %10815 = vmatpush3.bf16.msra.mxu1 %v10812_v48  ;;  %v4447_v48 = vld [vmem:[%s13861_s9 + $0x60] sm:$0xff] }
 0x7e8   : > { %v10816_v11 = vpack.c.bf16 %v9785_v10, %v4559_v54  ;;  %v4448_v10 = vld [vmem:[%s13861_s9 + $0x68] sm:$0xff]  ;;  %v4449_v54 = vld [vmem:[%s13861_s9 + $0x70] sm:$0xff] }
 0x7ea   : > { %v9788_v60 = vpop.f32.mrb[118].mxu0  ;;  %10817 = vmatprep.subr.bf16.mxu1 %v10816_v11 }
 0x7eb   : > { %v4569_v12 = vpop.f32.mrb[119].mxu0  ;;  %10819 = vmatpush3.bf16.msra.mxu1 %v10816_v11  ;;  %v4450_v11 = vld [vmem:[%s13861_s9 + $0x78] sm:$0xff] }
 0x7ec   : > { %v10820_v2 = vpack.c.bf16 %v9788_v60, %v4569_v12  ;;  %v8003_v60 = vld [vmem:[%s13861_s9 + $0x100] sm:$0xff]  ;;  %v8004_v12 = vld [vmem:[%s13861_s9 + $0x108] sm:$0xff] }
 0x7ee   : > { %v9791_v13 = vpop.f32.mrb[120].mxu0  ;;  %10821 = vmatprep.subr.bf16.mxu1 %v10820_v2 }
 0x7ef   : > { %v4579_v8 = vpop.f32.mrb[121].mxu0  ;;  %10823 = vmatpush3.bf16.msra.mxu1 %v10820_v2  ;;  %v8005_v2 = vld [vmem:[%s13861_s9 + $0x110] sm:$0xff] }
 0x7f0   : > { %v10824_v15 = vpack.c.bf16 %v9791_v13, %v4579_v8  ;;  %v8006_v13 = vld [vmem:[%s13861_s9 + $0x118] sm:$0xff]  ;;  %v8007_v8 = vld [vmem:[%s13861_s9 + $0x120] sm:$0xff] }
 0x7f2   : > { %v9794_v14 = vpop.f32.mrb[122].mxu0  ;;  %10825 = vmatprep.subr.bf16.mxu1 %v10824_v15 }
 0x7f3   : > { %v4589_v16 = vpop.f32.mrb[123].mxu0  ;;  %10827 = vmatpush3.bf16.msra.mxu1 %v10824_v15  ;;  %v8008_v15 = vld [vmem:[%s13861_s9 + $0x128] sm:$0xff] }
 0x7f4   : > { %v10828_v17 = vpack.c.bf16 %v9794_v14, %v4589_v16  ;;  %v8009_v14 = vld [vmem:[%s13861_s9 + $0x130] sm:$0xff]  ;;  %v8010_v16 = vld [vmem:[%s13861_s9 + $0x138] sm:$0xff] }
 0x7f6   : > { %10829 = vmatprep.subr.bf16.mxu1 %v10828_v17  ;;  %v9911_v18 = vpop.f32.mrb[124].mxu0 }
 0x7f7   : > { %10831 = vmatpush3.bf16.msra.mxu1 %v10828_v17  ;;  %v4973_v19 = vpop.f32.mrb[125].mxu0  ;;  %v8011_v17 = vld [vmem:[%s13861_s9 + $0x140] sm:$0xff] }
 0x7f8   : > { %v13025_v21 = vpack.c.bf16 %v9911_v18, %v4973_v19  ;;  %10833 = vmatprep.subr.bf16.mxu1 %v13001_v35  ;;  %v8012_v18 = vld [vmem:[%s13861_s9 + $0x148] sm:$0xff]  ;;  %v8013_v19 = vld [vmem:[%s13861_s9 + $0x150] sm:$0xff] }
 0x7fa   : > { %9828 = vmatmul.mubr.f32.vlgmr.msra.gmra.mrb[76].mxu1 %v7971_v20  ;;  %v9914_v23 = vpop.f32.mrb[126].mxu0  ;;  %v8014_v20 = vld [vmem:[%s13861_s9 + $0x158] sm:$0xff] }
 0x7fb   : > { %10835 = vmatpush3.bf16.msra.mxu1 %v13001_v35  ;;  %v4983_v24 = vpop.f32.mrb[127].mxu0  ;;  %9830 = vmatprep.mubr.f32.mxu1 %v7972_v22  ;;  %v7977_v35 = vld [vmem:[%s13861_s9 + $0xb8] sm:$0xff]  ;;  %v8016_v22 = vld [vmem:[%s13861_s9 + $0x168] sm:$0xff] }
 0x7fc   : > { %v13035_v26 = vpack.c.bf16 %v9914_v23, %v4983_v24  ;;  %10837 = vmatprep.subr.bf16.mxu1 %v13003_v38  ;;  %v8017_v23 = vld [vmem:[%s13861_s9 + $0x170] sm:$0xff]  ;;  %v8018_v24 = vld [vmem:[%s13861_s9 + $0x178] sm:$0xff] }
 0x7fe   : > { %9831 = vmatmul.mubr.f32.gmra.mrb[78].mxu1 %v7973_v25  ;;  %v9917_v28 = vpop.f32.mrb[128].mxu0  ;;  %v8036_v25 = vld [vmem:[%s13799_s14 + $0x4] sm:$0xf] }
 0x7ff   : > { %10839 = vmatpush3.bf16.msra.mxu1 %v13003_v38  ;;  %v4993_v29 = vpop.f32.mrb[129].mxu0  ;;  %9833 = vmatprep.mubr.f32.mxu1 %v7974_v27  ;;  %v5249_v27 = vpop.permute.xlu0 %5248 }
 0x800   : > { %v13045_v31 = vpack.c.bf16 %v9917_v28, %v4993_v29  ;;  %10841 = vmatprep.subr.bf16.mxu1 %v13005_v43  ;;  %10015 = vmatprep.subr.msk.mxu0 %vm5408_vm4, %v8036_v25 }
 0x802   : > { %9834 = vmatmul.mubr.f32.gmra.mrb[80].mxu1 %v7975_v30  ;;  %v9920_v33 = vpop.f32.mrb[130].mxu0 }
 0x803   : > { %10843 = vmatpush3.bf16.msra.mxu1 %v13005_v43  ;;  %v5003_v34 = vpop.f32.mrb[131].mxu0  ;;  %9836 = vmatprep.mubr.f32.mxu1 %v7976_v32  ;;  %v5259_v29 = vpop.permute.xlu0 %5258 }
 0x804   : > { %v13055_v36 = vpack.c.bf16 %v9920_v33, %v5003_v34  ;;  %10845 = vmatprep.subr.bf16.mxu1 %v13007_v46 }
 0x806   : > { %9837 = vmatmul.mubr.f32.gmra.mrb[82].mxu1 %v7977_v35  ;;  %v9923_v38 = vpop.f32.mrb[132].mxu0 }
 0x807   : > { %10847 = vmatpush3.bf16.msra.mxu1 %v13007_v46  ;;  %v5013_v40 = vpop.f32.mrb[133].mxu0  ;;  %9839 = vmatprep.mubr.f32.mxu1 %v7978_v37  ;;  %v7981_v46 = vld [vmem:[%s13861_s9 + $0xd8] sm:$0xff] }
 0x808   : > { %v10880_v43 = vpack.c.bf16 %v9923_v38, %v5013_v40  ;;  %10849 = vmatprep.subr.bf16.mxu1 %v13009_v51 }
 0x80a   : > { %9840 = vmatmul.mubr.f32.gmra.mrb[84].mxu1 %v7979_v41  ;;  %v9926_v45 = vpop.f32.mrb[134].mxu0 }
 0x80b   : > { %10851 = vmatpush3.bf16.msra.mxu1 %v13009_v51  ;;  %v5023_v49 = vpop.f32.mrb[135].mxu0  ;;  %9842 = vmatprep.mubr.f32.mxu1 %v7980_v44  ;;  %v7983_v51 = vld [vmem:[%s13861_s9 + $0xe8] sm:$0xff] }
 0x80c   : > { %v10884_v50 = vpack.c.bf16 %v9926_v45, %v5023_v49  ;;  %10853 = vmatprep.subr.bf16.mxu1 %v13011_v55  ;;  %v13208_v49 = vld [vmem:[%s13799_s14 + $0x8] sm:$0xf] }
 0x80e   : > { %9843 = vmatmul.mubr.f32.gmra.mrb[86].mxu1 %v7981_v46  ;;  %v9929_v56 = vpop.f32.mrb[136].mxu0 }
 0x80f   : > { %10855 = vmatpush3.bf16.msra.mxu1 %v13011_v55  ;;  %v5033_v57 = vpop.f32.mrb[137].mxu0  ;;  %9845 = vmatprep.mubr.f32.mxu1 %v7982_v52  ;;  %v7985_v55 = vld [vmem:[%s13861_s9 + $0xf8] sm:$0xff] }
 0x810   : > { %v10888_v39 = vpack.c.bf16 %v9929_v56, %v5033_v57  ;;  %10857 = vmatprep.subr.bf16.mxu1 %v13013_v61 }
 0x812   : > { %9846 = vmatmul.mubr.f32.gmra.mrb[88].mxu1 %v7983_v51  ;;  %v9932_v58 = vpop.f32.mrb[138].mxu0 }
 0x813   : > { %10859 = vmatpush3.bf16.msra.mxu1 %v13013_v61  ;;  %v5043_v53 = vpop.f32.mrb[139].mxu0  ;;  %9848 = vmatprep.mubr.f32.mxu1 %v7984_v62  ;;  %v4436_v61 = vld [vmem:[%s13861_s9 + $0x8] sm:$0xff] }
 0x814   : > { %v10892_v0 = vpack.c.bf16 %v9932_v58, %v5043_v53  ;;  %10861 = vmatprep.subr.bf16.mxu1 %v13015_v47 }
 0x816   : > { %9849 = vmatmul.mubr.f32.gmra.mrb[90].mxu1 %v7985_v55 }
 0x817   : > { %10863 = vmatpush3.bf16.msra.mxu1 %v13015_v47  ;;  %9883 = vmatprep.mubr.f32.mxu1 %v4435_v3  ;;  %v4439_v47 = vld [vmem:[%s13861_s9 + $0x20] sm:$0xff] }
 0x818   : > { %10865 = vmatprep.subr.bf16.mxu1 %v13025_v21 }
 0x81a   : > { %9884 = vmatmul.mubr.f32.vlgmr.msra.gmra.mrb[76].mxu1 %v4436_v61 }
 0x81b   : > { %10867 = vmatpush3.bf16.msra.mxu1 %v13025_v21  ;;  %9886 = vmatprep.mubr.f32.mxu1 %v4437_v42  ;;  %v8015_v21 = vld [vmem:[%s13861_s9 + $0x160] sm:$0xff] }
 0x81c   : > { %10869 = vmatprep.subr.bf16.mxu1 %v13035_v26 }
 0x81e   : > { %9887 = vmatmul.mubr.f32.gmra.mrb[78].mxu1 %v4438_v1 }
 0x81f   : > { %10871 = vmatpush3.bf16.msra.mxu1 %v13035_v26  ;;  %9889 = vmatprep.mubr.f32.mxu1 %v4439_v47  ;;  %v5254_v26 = vpop.permute.xlu1 %5253 }
 0x820   : > { %10873 = vmatprep.subr.bf16.mxu1 %v13045_v31 }
 0x822   : > { %9890 = vmatmul.mubr.f32.gmra.mrb[80].mxu1 %v4440_v4 }
 0x823   : > { %10875 = vmatpush3.bf16.msra.mxu1 %v13045_v31  ;;  %9892 = vmatprep.mubr.f32.mxu1 %v4441_v63  ;;  %v5264_v28 = vpop.permute.xlu1 %5263  ;;  %v5269_v31 = vpop.permute.xlu0 %5268 }
 0x824   : > { %10877 = vmatprep.subr.bf16.mxu1 %v13055_v36 }
 0x826   : > { %9893 = vmatmul.mubr.f32.gmra.mrb[82].mxu1 %v4442_v5 }
 0x827   : > { %10879 = vmatpush3.bf16.msra.mxu1 %v13055_v36  ;;  %9895 = vmatprep.mubr.f32.mxu1 %v4443_v6  ;;  %v5274_v30 = vpop.permute.xlu1 %5273  ;;  %v5279_v40 = vpop.permute.xlu0 %5278 }
 0x828   : > { %10881 = vmatprep.subr.bf16.mxu1 %v10880_v43 }
 0x82a   : > { %9896 = vmatmul.mubr.f32.gmra.mrb[84].mxu1 %v4444_v59 }
 0x82b   : > { %10883 = vmatpush3.bf16.msra.mxu1 %v10880_v43  ;;  %9898 = vmatprep.mubr.f32.mxu1 %v4445_v7  ;;  %v5284_v36 = vpop.permute.xlu1 %5283  ;;  %v5289_v62 = vpop.permute.xlu0 %5288 }
 0x82c   : > { %10885 = vmatprep.subr.bf16.mxu1 %v10884_v50 }
 0x82e   : > { %9899 = vmatmul.mubr.f32.gmra.mrb[86].mxu1 %v4446_v9 }
 0x82f   : > { %10887 = vmatpush3.bf16.msra.mxu1 %v10884_v50  ;;  %9901 = vmatprep.mubr.f32.mxu1 %v4447_v48  ;;  %v5294_v51 = vpop.permute.xlu1 %5293  ;;  %v5299_v4 = vpop.permute.xlu0 %5298 }
 0x830   : > { %10889 = vmatprep.subr.bf16.mxu1 %v10888_v39 }
 0x832   : > { %9902 = vmatmul.mubr.f32.gmra.mrb[88].mxu1 %v4448_v10 }
 0x833   : > { %10891 = vmatpush3.bf16.msra.mxu1 %v10888_v39  ;;  %9904 = vmatprep.mubr.f32.mxu1 %v4449_v54  ;;  %v5304_v42 = vpop.permute.xlu1 %5303 }
 0x834   : > { %10893 = vmatprep.subr.bf16.mxu1 %v10892_v0 }
 0x836   : > { %9905 = vmatmul.mubr.f32.gmra.mrb[90].mxu1 %v4450_v11 }
 0x837   : > { %10895 = vmatpush3.bf16.msra.mxu1 %v10892_v0  ;;  %9965 = vmatprep.mubr.f32.mxu1 %v8003_v60  ;;  %v5314_v11 = vpop.permute.xlu1 %5313 }
 0x83a   : > { %9966 = vmatmul.mubr.f32.vlgmr.msra.gmra.mrb[76].mxu1 %v8004_v12  ;;  %v5309_v12 = vpop.permute.xlu0 %5308 }
 0x83b   : > { %9968 = vmatprep.mubr.f32.mxu1 %v8005_v2 }
 0x83e   : > { %9969 = vmatmul.mubr.f32.gmra.mrb[78].mxu1 %v8006_v13 }
 0x83f   : > { %9971 = vmatprep.mubr.f32.mxu1 %v8007_v8 }
 0x842   : > { %9972 = vmatmul.mubr.f32.gmra.mrb[80].mxu1 %v8008_v15 }
 0x843   : > { %9974 = vmatprep.mubr.f32.mxu1 %v8009_v14 }
 0x846   : > { %9975 = vmatmul.mubr.f32.gmra.mrb[82].mxu1 %v8010_v16 }
 0x847   : > { %9977 = vmatprep.mubr.f32.mxu1 %v8011_v17  ;;  %v5324_v17 = vpop.permute.xlu1 %5323 }
 0x84a   : > { %9978 = vmatmul.mubr.f32.gmra.mrb[84].mxu1 %v8012_v18 }
 0x84b   : > { %9980 = vmatprep.mubr.f32.mxu1 %v8013_v19 }
 0x84e   : > { %9981 = vmatmul.mubr.f32.gmra.mrb[86].mxu1 %v8014_v20  ;;  %v5319_v20 = vpop.permute.xlu0 %5318 }
 0x84f   : > { %9983 = vmatprep.mubr.f32.mxu1 %v8015_v21 }
 0x852   : > { %9984 = vmatmul.mubr.f32.gmra.mrb[88].mxu1 %v8016_v22 }
 0x853   : > { %9986 = vmatprep.mubr.f32.mxu1 %v8017_v23 }
 0x856   : > { %9987 = vmatmul.mubr.f32.gmra.mrb[90].mxu1 %v8018_v24 }
 0x90d   : > { %v9967_v32 = vpop.f32.mrb[76].mxu1 }
 0x90e   : > { %v5327_v33 = vadd.f32 %v9967_v32, %v5254_v26  ;;  %v5135_v34 = vpop.f32.mrb[77].mxu1 }
 0x90f   : > { %v5326_v35 = vadd.f32 %v5249_v27, %v5135_v34  ;;  %v8054_v27 = vld [vmem:[%s13798_s13 + $0x80] sm:$0xff] }
 0x910   : > { %v13201_v41 = vmax.f32 %v5327_v33, 0.0  ;;  %10073 = vmatprep.mubr.f32.mxu1 %v8054_v27  ;;  %v8060_v27 = vld [vmem:[%s13798_s13 + $0xb0] sm:$0xff] }
 0x911   : > { %v13199_v37 = vmax.f32 %v5326_v35, 0.0  ;;  %v9970_v38 = vpop.f32.mrb[78].mxu1 }
 0x912   : > { %v5329_v43 = vadd.f32 %v9970_v38, %v5264_v28  ;;  %v5145_v44 = vpop.f32.mrb[79].mxu1 }
 0x913   : > { %v5328_v45 = vadd.f32 %v5259_v29, %v5145_v44  ;;  %9991 = vmatprep.mubr.msk.f32.mxu0 %vm5359_vm5, %v13199_v37 }
 0x914   : > { %9992 = vmatmul.mubr.msk.f32.vlgmr.msra.gmra.mrb[140].mxu0 %vm5359_vm5, %v13201_v41  ;;  %v13215_v52 = vmax.f32 %v5329_v43, 0.0 }
 0x915   : > { %v13212_v46 = vmax.f32 %v5328_v45, 0.0  ;;  %v9973_v50 = vpop.f32.mrb[80].mxu1  ;;  %10016 = vmatpush3.msk.msra.mxu0 %vm5408_vm4, %v8036_v25 }
 0x916   : > { %v5331_v56 = vadd.f32 %v9973_v50, %v5274_v30  ;;  %v5155_v57 = vpop.f32.mrb[81].mxu1  ;;  %10153 = vmatprep.subr.msk.mxu0 %vm5408_vm4, %v13208_v49 }
 0x917   : > { %v5330_v39 = vadd.f32 %v5269_v31, %v5155_v57  ;;  %9994 = vmatprep.mubr.msk.f32.mxu0 %vm5359_vm5, %v13212_v46 }
 0x918   : > { %9995 = vmatmul.mubr.msk.f32.gmra.mrb[142].mxu0 %vm5359_vm5, %v13215_v52  ;;  %v13225_v55 = vmax.f32 %v5331_v56, 0.0 }
 0x919   : > { %v13223_v58 = vmax.f32 %v5330_v39, 0.0  ;;  %v9976_v53 = vpop.f32.mrb[82].mxu1 }
 0x91a   : > { %v5333_v0 = vadd.f32 %v9976_v53, %v5284_v36  ;;  %v5165_v3 = vpop.f32.mrb[83].mxu1 }
 0x91b   : > { %v5332_v61 = vadd.f32 %v5279_v40, %v5165_v3  ;;  %9997 = vmatprep.mubr.msk.f32.mxu0 %vm5359_vm5, %v13223_v58 }
 0x91c   : > { %9998 = vmatmul.mubr.msk.f32.gmra.mrb[144].mxu0 %vm5359_vm5, %v13225_v55  ;;  %v5349_v63 = vmax.f32 %v5333_v0, 0.0 }
 0x91d   : > { %v13231_v1 = vmax.f32 %v5332_v61, 0.0  ;;  %v9979_v47 = vpop.f32.mrb[84].mxu1 }
 0x91e   : > { %v5335_v5 = vadd.f32 %v9979_v47, %v5294_v51  ;;  %v5175_v6 = vpop.f32.mrb[85].mxu1 }
 0x91f   : > { %v5334_v59 = vadd.f32 %v5289_v62, %v5175_v6  ;;  %10000 = vmatprep.mubr.msk.f32.mxu0 %vm5359_vm5, %v13231_v1 }
 0x920   : > { %10001 = vmatmul.mubr.msk.f32.gmra.mrb[146].mxu0 %vm5359_vm5, %v5349_v63  ;;  %v5351_v48 = vmax.f32 %v5335_v5, 0.0 }
 0x921   : > { %v5350_v7 = vmax.f32 %v5334_v59, 0.0  ;;  %v9982_v9 = vpop.f32.mrb[86].mxu1 }
 0x922   : > { %v5337_v10 = vadd.f32 %v9982_v9, %v5304_v42  ;;  %v5185_v54 = vpop.f32.mrb[87].mxu1 }
 0x923   : > { %v5336_v60 = vadd.f32 %v5299_v4, %v5185_v54  ;;  %10003 = vmatprep.mubr.msk.f32.mxu0 %vm5359_vm5, %v5350_v7 }
 0x924   : > { %10004 = vmatmul.mubr.msk.f32.gmra.mrb[148].mxu0 %vm5359_vm5, %v5351_v48  ;;  %v5353_v8 = vmax.f32 %v5337_v10, 0.0 }
 0x925   : > { %v5352_v2 = vmax.f32 %v5336_v60, 0.0  ;;  %v9985_v13 = vpop.f32.mrb[88].mxu1 }
 0x926   : > { %v5339_v15 = vadd.f32 %v9985_v13, %v5314_v11  ;;  %v5195_v14 = vpop.f32.mrb[89].mxu1 }
 0x927   : > { %v5338_v16 = vadd.f32 %v5309_v12, %v5195_v14  ;;  %10006 = vmatprep.mubr.msk.f32.mxu0 %vm5359_vm5, %v5352_v2  ;;  %v8055_v14 = vld [vmem:[%s13798_s13 + $0x88] sm:$0xff] }
 0x928   : > { %10007 = vmatmul.mubr.msk.f32.gmra.mrb[150].mxu0 %vm5359_vm5, %v5353_v8  ;;  %v5355_v21 = vmax.f32 %v5339_v15, 0.0 }
 0x929   : > { %v5354_v18 = vmax.f32 %v5338_v16, 0.0  ;;  %v9988_v19 = vpop.f32.mrb[90].mxu1 }
 0x92a   : > { %v5341_v22 = vadd.f32 %v9988_v19, %v5324_v17  ;;  %v5205_v23 = vpop.f32.mrb[91].mxu1  ;;  %v8056_v17 = vld [vmem:[%s13798_s13 + $0x90] sm:$0xff] }
 0x92b   : > { %v5340_v24 = vadd.f32 %v5319_v20, %v5205_v23  ;;  %10009 = vmatprep.mubr.msk.f32.mxu0 %vm5359_vm5, %v5354_v18  ;;  %v8057_v20 = vld [vmem:[%s13798_s13 + $0x98] sm:$0xff] }
 0x92c   : > { %10010 = vmatmul.mubr.msk.f32.gmra.mrb[152].mxu0 %vm5359_vm5, %v5355_v21  ;;  %v5357_v26 = vmax.f32 %v5341_v22, 0.0  ;;  %v8058_v22 = vld [vmem:[%s13798_s13 + $0xa0] sm:$0xff] }
 0x92d   : > { %v5356_v25 = vmax.f32 %v5340_v24, 0.0 }
 0x92f   : > { %10012 = vmatprep.mubr.msk.f32.mxu0 %vm5359_vm5, %v5356_v25 }
 0x930   : > { %10013 = vmatmul.mubr.msk.f32.gmra.mrb[154].mxu0 %vm5359_vm5, %v5357_v26 }
 0x931   : > { %10017 = vmatprep.mubr.msk.f32.mxu0 %vm5359_vm5, %v13199_v37 }
 0x934   : > { %10018 = vmatmul.mubr.msk.f32.vlgmr.msra.gmra.mrb[156].mxu0 %vm5359_vm5, %v13201_v41 }
 0x935   : > { %10020 = vmatprep.mubr.msk.f32.mxu0 %vm5359_vm5, %v13212_v46  ;;  %10154 = vmatpush3.msk.msra.mxu0 %vm5408_vm4, %v13208_v49 }
 0x938   : > { %10021 = vmatmul.mubr.msk.f32.gmra.mrb[158].mxu0 %vm5359_vm5, %v13215_v52 }
 0x939   : > { %10023 = vmatprep.mubr.msk.f32.mxu0 %vm5359_vm5, %v13223_v58 }
 0x93c   : > { %10024 = vmatmul.mubr.msk.f32.gmra.mrb[160].mxu0 %vm5359_vm5, %v13225_v55 }
 0x93d   : > { %10026 = vmatprep.mubr.msk.f32.mxu0 %vm5359_vm5, %v13231_v1 }
 0x940   : > { %10027 = vmatmul.mubr.msk.f32.gmra.mrb[162].mxu0 %vm5359_vm5, %v5349_v63 }
 0x941   : > { %10029 = vmatprep.mubr.msk.f32.mxu0 %vm5359_vm5, %v5350_v7 }
 0x944   : > { %10030 = vmatmul.mubr.msk.f32.gmra.mrb[164].mxu0 %vm5359_vm5, %v5351_v48 }
 0x945   : > { %10032 = vmatprep.mubr.msk.f32.mxu0 %vm5359_vm5, %v5352_v2 }
 0x948   : > { %10033 = vmatmul.mubr.msk.f32.gmra.mrb[166].mxu0 %vm5359_vm5, %v5353_v8 }
 0x949   : > { %10035 = vmatprep.mubr.msk.f32.mxu0 %vm5359_vm5, %v5354_v18 }
 0x94c   : > { %10036 = vmatmul.mubr.msk.f32.gmra.mrb[168].mxu0 %vm5359_vm5, %v5355_v21 }
 0x94d   : > { %10038 = vmatprep.mubr.msk.f32.mxu0 %vm5359_vm5, %v5356_v25 }
 0x950   : > { %10039 = vmatmul.mubr.msk.f32.gmra.mrb[170].mxu0 %vm5359_vm5, %v5357_v26 }
 0x951   : > { %10155 = vmatprep.mubr.msk.f32.mxu0 %vm5359_vm5, %v13199_v37 }
 0x954   : > { %10156 = vmatmul.mubr.msk.f32.vlgmr.msra.gmra.mrb[172].mxu0 %vm5359_vm5, %v13201_v41 }
 0x955   : > { %10158 = vmatprep.mubr.msk.f32.mxu0 %vm5359_vm5, %v13212_v46 }
 0x958   : > { %10159 = vmatmul.mubr.msk.f32.gmra.mrb[174].mxu0 %vm5359_vm5, %v13215_v52 }
 0x959   : > { %10161 = vmatprep.mubr.msk.f32.mxu0 %vm5359_vm5, %v13223_v58  ;;  %v6486_v58 = vld [vmem:[%s13802_s17] sm:$0x3] }
 0x95a   : > { %10235 = vmatprep.subr.msk.mxu0 %vm6536_vm6, %v6486_v58 }
 0x95b   : > { %10236 = vmatpush3.msk.msra.mxu0 %vm6536_vm6, %v6486_v58 }
 0x95c   : > { %10162 = vmatmul.mubr.msk.f32.gmra.mrb[176].mxu0 %vm5359_vm5, %v13225_v55 }
 0x95d   : > { %10164 = vmatprep.mubr.msk.f32.mxu0 %vm5359_vm5, %v13231_v1 }
 0x960   : > { %10165 = vmatmul.mubr.msk.f32.gmra.mrb[178].mxu0 %vm5359_vm5, %v5349_v63 }
 0x961   : > { %10167 = vmatprep.mubr.msk.f32.mxu0 %vm5359_vm5, %v5350_v7 }
 0x964   : > { %10168 = vmatmul.mubr.msk.f32.gmra.mrb[180].mxu0 %vm5359_vm5, %v5351_v48 }
 0x965   : > { %10170 = vmatprep.mubr.msk.f32.mxu0 %vm5359_vm5, %v5352_v2 }
 0x968   : > { %10171 = vmatmul.mubr.msk.f32.gmra.mrb[182].mxu0 %vm5359_vm5, %v5353_v8 }
 0x969   : > { %10173 = vmatprep.mubr.msk.f32.mxu0 %vm5359_vm5, %v5354_v18 }
 0x96c   : > { %10174 = vmatmul.mubr.msk.f32.gmra.mrb[184].mxu0 %vm5359_vm5, %v5355_v21 }
 0x96d   : > { %10176 = vmatprep.mubr.msk.f32.mxu0 %vm5359_vm5, %v5356_v25  ;;  %v8059_v25 = vld [vmem:[%s13798_s13 + $0xa8] sm:$0xff] }
 0x970   : > { %10177 = vmatmul.mubr.msk.f32.gmra.mrb[186].mxu0 %vm5359_vm5, %v5357_v26 }
 0x9e7   : > { %v9993_v28 = vpop.f32.mrb[140].mxu0 }
 0x9e8   : > { %v5478_v29 = vpop.f32.mrb[141].mxu0 }
 0x9e9   : > { %v13295_v30 = vpack.c.bf16 %v9993_v28, %v5478_v29 }
 0x9eb   : > { %v9996_v31 = vpop.f32.mrb[142].mxu0 }
 0x9ec   : > { %v5488_v32 = vpop.f32.mrb[143].mxu0 }
 0x9ed   : > { %v13297_v33 = vpack.c.bf16 %v9996_v31, %v5488_v32  ;;  %v8062_v32 = vld [vmem:[%s13798_s13 + $0xc0] sm:$0xff] }
 0x9ef   : > { %v9999_v34 = vpop.f32.mrb[144].mxu0 }
 0x9f0   : > { %v5498_v35 = vpop.f32.mrb[145].mxu0 }
 0x9f1   : > { %v13299_v36 = vpack.c.bf16 %v9999_v34, %v5498_v35  ;;  %v8063_v35 = vld [vmem:[%s13798_s13 + $0xc8] sm:$0xff] }
 0x9f3   : > { %v10002_v37 = vpop.f32.mrb[146].mxu0 }
 0x9f4   : > { %v5508_v38 = vpop.f32.mrb[147].mxu0 }
 0x9f5   : > { %v13301_v40 = vpack.c.bf16 %v10002_v37, %v5508_v38  ;;  %v8064_v37 = vld [vmem:[%s13798_s13 + $0xd0] sm:$0xff] }
 0x9f7   : > { %v10005_v41 = vpop.f32.mrb[148].mxu0 }
 0x9f8   : > { %v5518_v43 = vpop.f32.mrb[149].mxu0 }
 0x9f9   : > { %v13303_v44 = vpack.c.bf16 %v10005_v41, %v5518_v43 }
 0x9fb   : > { %v10008_v45 = vpop.f32.mrb[150].mxu0 }
 0x9fc   : > { %v5528_v49 = vpop.f32.mrb[151].mxu0 }
 0x9fd   : > { %v13305_v46 = vpack.c.bf16 %v10008_v45, %v5528_v49  ;;  %v8066_v45 = vld [vmem:[%s13798_s13 + $0xe0] sm:$0xff] }
 0x9ff   : > { %v10011_v50 = vpop.f32.mrb[152].mxu0 }
 0xa00   : > { %v5538_v52 = vpop.f32.mrb[153].mxu0 }
 0xa01   : > { %v13307_v56 = vpack.c.bf16 %v10011_v50, %v5538_v52 }
 0xa03   : > { %v10014_v57 = vpop.f32.mrb[154].mxu0 }
 0xa04   : > { %v5548_v51 = vpop.f32.mrb[155].mxu0 }
 0xa05   : > { %v13309_v39 = vpack.c.bf16 %v10014_v57, %v5548_v51  ;;  %v8068_v57 = vld [vmem:[%s13798_s13 + $0xf0] sm:$0xff] }
 0xa07   : > { %v10019_v62 = vpop.f32.mrb[156].mxu0 }
 0xa08   : > { %v5644_v53 = vpop.f32.mrb[157].mxu0 }
 0xa09   : > { %v10896_v55 = vpack.c.bf16 %v10019_v62, %v5644_v53  ;;  %v5557_v53 = vld [vmem:[%s13798_s13] sm:$0xff] }
 0xa0b   : > { %v10022_v0 = vpop.f32.mrb[158].mxu0  ;;  %10897 = vmatprep.subr.bf16.mxu1 %v10896_v55 }
 0xa0c   : > { %v5654_v3 = vpop.f32.mrb[159].mxu0  ;;  %10899 = vmatpush3.bf16.msra.mxu1 %v10896_v55  ;;  %v5559_v55 = vld [vmem:[%s13798_s13 + $0x10] sm:$0xff] }
 0xa0d   : > { %v10900_v61 = vpack.c.bf16 %v10022_v0, %v5654_v3  ;;  %v5560_v0 = vld [vmem:[%s13798_s13 + $0x18] sm:$0xff]  ;;  %v5562_v3 = vld [vmem:[%s13798_s13 + $0x28] sm:$0xff] }
 0xa0f   : > { %v10025_v42 = vpop.f32.mrb[160].mxu0  ;;  %10901 = vmatprep.subr.bf16.mxu1 %v10900_v61 }
 0xa10   : > { %v5664_v1 = vpop.f32.mrb[161].mxu0  ;;  %10903 = vmatpush3.bf16.msra.mxu1 %v10900_v61  ;;  %v5563_v61 = vld [vmem:[%s13798_s13 + $0x30] sm:$0xff] }
 0xa11   : > { %v10904_v47 = vpack.c.bf16 %v10025_v42, %v5664_v1  ;;  %v5564_v42 = vld [vmem:[%s13798_s13 + $0x38] sm:$0xff]  ;;  %v5565_v1 = vld [vmem:[%s13798_s13 + $0x40] sm:$0xff] }
 0xa13   : > { %v10028_v4 = vpop.f32.mrb[162].mxu0  ;;  %10905 = vmatprep.subr.bf16.mxu1 %v10904_v47 }
 0xa14   : > { %v5674_v63 = vpop.f32.mrb[163].mxu0  ;;  %10907 = vmatpush3.bf16.msra.mxu1 %v10904_v47  ;;  %v5566_v47 = vld [vmem:[%s13798_s13 + $0x48] sm:$0xff] }
 0xa15   : > { %v10908_v5 = vpack.c.bf16 %v10028_v4, %v5674_v63  ;;  %v5567_v4 = vld [vmem:[%s13798_s13 + $0x50] sm:$0xff]  ;;  %v5568_v63 = vld [vmem:[%s13798_s13 + $0x58] sm:$0xff] }
 0xa17   : > { %v10031_v6 = vpop.f32.mrb[164].mxu0  ;;  %10909 = vmatprep.subr.bf16.mxu1 %v10908_v5 }
 0xa18   : > { %v5684_v59 = vpop.f32.mrb[165].mxu0  ;;  %10911 = vmatpush3.bf16.msra.mxu1 %v10908_v5  ;;  %v5569_v5 = vld [vmem:[%s13798_s13 + $0x60] sm:$0xff] }
 0xa19   : > { %v10912_v7 = vpack.c.bf16 %v10031_v6, %v5684_v59  ;;  %v5570_v6 = vld [vmem:[%s13798_s13 + $0x68] sm:$0xff]  ;;  %v5571_v59 = vld [vmem:[%s13798_s13 + $0x70] sm:$0xff] }
 0xa1b   : > { %v10034_v9 = vpop.f32.mrb[166].mxu0  ;;  %10913 = vmatprep.subr.bf16.mxu1 %v10912_v7 }
 0xa1c   : > { %v5694_v48 = vpop.f32.mrb[167].mxu0  ;;  %10915 = vmatpush3.bf16.msra.mxu1 %v10912_v7  ;;  %v5572_v7 = vld [vmem:[%s13798_s13 + $0x78] sm:$0xff] }
 0xa1d   : > { %v10916_v10 = vpack.c.bf16 %v10034_v9, %v5694_v48  ;;  %v8088_v9 = vld [vmem:[%s13798_s13 + $0x100] sm:$0xff]  ;;  %v8089_v48 = vld [vmem:[%s13798_s13 + $0x108] sm:$0xff] }
 0xa1f   : > { %v10037_v54 = vpop.f32.mrb[168].mxu0  ;;  %10917 = vmatprep.subr.bf16.mxu1 %v10916_v10 }
 0xa20   : > { %v5704_v11 = vpop.f32.mrb[169].mxu0  ;;  %10919 = vmatpush3.bf16.msra.mxu1 %v10916_v10  ;;  %v8090_v10 = vld [vmem:[%s13798_s13 + $0x110] sm:$0xff] }
 0xa21   : > { %v10920_v60 = vpack.c.bf16 %v10037_v54, %v5704_v11  ;;  %v8091_v54 = vld [vmem:[%s13798_s13 + $0x118] sm:$0xff]  ;;  %v8092_v11 = vld [vmem:[%s13798_s13 + $0x120] sm:$0xff] }
 0xa23   : > { %v10040_v12 = vpop.f32.mrb[170].mxu0  ;;  %10921 = vmatprep.subr.bf16.mxu1 %v10920_v60 }
 0xa24   : > { %v5714_v2 = vpop.f32.mrb[171].mxu0  ;;  %10923 = vmatpush3.bf16.msra.mxu1 %v10920_v60  ;;  %v8093_v60 = vld [vmem:[%s13798_s13 + $0x128] sm:$0xff] }
 0xa25   : > { %v10924_v13 = vpack.c.bf16 %v10040_v12, %v5714_v2  ;;  %v8094_v12 = vld [vmem:[%s13798_s13 + $0x130] sm:$0xff]  ;;  %v8095_v2 = vld [vmem:[%s13798_s13 + $0x138] sm:$0xff] }
 0xa27   : > { %10925 = vmatprep.subr.bf16.mxu1 %v10924_v13  ;;  %v10157_v8 = vpop.f32.mrb[172].mxu0 }
 0xa28   : > { %10927 = vmatpush3.bf16.msra.mxu1 %v10924_v13  ;;  %v6101_v15 = vpop.f32.mrb[173].mxu0  ;;  %v8096_v13 = vld [vmem:[%s13798_s13 + $0x140] sm:$0xff] }
 0xa29   : > { %v13319_v16 = vpack.c.bf16 %v10157_v8, %v6101_v15  ;;  %10929 = vmatprep.subr.bf16.mxu1 %v13295_v30  ;;  %v8097_v8 = vld [vmem:[%s13798_s13 + $0x148] sm:$0xff]  ;;  %v8098_v15 = vld [vmem:[%s13798_s13 + $0x150] sm:$0xff] }
 0xa2b   : > { %10074 = vmatmul.mubr.f32.vlgmr.msra.gmra.mrb[92].mxu1 %v8055_v14  ;;  %v10160_v18 = vpop.f32.mrb[174].mxu0  ;;  %v8099_v14 = vld [vmem:[%s13798_s13 + $0x158] sm:$0xff] }
 0xa2c   : > { %10931 = vmatpush3.bf16.msra.mxu1 %v13295_v30  ;;  %v6111_v19 = vpop.f32.mrb[175].mxu0  ;;  %10076 = vmatprep.mubr.f32.mxu1 %v8056_v17  ;;  %v8061_v30 = vld [vmem:[%s13798_s13 + $0xb8] sm:$0xff]  ;;  %v8101_v17 = vld [vmem:[%s13798_s13 + $0x168] sm:$0xff] }
 0xa2d   : > { %v13329_v21 = vpack.c.bf16 %v10160_v18, %v6111_v19  ;;  %10933 = vmatprep.subr.bf16.mxu1 %v13297_v33  ;;  %v8102_v18 = vld [vmem:[%s13798_s13 + $0x170] sm:$0xff]  ;;  %v8103_v19 = vld [vmem:[%s13798_s13 + $0x178] sm:$0xff] }
 0xa2f   : > { %10077 = vmatmul.mubr.f32.gmra.mrb[94].mxu1 %v8057_v20  ;;  %v10163_v23 = vpop.f32.mrb[176].mxu0  ;;  %v8121_v20 = vld [vmem:[%s13802_s17 + $0x2] sm:$0x3] }
 0xa30   : > { %10935 = vmatpush3.bf16.msra.mxu1 %v13297_v33  ;;  %v6121_v24 = vpop.f32.mrb[177].mxu0  ;;  %10079 = vmatprep.mubr.f32.mxu1 %v8058_v22  ;;  %v6377_v22 = vpop.permute.xlu0 %6376 }
 0xa31   : > { %v13339_v26 = vpack.c.bf16 %v10163_v23, %v6121_v24  ;;  %10937 = vmatprep.subr.bf16.mxu1 %v13299_v36  ;;  %10261 = vmatprep.subr.msk.mxu0 %vm6536_vm6, %v8121_v20 }
 0xa33   : > { %10080 = vmatmul.mubr.f32.gmra.mrb[96].mxu1 %v8059_v25  ;;  %v10166_v28 = vpop.f32.mrb[178].mxu0 }
 0xa34   : > { %10939 = vmatpush3.bf16.msra.mxu1 %v13299_v36  ;;  %v6131_v29 = vpop.f32.mrb[179].mxu0  ;;  %10082 = vmatprep.mubr.f32.mxu1 %v8060_v27  ;;  %v6387_v24 = vpop.permute.xlu0 %6386 }
 0xa35   : > { %v13349_v31 = vpack.c.bf16 %v10166_v28, %v6131_v29  ;;  %10941 = vmatprep.subr.bf16.mxu1 %v13301_v40 }
 0xa37   : > { %10083 = vmatmul.mubr.f32.gmra.mrb[98].mxu1 %v8061_v30  ;;  %v10169_v33 = vpop.f32.mrb[180].mxu0 }
 0xa38   : > { %10943 = vmatpush3.bf16.msra.mxu1 %v13301_v40  ;;  %v6141_v34 = vpop.f32.mrb[181].mxu0  ;;  %10085 = vmatprep.mubr.f32.mxu1 %v8062_v32  ;;  %v8065_v40 = vld [vmem:[%s13798_s13 + $0xd8] sm:$0xff] }
 0xa39   : > { %v10976_v36 = vpack.c.bf16 %v10169_v33, %v6141_v34  ;;  %10945 = vmatprep.subr.bf16.mxu1 %v13303_v44 }
 0xa3b   : > { %10086 = vmatmul.mubr.f32.gmra.mrb[100].mxu1 %v8063_v35  ;;  %v10172_v38 = vpop.f32.mrb[182].mxu0 }
 0xa3c   : > { %10947 = vmatpush3.bf16.msra.mxu1 %v13303_v44  ;;  %v6151_v41 = vpop.f32.mrb[183].mxu0  ;;  %10088 = vmatprep.mubr.f32.mxu1 %v8064_v37  ;;  %v8067_v44 = vld [vmem:[%s13798_s13 + $0xe8] sm:$0xff] }
 0xa3d   : > { %v10980_v43 = vpack.c.bf16 %v10172_v38, %v6151_v41  ;;  %10949 = vmatprep.subr.bf16.mxu1 %v13305_v46 }
 0xa3f   : > { %10089 = vmatmul.mubr.f32.gmra.mrb[102].mxu1 %v8065_v40  ;;  %v10175_v49 = vpop.f32.mrb[184].mxu0 }
 0xa40   : > { %10951 = vmatpush3.bf16.msra.mxu1 %v13305_v46  ;;  %v6161_v50 = vpop.f32.mrb[185].mxu0  ;;  %10091 = vmatprep.mubr.f32.mxu1 %v8066_v45  ;;  %v8069_v46 = vld [vmem:[%s13798_s13 + $0xf8] sm:$0xff] }
 0xa41   : > { %v10984_v52 = vpack.c.bf16 %v10175_v49, %v6161_v50  ;;  %10953 = vmatprep.subr.bf16.mxu1 %v13307_v56 }
 0xa43   : > { %10092 = vmatmul.mubr.f32.gmra.mrb[104].mxu1 %v8067_v44  ;;  %v10178_v51 = vpop.f32.mrb[186].mxu0 }
 0xa44   : > { %10955 = vmatpush3.bf16.msra.mxu1 %v13307_v56  ;;  %v6171_v62 = vpop.f32.mrb[187].mxu0  ;;  %10094 = vmatprep.mubr.f32.mxu1 %v8068_v57  ;;  %v5558_v56 = vld [vmem:[%s13798_s13 + $0x8] sm:$0xff] }
 0xa45   : > { %v10988_v58 = vpack.c.bf16 %v10178_v51, %v6171_v62  ;;  %10957 = vmatprep.subr.bf16.mxu1 %v13309_v39 }
 0xa47   : > { %10095 = vmatmul.mubr.f32.gmra.mrb[106].mxu1 %v8069_v46 }
 0xa48   : > { %10959 = vmatpush3.bf16.msra.mxu1 %v13309_v39  ;;  %10129 = vmatprep.mubr.f32.mxu1 %v5557_v53  ;;  %v5561_v39 = vld [vmem:[%s13798_s13 + $0x20] sm:$0xff] }
 0xa49   : > { %10961 = vmatprep.subr.bf16.mxu1 %v13319_v16 }
 0xa4b   : > { %10130 = vmatmul.mubr.f32.vlgmr.msra.gmra.mrb[92].mxu1 %v5558_v56 }
 0xa4c   : > { %10963 = vmatpush3.bf16.msra.mxu1 %v13319_v16  ;;  %10132 = vmatprep.mubr.f32.mxu1 %v5559_v55  ;;  %v8100_v16 = vld [vmem:[%s13798_s13 + $0x160] sm:$0xff] }
 0xa4d   : > { %10965 = vmatprep.subr.bf16.mxu1 %v13329_v21 }
 0xa4f   : > { %10133 = vmatmul.mubr.f32.gmra.mrb[94].mxu1 %v5560_v0 }
 0xa50   : > { %10967 = vmatpush3.bf16.msra.mxu1 %v13329_v21  ;;  %10135 = vmatprep.mubr.f32.mxu1 %v5561_v39  ;;  %v6382_v21 = vpop.permute.xlu1 %6381 }
 0xa51   : > { %10969 = vmatprep.subr.bf16.mxu1 %v13339_v26 }
 0xa53   : > { %10136 = vmatmul.mubr.f32.gmra.mrb[96].mxu1 %v5562_v3 }
 0xa54   : > { %10971 = vmatpush3.bf16.msra.mxu1 %v13339_v26  ;;  %10138 = vmatprep.mubr.f32.mxu1 %v5563_v61  ;;  %v6392_v23 = vpop.permute.xlu1 %6391  ;;  %v6397_v26 = vpop.permute.xlu0 %6396 }
 0xa55   : > { %10973 = vmatprep.subr.bf16.mxu1 %v13349_v31 }
 0xa57   : > { %10139 = vmatmul.mubr.f32.gmra.mrb[98].mxu1 %v5564_v42 }
 0xa58   : > { %10975 = vmatpush3.bf16.msra.mxu1 %v13349_v31  ;;  %10141 = vmatprep.mubr.f32.mxu1 %v5565_v1  ;;  %v6402_v25 = vpop.permute.xlu1 %6401  ;;  %v6407_v34 = vpop.permute.xlu0 %6406 }
 0xa59   : > { %10977 = vmatprep.subr.bf16.mxu1 %v10976_v36 }
 0xa5b   : > { %10142 = vmatmul.mubr.f32.gmra.mrb[100].mxu1 %v5566_v47 }
 0xa5c   : > { %10979 = vmatpush3.bf16.msra.mxu1 %v10976_v36  ;;  %10144 = vmatprep.mubr.f32.mxu1 %v5567_v4  ;;  %v6412_v31 = vpop.permute.xlu1 %6411 }
 0xa5d   : > { %10981 = vmatprep.subr.bf16.mxu1 %v10980_v43 }
 0xa5f   : > { %10145 = vmatmul.mubr.f32.gmra.mrb[102].mxu1 %v5568_v63 }
 0xa60   : > { %10983 = vmatpush3.bf16.msra.mxu1 %v10980_v43  ;;  %10147 = vmatprep.mubr.f32.mxu1 %v5569_v5  ;;  %v6422_v50 = vpop.permute.xlu1 %6421 }
 0xa61   : > { %10985 = vmatprep.subr.bf16.mxu1 %v10984_v52 }
 0xa63   : > { %10148 = vmatmul.mubr.f32.gmra.mrb[104].mxu1 %v5570_v6 }
 0xa64   : > { %10987 = vmatpush3.bf16.msra.mxu1 %v10984_v52  ;;  %10150 = vmatprep.mubr.f32.mxu1 %v5571_v59  ;;  %v6417_v52 = vpop.permute.xlu0 %6416  ;;  %v6432_v56 = vpop.permute.xlu1 %6431 }
 0xa65   : > { %10989 = vmatprep.subr.bf16.mxu1 %v10988_v58 }
 0xa67   : > { %10151 = vmatmul.mubr.f32.gmra.mrb[106].mxu1 %v5572_v7 }
 0xa68   : > { %10991 = vmatpush3.bf16.msra.mxu1 %v10988_v58  ;;  %10211 = vmatprep.mubr.f32.mxu1 %v8088_v9  ;;  %v6427_v39 = vpop.permute.xlu0 %6426  ;;  %v6442_v59 = vpop.permute.xlu1 %6441 }
 0xa6b   : > { %10212 = vmatmul.mubr.f32.vlgmr.msra.gmra.mrb[92].mxu1 %v8089_v48 }
 0xa6c   : > { %10214 = vmatprep.mubr.f32.mxu1 %v8090_v10  ;;  %v6437_v9 = vpop.permute.xlu0 %6436 }
 0xa6f   : > { %10215 = vmatmul.mubr.f32.gmra.mrb[94].mxu1 %v8091_v54 }
 0xa70   : > { %10217 = vmatprep.mubr.f32.mxu1 %v8092_v11 }
 0xa73   : > { %10218 = vmatmul.mubr.f32.gmra.mrb[96].mxu1 %v8093_v60 }
 0xa74   : > { %10220 = vmatprep.mubr.f32.mxu1 %v8094_v12 }
 0xa77   : > { %10221 = vmatmul.mubr.f32.gmra.mrb[98].mxu1 %v8095_v2  ;;  %v6452_v2 = vpop.permute.xlu1 %6451 }
 0xa78   : > { %10223 = vmatprep.mubr.f32.mxu1 %v8096_v13 }
 0xa7b   : > { %10224 = vmatmul.mubr.f32.gmra.mrb[100].mxu1 %v8097_v8 }
 0xa7c   : > { %10226 = vmatprep.mubr.f32.mxu1 %v8098_v15  ;;  %v6447_v15 = vpop.permute.xlu0 %6446 }
 0xa7f   : > { %10227 = vmatmul.mubr.f32.gmra.mrb[102].mxu1 %v8099_v14 }
 0xa80   : > { %10229 = vmatprep.mubr.f32.mxu1 %v8100_v16 }
 0xa83   : > { %10230 = vmatmul.mubr.f32.gmra.mrb[104].mxu1 %v8101_v17 }
 0xa84   : > { %10232 = vmatprep.mubr.f32.mxu1 %v8102_v18 }
 0xa87   : > { %10233 = vmatmul.mubr.f32.gmra.mrb[106].mxu1 %v8103_v19 }
 0xb3e   : > { %v10213_v27 = vpop.f32.mrb[92].mxu1 }
 0xb3f   : > { %v13493_v28 = vadd.f32 %v10213_v27, %v6382_v21  ;;  %v6263_v29 = vpop.f32.mrb[93].mxu1  ;;  %v8139_v21 = vld [vmem:[%s13801_s16 + $0x80] sm:$0xff] }
 0xb40   : > { %v13495_v30 = vadd.f32 %v6377_v22, %v6263_v29  ;;  %10319 = vmatprep.mubr.f32.mxu1 %v8139_v21  ;;  %v6685_v21 = vld [vmem:[%s13801_s16] sm:$0xff] }
 0xb41   : > { %v6471_v35 = vmax.f32 %v13493_v28, 0.0 }
 0xb42   : > { %v6470_v32 = vmax.f32 %v13495_v30, 0.0  ;;  %v10216_v33 = vpop.f32.mrb[94].mxu1 }
 0xb43   : > { %v13499_v36 = vadd.f32 %v10216_v33, %v6392_v23  ;;  %v6273_v37 = vpop.f32.mrb[95].mxu1 }
 0xb44   : > { %v13501_v38 = vadd.f32 %v6387_v24, %v6273_v37  ;;  %10237 = vmatprep.mubr.msk.f32.mxu0 %vm6487_vm7, %v6470_v32 }
 0xb45   : > { %10238 = vmatmul.mubr.msk.f32.vlgmr.msra.gmra.mrb[188].mxu0 %vm6487_vm7, %v6471_v35  ;;  %v6473_v43 = vmax.f32 %v13499_v36, 0.0 }
 0xb46   : > { %v6472_v41 = vmax.f32 %v13501_v38, 0.0  ;;  %v10219_v40 = vpop.f32.mrb[96].mxu1  ;;  %10262 = vmatpush3.msk.msra.mxu0 %vm6536_vm6, %v8121_v20 }
 0xb47   : > { %v13512_v45 = vadd.f32 %v10219_v40, %v6402_v25  ;;  %v6283_v49 = vpop.f32.mrb[97].mxu1 }
 0xb48   : > { %v6458_v44 = vadd.f32 %v6397_v26, %v6283_v49  ;;  %10240 = vmatprep.mubr.msk.f32.mxu0 %vm6487_vm7, %v6472_v41 }
 0xb49   : > { %10241 = vmatmul.mubr.msk.f32.gmra.mrb[190].mxu0 %vm6487_vm7, %v6473_v43  ;;  %v6475_v62 = vmax.f32 %v13512_v45, 0.0 }
 0xb4a   : > { %v6474_v57 = vmax.f32 %v6458_v44, 0.0  ;;  %v10222_v51 = vpop.f32.mrb[98].mxu1 }
 0xb4b   : > { %v6461_v46 = vadd.f32 %v10222_v51, %v6412_v31  ;;  %v6293_v58 = vpop.f32.mrb[99].mxu1 }
 0xb4c   : > { %v6460_v53 = vadd.f32 %v6407_v34, %v6293_v58  ;;  %10243 = vmatprep.mubr.msk.f32.mxu0 %vm6487_vm7, %v6474_v57 }
 0xb4d   : > { %10244 = vmatmul.mubr.msk.f32.gmra.mrb[192].mxu0 %vm6487_vm7, %v6475_v62  ;;  %v6477_v3 = vmax.f32 %v6461_v46, 0.0 }
 0xb4e   : > { %v6476_v55 = vmax.f32 %v6460_v53, 0.0  ;;  %v10225_v0 = vpop.f32.mrb[100].mxu1 }
 0xb4f   : > { %v6463_v61 = vadd.f32 %v10225_v0, %v6422_v50  ;;  %v6303_v42 = vpop.f32.mrb[101].mxu1 }
 0xb50   : > { %v6462_v1 = vadd.f32 %v6417_v52, %v6303_v42  ;;  %10246 = vmatprep.mubr.msk.f32.mxu0 %vm6487_vm7, %v6476_v55 }
 0xb51   : > { %10247 = vmatmul.mubr.msk.f32.gmra.mrb[194].mxu0 %vm6487_vm7, %v6477_v3  ;;  %v6479_v63 = vmax.f32 %v6463_v61, 0.0 }
 0xb52   : > { %v6478_v47 = vmax.f32 %v6462_v1, 0.0  ;;  %v10228_v4 = vpop.f32.mrb[102].mxu1 }
 0xb53   : > { %v6465_v5 = vadd.f32 %v10228_v4, %v6432_v56  ;;  %v6313_v6 = vpop.f32.mrb[103].mxu1 }
 0xb54   : > { %v6464_v7 = vadd.f32 %v6427_v39, %v6313_v6  ;;  %10249 = vmatprep.mubr.msk.f32.mxu0 %vm6487_vm7, %v6478_v47 }
 0xb55   : > { %10250 = vmatmul.mubr.msk.f32.gmra.mrb[196].mxu0 %vm6487_vm7, %v6479_v63  ;;  %v6481_v54 = vmax.f32 %v6465_v5, 0.0 }
 0xb56   : > { %v6480_v48 = vmax.f32 %v6464_v7, 0.0  ;;  %v10231_v10 = vpop.f32.mrb[104].mxu1 }
 0xb57   : > { %v6467_v11 = vadd.f32 %v10231_v10, %v6442_v59  ;;  %v6323_v60 = vpop.f32.mrb[105].mxu1  ;;  %v8140_v10 = vld [vmem:[%s13801_s16 + $0x88] sm:$0xff] }
 0xb58   : > { %v6466_v12 = vadd.f32 %v6437_v9, %v6323_v60  ;;  %10252 = vmatprep.mubr.msk.f32.mxu0 %vm6487_vm7, %v6480_v48  ;;  %v8143_v60 = vld [vmem:[%s13801_s16 + $0xa0] sm:$0xff] }
 0xb59   : > { %10253 = vmatmul.mubr.msk.f32.gmra.mrb[198].mxu0 %vm6487_vm7, %v6481_v54  ;;  %v6483_v14 = vmax.f32 %v6467_v11, 0.0  ;;  %v8142_v11 = vld [vmem:[%s13801_s16 + $0x98] sm:$0xff] }
 0xb5a   : > { %v6482_v13 = vmax.f32 %v6466_v12, 0.0  ;;  %v10234_v8 = vpop.f32.mrb[106].mxu1  ;;  %v8144_v12 = vld [vmem:[%s13801_s16 + $0xa8] sm:$0xff] }
 0xb5b   : > { %v6469_v16 = vadd.f32 %v10234_v8, %v6452_v2  ;;  %v6333_v17 = vpop.f32.mrb[107].mxu1  ;;  %v8145_v2 = vld [vmem:[%s13801_s16 + $0xb0] sm:$0xff]  ;;  %v8147_v8 = vld [vmem:[%s13801_s16 + $0xc0] sm:$0xff] }
 0xb5c   : > { %v6468_v18 = vadd.f32 %v6447_v15, %v6333_v17  ;;  %10255 = vmatprep.mubr.msk.f32.mxu0 %vm6487_vm7, %v6482_v13  ;;  %v8148_v15 = vld [vmem:[%s13801_s16 + $0xc8] sm:$0xff]  ;;  %v8151_v17 = vld [vmem:[%s13801_s16 + $0xe0] sm:$0xff] }
 0xb5d   : > { %10256 = vmatmul.mubr.msk.f32.gmra.mrb[200].mxu0 %vm6487_vm7, %v6483_v14  ;;  %v6485_v20 = vmax.f32 %v6469_v16, 0.0  ;;  %v8150_v16 = vld [vmem:[%s13801_s16 + $0xd8] sm:$0xff] }
 0xb5e   : > { %v6484_v19 = vmax.f32 %v6468_v18, 0.0  ;;  %v8152_v18 = vld [vmem:[%s13801_s16 + $0xe8] sm:$0xff] }
 0xb60   : > { %10258 = vmatprep.mubr.msk.f32.mxu0 %vm6487_vm7, %v6484_v19 }
 0xb61   : > { %10259 = vmatmul.mubr.msk.f32.gmra.mrb[202].mxu0 %vm6487_vm7, %v6485_v20 }
 0xb62   : > { %10263 = vmatprep.mubr.msk.f32.mxu0 %vm6487_vm7, %v6470_v32 }
 0xb65   : > { %10264 = vmatmul.mubr.msk.f32.vlgmr.msra.gmra.mrb[204].mxu0 %vm6487_vm7, %v6471_v35 }
 0xb66   : > { %10266 = vmatprep.mubr.msk.f32.mxu0 %vm6487_vm7, %v6472_v41 }
 0xb69   : > { %10267 = vmatmul.mubr.msk.f32.gmra.mrb[206].mxu0 %vm6487_vm7, %v6473_v43 }
 0xb6a   : > { %10269 = vmatprep.mubr.msk.f32.mxu0 %vm6487_vm7, %v6474_v57 }
 0xb6d   : > { %10270 = vmatmul.mubr.msk.f32.gmra.mrb[208].mxu0 %vm6487_vm7, %v6475_v62 }
 0xb6e   : > { %10272 = vmatprep.mubr.msk.f32.mxu0 %vm6487_vm7, %v6476_v55 }
 0xb71   : > { %10273 = vmatmul.mubr.msk.f32.gmra.mrb[210].mxu0 %vm6487_vm7, %v6477_v3 }
 0xb72   : > { %10275 = vmatprep.mubr.msk.f32.mxu0 %vm6487_vm7, %v6478_v47 }
 0xb75   : > { %10276 = vmatmul.mubr.msk.f32.gmra.mrb[212].mxu0 %vm6487_vm7, %v6479_v63 }
 0xb76   : > { %10278 = vmatprep.mubr.msk.f32.mxu0 %vm6487_vm7, %v6480_v48 }
 0xb79   : > { %10279 = vmatmul.mubr.msk.f32.gmra.mrb[214].mxu0 %vm6487_vm7, %v6481_v54  ;;  %v8141_v54 = vld [vmem:[%s13801_s16 + $0x90] sm:$0xff] }
 0xb7a   : > { %10281 = vmatprep.mubr.msk.f32.mxu0 %vm6487_vm7, %v6482_v13  ;;  %v8146_v13 = vld [vmem:[%s13801_s16 + $0xb8] sm:$0xff] }
 0xb7d   : > { %10282 = vmatmul.mubr.msk.f32.gmra.mrb[216].mxu0 %vm6487_vm7, %v6483_v14  ;;  %v8149_v14 = vld [vmem:[%s13801_s16 + $0xd0] sm:$0xff] }
 0xb7e   : > { %10284 = vmatprep.mubr.msk.f32.mxu0 %vm6487_vm7, %v6484_v19  ;;  %v8153_v19 = vld [vmem:[%s13801_s16 + $0xf0] sm:$0xff] }
 0xb81   : > { %10285 = vmatmul.mubr.msk.f32.gmra.mrb[218].mxu0 %vm6487_vm7, %v6485_v20  ;;  %v8154_v20 = vld [vmem:[%s13801_s16 + $0xf8] sm:$0xff] }
 0xc18   : > { %v10239_v22 = vpop.f32.mrb[188].mxu0 }
 0xc19   : > { %v6606_v23 = vpop.f32.mrb[189].mxu0 }
 0xc1a   : > { %v13556_v24 = vpack.c.bf16 %v10239_v22, %v6606_v23  ;;  %v6686_v22 = vld [vmem:[%s13801_s16 + $0x8] sm:$0xff]  ;;  %v6687_v23 = vld [vmem:[%s13801_s16 + $0x10] sm:$0xff] }
 0xc1c   : > { %v10242_v25 = vpop.f32.mrb[190].mxu0 }
 0xc1d   : > { %v6616_v26 = vpop.f32.mrb[191].mxu0 }
 0xc1e   : > { %v13558_v27 = vpack.c.bf16 %v10242_v25, %v6616_v26  ;;  %v6689_v25 = vld [vmem:[%s13801_s16 + $0x20] sm:$0xff]  ;;  %v6690_v26 = vld [vmem:[%s13801_s16 + $0x28] sm:$0xff] }
 0xc20   : > { %v10245_v28 = vpop.f32.mrb[192].mxu0 }
 0xc21   : > { %v6626_v29 = vpop.f32.mrb[193].mxu0 }
 0xc22   : > { %v13560_v30 = vpack.c.bf16 %v10245_v28, %v6626_v29  ;;  %v6692_v28 = vld [vmem:[%s13801_s16 + $0x38] sm:$0xff]  ;;  %v6693_v29 = vld [vmem:[%s13801_s16 + $0x40] sm:$0xff] }
 0xc24   : > { %v10248_v31 = vpop.f32.mrb[194].mxu0 }
 0xc25   : > { %v6636_v32 = vpop.f32.mrb[195].mxu0 }
 0xc26   : > { %v13562_v33 = vpack.c.bf16 %v10248_v31, %v6636_v32  ;;  %v6695_v31 = vld [vmem:[%s13801_s16 + $0x50] sm:$0xff]  ;;  %v6696_v32 = vld [vmem:[%s13801_s16 + $0x58] sm:$0xff] }
 0xc28   : > { %v10251_v34 = vpop.f32.mrb[196].mxu0 }
 0xc29   : > { %v6646_v35 = vpop.f32.mrb[197].mxu0 }
 0xc2a   : > { %v13564_v36 = vpack.c.bf16 %v10251_v34, %v6646_v35  ;;  %v6698_v34 = vld [vmem:[%s13801_s16 + $0x68] sm:$0xff]  ;;  %v6699_v35 = vld [vmem:[%s13801_s16 + $0x70] sm:$0xff] }
 0xc2c   : > { %v10254_v37 = vpop.f32.mrb[198].mxu0 }
 0xc2d   : > { %v6656_v38 = vpop.f32.mrb[199].mxu0 }
 0xc2e   : > { %v13566_v41 = vpack.c.bf16 %v10254_v37, %v6656_v38  ;;  %v7206_v37 = vld [vmem:[#allocation3] sm:$0xff] }
 0xc2f   : > { %10431 = vmatprep.mubr.f32.mxu0 %v7206_v37  ;;  %v7159_v38 = vld [vmem:[%s13803_s18 + $0x8] sm:$0xff] }
 0xc30   : > { %v10257_v40 = vpop.f32.mrb[200].mxu0 }
 0xc31   : > { %v6666_v43 = vpop.f32.mrb[201].mxu0 }
 0xc32   : > { %v13568_v45 = vpack.c.bf16 %v10257_v40, %v6666_v43 }
 0xc34   : > { %v10260_v49 = vpop.f32.mrb[202].mxu0 }
 0xc35   : > { %v6676_v50 = vpop.f32.mrb[203].mxu0 }
 0xc36   : > { %v13570_v44 = vpack.c.bf16 %v10260_v49, %v6676_v50  ;;  %v7161_v50 = vld [vmem:[%s13803_s18 + $0x18] sm:$0xff] }
 0xc38   : > { %v10265_v52 = vpop.f32.mrb[204].mxu0 }
 0xc39   : > { %v6772_v57 = vpop.f32.mrb[205].mxu0 }
 0xc3a   : > { %v10992_v51 = vpack.c.bf16 %v10265_v52, %v6772_v57  ;;  %v7160_v52 = vld [vmem:[%s13803_s18 + $0x10] sm:$0xff] }
 0xc3c   : > { %v10268_v62 = vpop.f32.mrb[206].mxu0  ;;  %10993 = vmatprep.subr.bf16.mxu1 %v10992_v51 }
 0xc3d   : > { %v6782_v46 = vpop.f32.mrb[207].mxu0  ;;  %10995 = vmatpush3.bf16.msra.mxu1 %v10992_v51 }
 0xc3e   : > { %v10996_v58 = vpack.c.bf16 %v10268_v62, %v6782_v46 }
 0xc40   : > { %v10271_v53 = vpop.f32.mrb[208].mxu0  ;;  %10997 = vmatprep.subr.bf16.mxu1 %v10996_v58 }
 0xc41   : > { %v6792_v56 = vpop.f32.mrb[209].mxu0  ;;  %10999 = vmatpush3.bf16.msra.mxu1 %v10996_v58 }
 0xc42   : > { %v11000_v55 = vpack.c.bf16 %v10271_v53, %v6792_v56  ;;  %v7163_v56 = vld [vmem:[%s13803_s18 + $0x28] sm:$0xff] }
 0xc44   : > { %v10274_v0 = vpop.f32.mrb[210].mxu0  ;;  %11001 = vmatprep.subr.bf16.mxu1 %v11000_v55 }
 0xc45   : > { %v6802_v39 = vpop.f32.mrb[211].mxu0  ;;  %11003 = vmatpush3.bf16.msra.mxu1 %v11000_v55 }
 0xc46   : > { %v11004_v3 = vpack.c.bf16 %v10274_v0, %v6802_v39  ;;  %v7162_v0 = vld [vmem:[%s13803_s18 + $0x20] sm:$0xff] }
 0xc48   : > { %v10277_v61 = vpop.f32.mrb[212].mxu0  ;;  %11005 = vmatprep.subr.bf16.mxu1 %v11004_v3 }
 0xc49   : > { %v6812_v42 = vpop.f32.mrb[213].mxu0  ;;  %11007 = vmatpush3.bf16.msra.mxu1 %v11004_v3 }
 0xc4a   : > { %v11008_v1 = vpack.c.bf16 %v10277_v61, %v6812_v42 }
 0xc4c   : > { %v10280_v47 = vpop.f32.mrb[214].mxu0  ;;  %11009 = vmatprep.subr.bf16.mxu1 %v11008_v1 }
 0xc4d   : > { %v6822_v4 = vpop.f32.mrb[215].mxu0  ;;  %11011 = vmatpush3.bf16.msra.mxu1 %v11008_v1 }
 0xc4e   : > { %v11012_v63 = vpack.c.bf16 %v10280_v47, %v6822_v4  ;;  %v7165_v4 = vld [vmem:[%s13803_s18 + $0x38] sm:$0xff] }
 0xc50   : > { %v10283_v5 = vpop.f32.mrb[216].mxu0  ;;  %11013 = vmatprep.subr.bf16.mxu1 %v11012_v63 }
 0xc51   : > { %v6832_v6 = vpop.f32.mrb[217].mxu0  ;;  %11015 = vmatpush3.bf16.msra.mxu1 %v11012_v63 }
 0xc52   : > { %v11016_v59 = vpack.c.bf16 %v10283_v5, %v6832_v6  ;;  %v7164_v5 = vld [vmem:[%s13803_s18 + $0x30] sm:$0xff] }
 0xc54   : > { %v10286_v7 = vpop.f32.mrb[218].mxu0  ;;  %11017 = vmatprep.subr.bf16.mxu1 %v11016_v59 }
 0xc55   : > { %v6842_v9 = vpop.f32.mrb[219].mxu0  ;;  %11019 = vmatpush3.bf16.msra.mxu1 %v11016_v59 }
 0xc56   : > { %v11020_v48 = vpack.c.bf16 %v10286_v7, %v6842_v9 }
 0xc58   : > { %11021 = vmatprep.subr.bf16.mxu1 %v11020_v48 }
 0xc59   : > { %11023 = vmatpush3.bf16.msra.mxu1 %v11020_v48 }
 0xc5a   : > { %11025 = vmatprep.subr.bf16.mxu1 %v13556_v24 }
 0xc5c   : > { %10320 = vmatmul.mubr.f32.vlgmr.msra.gmra.mrb[108].mxu1 %v8140_v10 }
 0xc5d   : > { %11027 = vmatpush3.bf16.msra.mxu1 %v13556_v24  ;;  %10322 = vmatprep.mubr.f32.mxu1 %v8141_v54  ;;  %v6688_v24 = vld [vmem:[%s13801_s16 + $0x18] sm:$0xff]  ;;  %v7167_v54 = vld [vmem:[%s13803_s18 + $0x48] sm:$0xff] }
 0xc5e   : > { %11029 = vmatprep.subr.bf16.mxu1 %v13558_v27 }
 0xc60   : > { %10323 = vmatmul.mubr.f32.gmra.mrb[110].mxu1 %v8142_v11 }
 0xc61   : > { %11031 = vmatpush3.bf16.msra.mxu1 %v13558_v27  ;;  %10325 = vmatprep.mubr.f32.mxu1 %v8143_v60  ;;  %v6691_v27 = vld [vmem:[%s13801_s16 + $0x30] sm:$0xff]  ;;  %v7166_v60 = vld [vmem:[%s13803_s18 + $0x40] sm:$0xff] }
 0xc62   : > { %11033 = vmatprep.subr.bf16.mxu1 %v13560_v30 }
 0xc64   : > { %10326 = vmatmul.mubr.f32.gmra.mrb[112].mxu1 %v8144_v12 }
 0xc65   : > { %11035 = vmatpush3.bf16.msra.mxu1 %v13560_v30  ;;  %10328 = vmatprep.mubr.f32.mxu1 %v8145_v2  ;;  %v6694_v30 = vld [vmem:[%s13801_s16 + $0x48] sm:$0xff] }
 0xc66   : > { %11037 = vmatprep.subr.bf16.mxu1 %v13562_v33 }
 0xc68   : > { %10329 = vmatmul.mubr.f32.gmra.mrb[114].mxu1 %v8146_v13 }
 0xc69   : > { %11039 = vmatpush3.bf16.msra.mxu1 %v13562_v33  ;;  %10331 = vmatprep.mubr.f32.mxu1 %v8147_v8  ;;  %v6697_v33 = vld [vmem:[%s13801_s16 + $0x60] sm:$0xff] }
 0xc6a   : > { %11041 = vmatprep.subr.bf16.mxu1 %v13564_v36 }
 0xc6c   : > { %10332 = vmatmul.mubr.f32.gmra.mrb[116].mxu1 %v8148_v15 }
 0xc6d   : > { %11043 = vmatpush3.bf16.msra.mxu1 %v13564_v36  ;;  %10334 = vmatprep.mubr.f32.mxu1 %v8149_v14  ;;  %v6700_v36 = vld [vmem:[%s13801_s16 + $0x78] sm:$0xff] }
 0xc6e   : > { %11045 = vmatprep.subr.bf16.mxu1 %v13566_v41 }
 0xc70   : > { %10335 = vmatmul.mubr.f32.gmra.mrb[118].mxu1 %v8150_v16  ;;  %v7169_v16 = vld [vmem:[%s13803_s18 + $0x58] sm:$0xff] }
 0xc71   : > { %11047 = vmatpush3.bf16.msra.mxu1 %v13566_v41  ;;  %10337 = vmatprep.mubr.f32.mxu1 %v8151_v17  ;;  %v7158_v41 = vld [vmem:[%s13803_s18] sm:$0xff] }
 0xc72   : > { %11049 = vmatprep.subr.bf16.mxu1 %v13568_v45 }
 0xc74   : > { %10338 = vmatmul.mubr.f32.gmra.mrb[120].mxu1 %v8152_v18  ;;  %v7168_v18 = vld [vmem:[%s13803_s18 + $0x50] sm:$0xff] }
 0xc75   : > { %11051 = vmatpush3.bf16.msra.mxu1 %v13568_v45  ;;  %10340 = vmatprep.mubr.f32.mxu1 %v8153_v19 }
 0xc76   : > { %11053 = vmatprep.subr.bf16.mxu1 %v13570_v44 }
 0xc78   : > { %10341 = vmatmul.mubr.f32.gmra.mrb[122].mxu1 %v8154_v20 }
 0xc79   : > { %11055 = vmatpush3.bf16.msra.mxu1 %v13570_v44  ;;  %10375 = vmatprep.mubr.f32.mxu1 %v6685_v21 }
 0xc7c   : > { %10376 = vmatmul.mubr.f32.vlgmr.msra.gmra.mrb[108].mxu1 %v6686_v22 }
 0xc7d   : > { %10378 = vmatprep.mubr.f32.mxu1 %v6687_v23 }
 0xc80   : > { %10379 = vmatmul.mubr.f32.gmra.mrb[110].mxu1 %v6688_v24 }
 0xc81   : > { %10381 = vmatprep.mubr.f32.mxu1 %v6689_v25  ;;  %v7171_v25 = vld [vmem:[%s13803_s18 + $0x68] sm:$0xff] }
 0xc84   : > { %10382 = vmatmul.mubr.f32.gmra.mrb[112].mxu1 %v6690_v26 }
 0xc85   : > { %10384 = vmatprep.mubr.f32.mxu1 %v6691_v27  ;;  %v7170_v27 = vld [vmem:[%s13803_s18 + $0x60] sm:$0xff] }
 0xc88   : > { %10385 = vmatmul.mubr.f32.gmra.mrb[114].mxu1 %v6692_v28 }
 0xc89   : > { %10387 = vmatprep.mubr.f32.mxu1 %v6693_v29 }
 0xc8c   : > { %10388 = vmatmul.mubr.f32.gmra.mrb[116].mxu1 %v6694_v30 }
 0xc8d   : > { %10390 = vmatprep.mubr.f32.mxu1 %v6695_v31 }
 0xc90   : > { %10391 = vmatmul.mubr.f32.gmra.mrb[118].mxu1 %v6696_v32 }
 0xc91   : > { %10393 = vmatprep.mubr.f32.mxu1 %v6697_v33 }
 0xc94   : > { %10394 = vmatmul.mubr.f32.gmra.mrb[120].mxu1 %v6698_v34  ;;  %v7173_v34 = vld [vmem:[%s13803_s18 + $0x78] sm:$0xff] }
 0xc95   : > { %10396 = vmatprep.mubr.f32.mxu1 %v6699_v35 }
 0xc98   : > { %10397 = vmatmul.mubr.f32.gmra.mrb[122].mxu1 %v6700_v36  ;;  %v7172_v36 = vld [vmem:[%s13803_s18 + $0x70] sm:$0xff] }
 0xd4f   : > { %v10377_v40 = vpop.f32.mrb[108].mxu1 }
 0xd50   : > { %v7175_v43 = vadd.f32 %v10377_v40, %v7159_v38  ;;  %v7079_v45 = vpop.f32.mrb[109].mxu1 }
 0xd51   : > { %v7174_v49 = vadd.f32 %v7158_v41, %v7079_v45 }
 0xd52   : > { %v7191_v44 = vmax.f32 %v7175_v43, 0.0 }
 0xd53   : > { %v7190_v57 = vmax.f32 %v7174_v49, 0.0  ;;  %v10380_v51 = vpop.f32.mrb[110].mxu1 }
 0xd54   : > { %v7177_v62 = vadd.f32 %v10380_v51, %v7161_v50  ;;  %v7089_v46 = vpop.f32.mrb[111].mxu1  ;;  %v7209_v51 = vld [vmem:[#allocation3 + $0x18] sm:$0xff] }
 0xd55   : > { %v11056_v58 = vpack.c.bf16 %v7191_v44, %v7190_v57  ;;  %v7176_v53 = vadd.f32 %v7160_v52, %v7089_v46  ;;  %v7207_v52 = vld [vmem:[#allocation3 + $0x8] sm:$0xff]  ;;  %v7208_v57 = vld [vmem:[#allocation3 + $0x10] sm:$0xff] }
 0xd56   : > { %v7193_v55 = vmax.f32 %v7177_v62, 0.0  ;;  %v7210_v62 = vld [vmem:[#allocation3 + $0x20] sm:$0xff]  ;;  %v7211_v46 = vld [vmem:[#allocation3 + $0x28] sm:$0xff] }
 0xd57   : > { %v7192_v39 = vmax.f32 %v7176_v53, 0.0  ;;  %v10383_v3 = vpop.f32.mrb[112].mxu1  ;;  %11057 = vmatprep.subr.bf16.mxu0 %v11056_v58  ;;  %v7213_v53 = vld [vmem:[#allocation3 + $0x38] sm:$0xff] }
 0xd58   : > { %v7179_v61 = vadd.f32 %v10383_v3, %v7163_v56  ;;  %v7099_v42 = vpop.f32.mrb[113].mxu1  ;;  %11059 = vmatpush3.bf16.msra.mxu0 %v11056_v58  ;;  %v7212_v58 = vld [vmem:[#allocation3 + $0x30] sm:$0xff]  ;;  %v7327_v56 = vld [vmem:[#allocation5] sm:$0xff] }
 0xd59   : > { %v11060_v1 = vpack.c.bf16 %v7193_v55, %v7192_v39  ;;  %v7178_v47 = vadd.f32 %v7162_v0, %v7099_v42  ;;  %v7215_v55 = vld [vmem:[%s13805_s20 + $0x8] sm:$0xff]  ;;  %v7214_v0 = vld [vmem:[%s13805_s20] sm:$0xff] }
 0xd5a   : > { %v7195_v63 = vmax.f32 %v7179_v61, 0.0 }
 0xd5b   : > { %v7194_v6 = vmax.f32 %v7178_v47, 0.0  ;;  %v10386_v59 = vpop.f32.mrb[114].mxu1  ;;  %11061 = vmatprep.subr.bf16.mxu0 %v11060_v1  ;;  %v7216_v47 = vld [vmem:[%s13805_s20 + $0x10] sm:$0xff] }
 0xd5c   : > { %v7181_v7 = vadd.f32 %v10386_v59, %v7165_v4  ;;  %v7109_v9 = vpop.f32.mrb[115].mxu1  ;;  %11063 = vmatpush3.bf16.msra.mxu0 %v11060_v1  ;;  %v7217_v1 = vld [vmem:[%s13805_s20 + $0x18] sm:$0xff] }
 0xd5d   : > { %v11064_v48 = vpack.c.bf16 %v7195_v63, %v7194_v6  ;;  %v7180_v10 = vadd.f32 %v7164_v5, %v7109_v9  ;;  %v7218_v9 = vld [vmem:[%s13805_s20 + $0x20] sm:$0xff] }
 0xd5e   : > { %v7197_v11 = vmax.f32 %v7181_v7, 0.0  ;;  %v7219_v7 = vld [vmem:[%s13805_s20 + $0x28] sm:$0xff] }
 0xd5f   : > { %v7196_v12 = vmax.f32 %v7180_v10, 0.0  ;;  %v10389_v2 = vpop.f32.mrb[116].mxu1  ;;  %11065 = vmatprep.subr.bf16.mxu0 %v11064_v48 }
 0xd60   : > { %v7183_v13 = vadd.f32 %v10389_v2, %v7167_v54  ;;  %v7119_v8 = vpop.f32.mrb[117].mxu1  ;;  %11067 = vmatpush3.bf16.msra.mxu0 %v11064_v48  ;;  %v7220_v2 = vld [vmem:[%s13805_s20 + $0x30] sm:$0xff] }
 0xd61   : > { %v11068_v15 = vpack.c.bf16 %v7197_v11, %v7196_v12  ;;  %v7182_v14 = vadd.f32 %v7166_v60, %v7119_v8  ;;  %v7221_v12 = vld [vmem:[%s13805_s20 + $0x38] sm:$0xff] }
 0xd62   : > { %v7199_v17 = vmax.f32 %v7183_v13, 0.0 }
 0xd63   : > { %v7198_v19 = vmax.f32 %v7182_v14, 0.0  ;;  %v10392_v20 = vpop.f32.mrb[118].mxu1  ;;  %11069 = vmatprep.subr.bf16.mxu0 %v11068_v15 }
 0xd64   : > { %v7185_v21 = vadd.f32 %v10392_v20, %v7169_v16  ;;  %v7129_v22 = vpop.f32.mrb[119].mxu1  ;;  %11071 = vmatpush3.bf16.msra.mxu0 %v11068_v15  ;;  %v7330_v20 = vld [vmem:[#allocation5 + $0x18] sm:$0xff] }
 0xd65   : > { %v11072_v23 = vpack.c.bf16 %v7199_v17, %v7198_v19  ;;  %v7184_v24 = vadd.f32 %v7168_v18, %v7129_v22  ;;  %v7328_v18 = vld [vmem:[#allocation5 + $0x8] sm:$0xff]  ;;  %v7329_v19 = vld [vmem:[#allocation5 + $0x10] sm:$0xff]  ;;  %v11445_v22 = vmov 0.0  }
 0xd66   : > { %v7201_v26 = vmax.f32 %v7185_v21, 0.0  ;;  %v11443_v21 = vmov 0.0|0.0  }
 0xd67   : > { %v7200_v28 = vmax.f32 %v7184_v24, 0.0  ;;  %v10395_v29 = vpop.f32.mrb[120].mxu1  ;;  %11073 = vmatprep.subr.bf16.mxu0 %v11072_v23  ;;  %v7331_v24 = vld [vmem:[%s13807_s22] sm:$0xff] }
 0xd68   : > { %v7187_v30 = vadd.f32 %v10395_v29, %v7171_v25  ;;  %v7139_v31 = vpop.f32.mrb[121].mxu1  ;;  %11075 = vmatpush3.bf16.msra.mxu0 %v11072_v23  ;;  %v7332_v23 = vld [vmem:[%s13807_s22 + $0x8] sm:$0xff]  ;;  %v7334_v29 = vld [vmem:[%s13807_s22 + $0x18] sm:$0xff] }
 0xd69   : > { %v11076_v32 = vpack.c.bf16 %v7201_v26, %v7200_v28  ;;  %v7186_v33 = vadd.f32 %v7170_v27, %v7139_v31  ;;  %v7333_v31 = vld [vmem:[%s13807_s22 + $0x10] sm:$0xff] }
 0xd6a   : > { %v7203_v35 = vmax.f32 %v7187_v30, 0.0 }
 0xd6b   : > { %v7202_v37 = vmax.f32 %v7186_v33, 0.0  ;;  %v10398_v38 = vpop.f32.mrb[122].mxu1  ;;  %11077 = vmatprep.subr.bf16.mxu0 %v11076_v32 }
 0xd6c   : > { %v7189_v41 = vadd.f32 %v10398_v38, %v7173_v34  ;;  %v7149_v40 = vpop.f32.mrb[123].mxu1  ;;  %11079 = vmatpush3.bf16.msra.mxu0 %v11076_v32 }
 0xd6d   : > { %v11080_v43 = vpack.c.bf16 %v7203_v35, %v7202_v37  ;;  %v7188_v45 = vadd.f32 %v7172_v36, %v7149_v40 }
 0xd6e   : > { %v7205_v49 = vmax.f32 %v7189_v41, 0.0 }
 0xd6f   : > { %v7204_v50 = vmax.f32 %v7188_v45, 0.0  ;;  %11081 = vmatprep.subr.bf16.mxu0 %v11080_v43  ;;  %v7437_v45 = vld [vmem:[#allocation2] sm:$0x1] }
 0xd70   : > { %11083 = vmatpush3.bf16.msra.mxu0 %v11080_v43  ;;  %v7436_v43 = vld [vmem:[#allocation7] sm:$0x1] }
 0xd71   : > { %v11084_v44 = vpack.c.bf16 %v7205_v49, %v7204_v50 }
 0xd73   : > { %11085 = vmatprep.subr.bf16.mxu0 %v11084_v44 }
 0xd74   : > { %11087 = vmatpush3.bf16.msra.mxu0 %v11084_v44 }
 0xd77   : > { %10432 = vmatmul.mubr.f32.vlgmr.msra.gmra.mrb[220].mxu0 %v7207_v52 }
 0xd78   : > { %10434 = vmatprep.mubr.f32.mxu0 %v7208_v57 }
 0xd7b   : > { %10435 = vmatmul.mubr.f32.gmra.mrb[222].mxu0 %v7209_v51 }
 0xd7c   : > { %10437 = vmatprep.mubr.f32.mxu0 %v7210_v62 }
 0xd7f   : > { %10438 = vmatmul.mubr.f32.gmra.mrb[224].mxu0 %v7211_v46 }
 0xd80   : > { %10440 = vmatprep.mubr.f32.mxu0 %v7212_v58 }
 0xd83   : > { %10441 = vmatmul.mubr.f32.gmra.mrb[226].mxu0 %v7213_v53 }
 0xd84   : > { %10459 = vmatprep.mubr.msk.f32.mxu0 %vm861_vm0, %v7327_v56 }
 0xe4a   : > { %v10433_v39 = vpop.f32.mrb[220].mxu0 }
 0xe4b   : > { %v7294_v3 = vadd.f32 %v10433_v39, %v7215_v55  ;;  %v7288_v61 = vpop.f32.mrb[221].mxu0 }
 0xe4c   : > { %v7289_v42 = vadd.f32 %v7288_v61, %v7214_v0 }
 0xe4e   : > { %v11088_v4 = vpack.c.bf16 %v7294_v3, %v7289_v42  ;;  %v10436_v63 = vpop.f32.mrb[222].mxu0 }
 0xe4f   : > { %v7304_v5 = vadd.f32 %v10436_v63, %v7217_v1  ;;  %v7298_v6 = vpop.f32.mrb[223].mxu0 }
 0xe50   : > { %v7299_v59 = vadd.f32 %v7298_v6, %v7216_v47  ;;  %11089 = vmatprep.subr.bf16.mxu0 %v11088_v4 }
 0xe51   : > { %11091 = vmatpush3.bf16.msra.mxu0 %v11088_v4 }
 0xe52   : > { %v11092_v48 = vpack.c.bf16 %v7304_v5, %v7299_v59  ;;  %v10439_v10 = vpop.f32.mrb[224].mxu0 }
 0xe53   : > { %v7314_v54 = vadd.f32 %v10439_v10, %v7219_v7  ;;  %v7308_v11 = vpop.f32.mrb[225].mxu0 }
 0xe54   : > { %v7309_v60 = vadd.f32 %v7308_v11, %v7218_v9  ;;  %11093 = vmatprep.subr.bf16.mxu0 %v11092_v48 }
 0xe55   : > { %11095 = vmatpush3.bf16.msra.mxu0 %v11092_v48 }
 0xe56   : > { %v11096_v13 = vpack.c.bf16 %v7314_v54, %v7309_v60  ;;  %v10442_v8 = vpop.f32.mrb[226].mxu0 }
 0xe57   : > { %v7324_v15 = vadd.f32 %v10442_v8, %v7221_v12  ;;  %v7318_v14 = vpop.f32.mrb[227].mxu0 }
 0xe58   : > { %v7319_v16 = vadd.f32 %v7318_v14, %v7220_v2  ;;  %11097 = vmatprep.subr.bf16.mxu0 %v11096_v13 }
 0xe59   : > { %11099 = vmatpush3.bf16.msra.mxu0 %v11096_v13 }
 0xe5a   : > { %v11100_v17 = vpack.c.bf16 %v7324_v15, %v7319_v16 }
 0xe5c   : > { %11101 = vmatprep.subr.bf16.mxu0 %v11100_v17 }
 0xe5d   : > { %11103 = vmatpush3.bf16.msra.mxu0 %v11100_v17 }
 0xe5e   : > { %11104 = vmatprep.subr.bf16.mxu0 %v11443_v21 }
 0xe60   : > { %10460 = vmatmul.mubr.msk.f32.vlgmr.msra.gmra.mrb[228].mxu0 %vm861_vm0, %v7328_v18 }
 0xe61   : > { %10462 = vmatprep.mubr.msk.f32.mxu0 %vm861_vm0, %v7329_v19 }
 0xe64   : > { %10463 = vmatmul.mubr.msk.f32.gmra.mrb[230].mxu0 %vm861_vm0, %v7330_v20 }
 0xe65   : > { %10473 = vmatprep.mubr.msk.f32.mxu0 %vm11444_vm8, %v11445_v22 }
 0xf33   : > { %v10461_v25 = vpop.f32.mrb[228].mxu0 }
 0xf34   : > { %v7419_v26 = vadd.f32 %v10461_v25, %v7332_v23  ;;  %v7413_v27 = vpop.f32.mrb[229].mxu0 }
 0xf35   : > { %v7414_v28 = vadd.f32 %v7413_v27, %v7331_v24 }
 0xf36   : > { %v7433_v30 = vmax.f32 %v7419_v26, 0.0 }
 0xf37   : > { %v7432_v32 = vmax.f32 %v7414_v28, 0.0  ;;  %v10464_v33 = vpop.f32.mrb[230].mxu0 }
 0xf38   : > { %7514 = vst.msk [vmem:[%s841_s0 + $0x8] sm:$0xff] %vm7512_vm9, %v7433_v30  ;;  %v7429_v34 = vadd.f32 %v10464_v33, %v7334_v29  ;;  %v7423_v35 = vpop.f32.mrb[231].mxu0 }
 0xf39   : > { %v11105_v36 = vpack.c.bf16 %v7433_v30, %v7432_v32  ;;  %7513 = vst.msk [vmem:[%s841_s0] sm:$0xff] %vm7512_vm9, %v7432_v32  ;;  %v7424_v37 = vadd.f32 %v7423_v35, %v7333_v31 }
 0xf3a   : > { %v7435_v38 = vmax.f32 %v7429_v34, 0.0 }
 0xf3b   : > { %v7434_v41 = vmax.f32 %v7424_v37, 0.0  ;;  %11106 = vmatpush3.bf16.msra.mxu0 %v11105_v36 }
 0xf3c   : > { %7516 = vst.msk [vmem:[%s841_s0 + $0x18] sm:$0xff] %vm7512_vm9, %v7435_v38  ;;  %11107 = vmatprep.subr.bf16.mxu0 %v11443_v21 }
 0xf3d   : > { %v11108_v40 = vpack.c.bf16 %v7435_v38, %v7434_v41  ;;  %7515 = vst.msk [vmem:[%s841_s0 + $0x10] sm:$0xff] %vm7512_vm9, %v7434_v41 }
 0xf3f   : > { %11109 = vmatpush3.bf16.msra.mxu0 %v11108_v40 }
 0xf42   : > { %10474 = vmatmul.mubr.msk.f32.vlgmr.msra.gmra.mrb[232].mxu0 %vm1996_vm1, %v7436_v43 }
0x1015   : > { %v7507_v49 = vpop.f32.mrb[232].mxu0 }
0x1016   : > { %v7508_v50 = vadd.f32 %v7507_v49, %v7437_v45  ;;  %v10475_v44 = vpop.f32.mrb[233].mxu0 }
0x1018   : > { %v7511_v52 = vmax.f32 %v7508_v50, 0.0 }
0x101a   : > { %7518 = vst.msk [vmem:[%s844_s7] sm:$0x1] %vm7517_vm10, %v7511_v52 }
0x101b PF: > { %s13864_s1 = sld [smem:[#allocation10_spill]] }
0x1021   : > { %s41_s7 = sadd.s32 1, %s13864_s1  }
0x1022   : > { %p38_p5 = scmp.ge.s32.totalorder %s41_s7, 4  }
0x1024   :  { %40 = sbr.rel (!%p38_p5) target bundleno = 16 (0x10), region = 197 }
0x102b   :  { %7552 = vsyncpa [#allocation4], 1 }
0x102c   :  { %7554 = vsyncpa [#allocation4 + $0x1], 1 }
0x102d   :  { %7555 = vsyncpa [#allocation6], 1 }

</bundles_post_ra>
